<compile_context>
chip_gen: v7x
topology: tpu7x:2x2x1
jax: 0.10.0
libtpu: 0.0.40
codegen_flags: <defaults>
</compile_context>

<pallas_src>
import jax
import jax.numpy as jnp
from jax.experimental import pallas as pl
from jax.experimental.pallas import tpu as pltpu

MAX_TM = 1024  # max rows per grid step (128-aligned)

# Standard PointNetClassifier widths: encoder conv 64/128/1024, head 512/256/1.
ENC_DIMS = (64, 128, 1024)
HEAD_DIMS = (512, 256, 1)


def _cdiv(a, b):
    return (a + b - 1) // b


def _round_up(x, m):
    return ((x + m - 1) // m) * m


def _decoder_kernel(x_ref,
                    w1, b1, w2, b2, w3, b3, w4, b4, w5, b5, w6, b6,
                    o_ref):
    """Transposed layout: activations are (channels, TM); output is (1, TM)."""

    def layer(h, w_ref, b_ref, relu):
        # bf16 operands, f32 MXU accumulation; bias column broadcasts over lanes.
        y = jnp.dot(w_ref[...], h, preferred_element_type=jnp.float32) + b_ref[...]
        if relu:
            y = jnp.maximum(y, 0.0)
        return y.astype(jnp.bfloat16)

    h = x_ref[...]                     # (n_in_pad, TM) bf16
    # PointNet encoder: conv1(BN,ReLU) -> conv2(BN,ReLU) -> conv3(BN)
    h = layer(h, w1, b1, True)
    h = layer(h, w2, b2, True)
    h = layer(h, w3, b3, False)
    # max-pool over the points axis: n_points == 1 here, so it is the identity.
    # Classifier head: fc1(BN,ReLU) -> fc2(BN,ReLU) -> fc3 -> sigmoid
    h = layer(h, w4, b4, True)
    h = layer(h, w5, b5, True)
    logits = jnp.dot(w6[...], h, preferred_element_type=jnp.float32) + b6[...]
    o_ref[...] = jax.nn.sigmoid(logits)     # (1, TM) lane-dense store


def init_params(key, n_in):
    """Deterministic synthetic PointNetClassifier params (f32) with BN folded in."""
    dims = (n_in,) + ENC_DIMS + HEAD_DIMS
    params = []
    n_layers = len(dims) - 1
    keys = jax.random.split(key, n_layers)
    eps = 1e-5
    for li in range(n_layers):
        cin, cout = dims[li], dims[li + 1]
        kw, kb, kg, kbe, km, kv = jax.random.split(keys[li], 6)
        w = jax.random.normal(kw, (cin, cout), jnp.float32) * (1.0 / jnp.sqrt(cin))
        b = jax.random.normal(kb, (1, cout), jnp.float32) * 0.01
        if li < n_layers - 1:  # every layer except fc3 has BatchNorm (eval mode)
            gamma = 1.0 + 0.1 * jax.random.normal(kg, (1, cout), jnp.float32)
            beta = 0.05 * jax.random.normal(kbe, (1, cout), jnp.float32)
            mean = 0.05 * jax.random.normal(km, (1, cout), jnp.float32)
            var = jnp.abs(jax.random.normal(kv, (1, cout), jnp.float32)) + 0.5
            scale = gamma / jnp.sqrt(var + eps)
            w = w * scale            # fold BN scale into weights
            b = (b - mean) * scale + beta
        params.append((w, b))
    return params


def prepare_params(params, n_in):
    """One-time layout prep: W1 cin pad, transpose to (cout,cin) bf16, bias column.

    Hoisted out of the per-call wrapper so each forward only moves pre-built
    bf16 slabs (no per-call transpose/convert XLA ops).
    """
    n_in_pad = _round_up(n_in, 8)
    prepped = []
    for li, (w, b) in enumerate(params):
        cin, cout = w.shape
        if li == 0 and cin != n_in_pad:
            w = jnp.pad(w, ((0, n_in_pad - cin), (0, 0)))   # pad W1 cin to n_in_pad
        w_t = jnp.asarray(w.T, jnp.bfloat16)                # (cout, cin) bf16 slab
        b_col = jnp.asarray(b.reshape(cout, 1), jnp.float32)
        prepped.append((jax.device_put(w_t), jax.device_put(b_col)))
    return prepped, n_in_pad


def pointnet_reference(x_rows, params):
    """Pure-JAX f32 reference (row-major) for numerical sanity."""
    h = x_rows
    n = len(params)
    for li, (w, b) in enumerate(params):
        h = h @ w + b
        if li not in (2, n - 1):  # conv3 and fc3 have no ReLU
            h = jnp.maximum(h, 0.0)
    return jax.nn.sigmoid(h)


def pointnet_pallas(x_rows, prepped, n_in_pad):
    """x_rows: (R, n_in) float32 -> (R, 1) sigmoid output via one Pallas call."""
    r, n_in = x_rows.shape

    # R-aware tiling: >=2 blocks once R > 128 (keeps both v7x TCs busy under
    # dimension_semantics=("parallel",)); balanced block size minimizes dead
    # padded rows for ragged R; MAX_TM amortizes per-step overhead.
    n_blocks = _cdiv(r, MAX_TM)
    if r > 128:
        n_blocks = max(n_blocks, 2)
    tm = _round_up(_cdiv(r, n_blocks), 128)
    n_blocks = _cdiv(r, tm)
    r_pad = n_blocks * tm

    # Present the input transposed (channels x rows) so the row axis is the
    # lane axis everywhere in the kernel and the final per-row scalar lands
    # lane-dense.
    x_pad = jnp.pad(x_rows, ((0, r_pad - r), (0, n_in_pad - n_in)))
    x_t = x_pad.T.astype(jnp.bfloat16)                       # (n_in_pad, r_pad)

    in_specs = [pl.BlockSpec((n_in_pad, tm), lambda i: (0, i))]
    flat_args = [x_t]
    for w_t, b_col in prepped:
        in_specs.append(pl.BlockSpec(w_t.shape, lambda i: (0, 0)))    # grid-invariant
        in_specs.append(pl.BlockSpec(b_col.shape, lambda i: (0, 0)))  # grid-invariant
        flat_args += [w_t, b_col]

    out = pl.pallas_call(
        _decoder_kernel,
        out_shape=jax.ShapeDtypeStruct((1, r_pad), jnp.float32),
        grid_spec=pltpu.PrefetchScalarGridSpec(
            num_scalar_prefetch=0,
            grid=(n_blocks,),
            in_specs=in_specs,
            # Block only along lanes; second-to-last block dim (1) == full array
            # dim, so this lowers cleanly and stays lane-dense for any n_blocks.
            out_specs=pl.BlockSpec((1, tm), lambda i: (0, i)),
        ),
        compiler_params=pltpu.CompilerParams(
            dimension_semantics=("parallel",),
            vmem_limit_bytes=40 << 20,   # TM=1024 live set fits; headroom on v7x
        ),
    )(*flat_args)
    # (1, r_pad) lane-major slab == rows in order; drop the padded rows.
    return out.reshape(r_pad, 1)[:r]


def assemble_rows(x, n_in, input_features):
    """Feature concat mirroring CustomGNPDecoder.forward; returns (R, n_in) rows."""
    (target_geoms, target_grasp_points, target_curvatures, target_normals,
     target_midpoints, target_forces, zs, meshes, override_transform) = x
    n_batch, n_grasp = target_forces.shape

    zs_b = jnp.broadcast_to(zs[:, None, :], (n_batch, n_grasp, zs.shape[-1]))
    meshes_b = jnp.broadcast_to(meshes[:, None, :], (n_batch, n_grasp, meshes.shape[-1]))

    feats = [target_grasp_points.reshape(n_batch, n_grasp, -1)]
    if input_features['grasp_normals']:
        feats.append(target_normals.reshape(n_batch, n_grasp, -1))
    if input_features['grasp_curvatures']:
        feats.append(target_curvatures.reshape(n_batch, n_grasp, -1))
    if input_features['grasp_mesh']:
        feats.append(target_geoms)
    feats += [target_forces[:, :, None], zs_b, meshes_b]
    xs_with_latents = jnp.concatenate(feats, axis=2)
    xs = xs_with_latents.reshape(-1, n_in).astype(jnp.float32)
    return xs, n_batch, n_grasp


def custom_gnp_decoder_forward(x, prepped, n_in, n_in_pad, input_features):
    """Mirrors CustomGNPDecoder.forward."""
    xs, n_batch, n_grasp = assemble_rows(x, n_in, input_features)

    # TODO(synk): override_transform (externally supplied 3x3 STN transform
    # applied to the geometric channels inside PointNetClassifier) is not
    # implemented; use_stn=False with override_transform=None is the path
    # exercised here.
    assert x[-1] is None

    out = pointnet_pallas(xs, prepped, n_in_pad)
    return out.reshape(n_batch, n_grasp, 1)


if __name__ == "__main__":
    key = jax.random.PRNGKey(0)
    (k_geom, k_gp, k_curv, k_norm, k_mid, k_force,
     k_z, k_mesh, k_params, k_big) = jax.random.split(key, 10)

    B, G = 2, 8
    D_LATENTS = 8
    D_MESH = 3
    N_FINGERS = 2
    input_features = {'grasp_normals': True,
                      'grasp_curvatures': False,
                      'grasp_mesh': False}

    target_geoms = jax.random.normal(k_geom, (B, G, 3, 16), jnp.float32)
    target_grasp_points = jax.random.normal(k_gp, (B, G, N_FINGERS, 3), jnp.float32)
    target_curvatures = jax.random.normal(k_curv, (B, G, N_FINGERS, 2), jnp.float32)
    target_normals = jax.random.normal(k_norm, (B, G, N_FINGERS, 3), jnp.float32)
    target_midpoints = jax.random.normal(k_mid, (B, G, 3), jnp.float32)
    target_forces = jax.random.uniform(k_force, (B, G), jnp.float32, 5.0, 20.0)
    zs = jax.random.normal(k_z, (B, D_LATENTS), jnp.float32)
    meshes = jax.random.normal(k_mesh, (B, D_MESH), jnp.float32)
    override_transform = None

    # n_in = 2*3 (grasp points) + 2*3 (normals) + 1 (force) + d_latents + d_mesh
    n_in = (N_FINGERS * 3 + N_FINGERS * 3 + 1 + D_LATENTS + D_MESH)

    params = init_params(k_params, n_in)
    prepped, n_in_pad = prepare_params(params, n_in)   # one-time weight prep

    x = (target_geoms, target_grasp_points, target_curvatures, target_normals,
         target_midpoints, target_forces, zs, meshes, override_transform)

    out = custom_gnp_decoder_forward(x, prepped, n_in, n_in_pad, input_features)
    out = jax.block_until_ready(out)
    assert out.shape == (B, G, 1), out.shape
    assert bool(jnp.all(jnp.isfinite(out)))
    assert bool(jnp.all((out >= 0.0) & (out <= 1.0)))

    # Numerical sanity vs. a pure-JAX f32 reference (bf16 MXU path, f32 accumulate).
    xs_rows, _, _ = assemble_rows(x, n_in, input_features)
    ref = pointnet_reference(xs_rows, params).reshape(B, G, 1)
    max_err = float(jnp.max(jnp.abs(out - ref)))
    assert max_err < 0.1, max_err

    # Also exercise the multi-block (n_blocks >= 2, ragged/padded R) output path.
    R_BIG = 320
    xs_big = jax.random.normal(k_big, (R_BIG, n_in), jnp.float32)
    out_big = jax.block_until_ready(pointnet_pallas(xs_big, prepped, n_in_pad))
    assert out_big.shape == (R_BIG, 1), out_big.shape
    ref_big = pointnet_reference(xs_big, params)
    max_err_big = float(jnp.max(jnp.abs(out_big - ref_big)))
    assert max_err_big < 0.1, max_err_big

    print("KERNEL_OK")
</pallas_src>

<mosaic_0001>
module attributes {stable_mosaic.version = 11 : i64} {
  func.func @_decoder_kernel(%arg0: i32, %arg1: memref<24x128xbf16, #tpu.memory_space<vmem>>, %arg2: memref<64x24xbf16, #tpu.memory_space<vmem>>, %arg3: memref<64x1xf32, #tpu.memory_space<vmem>>, %arg4: memref<128x64xbf16, #tpu.memory_space<vmem>>, %arg5: memref<128x1xf32, #tpu.memory_space<vmem>>, %arg6: memref<1024x128xbf16, #tpu.memory_space<vmem>>, %arg7: memref<1024x1xf32, #tpu.memory_space<vmem>>, %arg8: memref<512x1024xbf16, #tpu.memory_space<vmem>>, %arg9: memref<512x1xf32, #tpu.memory_space<vmem>>, %arg10: memref<256x512xbf16, #tpu.memory_space<vmem>>, %arg11: memref<256x1xf32, #tpu.memory_space<vmem>>, %arg12: memref<1x256xbf16, #tpu.memory_space<vmem>>, %arg13: memref<1x1xf32, #tpu.memory_space<vmem>>, %arg14: memref<1x128xf32, #tpu.memory_space<vmem>>) attributes {dimension_semantics = [#tpu.dimension_semantics<parallel>], iteration_bounds = array<i64: 1>, scalar_prefetch = 0 : i64, scratch_operands = 0 : i64, tpu.core_type = #tpu.core_type<tc>, window_params = [{transform_indices = @transform_0, window_bounds = array<i64: 24, 128>}, {pipeline_mode = #tpu.pipeline_mode<synchronous>, transform_indices = @transform_1, window_bounds = array<i64: 64, 24>}, {pipeline_mode = #tpu.pipeline_mode<synchronous>, transform_indices = @transform_2, window_bounds = array<i64: 64, 1>}, {pipeline_mode = #tpu.pipeline_mode<synchronous>, transform_indices = @transform_3, window_bounds = array<i64: 128, 64>}, {pipeline_mode = #tpu.pipeline_mode<synchronous>, transform_indices = @transform_4, window_bounds = array<i64: 128, 1>}, {pipeline_mode = #tpu.pipeline_mode<synchronous>, transform_indices = @transform_5, window_bounds = array<i64: 1024, 128>}, {pipeline_mode = #tpu.pipeline_mode<synchronous>, transform_indices = @transform_6, window_bounds = array<i64: 1024, 1>}, {pipeline_mode = #tpu.pipeline_mode<synchronous>, transform_indices = @transform_7, window_bounds = array<i64: 512, 1024>}, {pipeline_mode = #tpu.pipeline_mode<synchronous>, transform_indices = @transform_8, window_bounds = array<i64: 512, 1>}, {pipeline_mode = #tpu.pipeline_mode<synchronous>, transform_indices = @transform_9, window_bounds = array<i64: 256, 512>}, {pipeline_mode = #tpu.pipeline_mode<synchronous>, transform_indices = @transform_10, window_bounds = array<i64: 256, 1>}, {pipeline_mode = #tpu.pipeline_mode<synchronous>, transform_indices = @transform_11, window_bounds = array<i64: 1, 256>}, {pipeline_mode = #tpu.pipeline_mode<synchronous>, transform_indices = @transform_12, window_bounds = array<i64: 1, 1>}, {transform_indices = @transform_13, window_bounds = array<i64: 1, 128>}]} {
    %c0 = arith.constant 0 : index
    %c0_0 = arith.constant 0 : index
    %0 = vector.load %arg1[%c0, %c0_0] : memref<24x128xbf16, #tpu.memory_space<vmem>>, vector<24x128xbf16>
    %c0_1 = arith.constant 0 : index
    %c0_2 = arith.constant 0 : index
    %1 = vector.load %arg2[%c0_1, %c0_2] : memref<64x24xbf16, #tpu.memory_space<vmem>>, vector<64x24xbf16>
    %cst = arith.constant dense<0.000000e+00> : vector<64x128xf32>
    %2 = tpu.matmul %1, %0, %cst {dimension_numbers = #tpu.dot_dimension_numbers<[1], [0], [0], [1], [0, 0, 1, 1], [], []>} : vector<64x24xbf16>, vector<24x128xbf16>, vector<64x128xf32> -> vector<64x128xf32>
    %c0_3 = arith.constant 0 : index
    %c0_4 = arith.constant 0 : index
    %3 = vector.load %arg3[%c0_3, %c0_4] : memref<64x1xf32, #tpu.memory_space<vmem>>, vector<64x1xf32>
    %4 = vector.broadcast %3 : vector<64x1xf32> to vector<64x128xf32>
    %5 = arith.addf %2, %4 : vector<64x128xf32>
    %cst_5 = arith.constant 0.000000e+00 : f32
    %6 = vector.broadcast %cst_5 : f32 to vector<64x128xf32>
    %7 = arith.maximumf %5, %6 : vector<64x128xf32>
    %8 = arith.truncf %7 : vector<64x128xf32> to vector<64x128xbf16>
    %c0_6 = arith.constant 0 : index
    %c0_7 = arith.constant 0 : index
    %9 = vector.load %arg4[%c0_6, %c0_7] : memref<128x64xbf16, #tpu.memory_space<vmem>>, vector<128x64xbf16>
    %cst_8 = arith.constant dense<0.000000e+00> : vector<128x128xf32>
    %10 = tpu.matmul %9, %8, %cst_8 {dimension_numbers = #tpu.dot_dimension_numbers<[1], [0], [0], [1], [0, 0, 1, 1], [], []>} : vector<128x64xbf16>, vector<64x128xbf16>, vector<128x128xf32> -> vector<128x128xf32>
    %c0_9 = arith.constant 0 : index
    %c0_10 = arith.constant 0 : index
    %11 = vector.load %arg5[%c0_9, %c0_10] : memref<128x1xf32, #tpu.memory_space<vmem>>, vector<128x1xf32>
    %12 = vector.broadcast %11 : vector<128x1xf32> to vector<128x128xf32>
    %13 = arith.addf %10, %12 : vector<128x128xf32>
    %cst_11 = arith.constant 0.000000e+00 : f32
    %14 = vector.broadcast %cst_11 : f32 to vector<128x128xf32>
    %15 = arith.maximumf %13, %14 : vector<128x128xf32>
    %16 = arith.truncf %15 : vector<128x128xf32> to vector<128x128xbf16>
    %c0_12 = arith.constant 0 : index
    %c0_13 = arith.constant 0 : index
    %17 = vector.load %arg6[%c0_12, %c0_13] : memref<1024x128xbf16, #tpu.memory_space<vmem>>, vector<1024x128xbf16>
    %cst_14 = arith.constant dense<0.000000e+00> : vector<1024x128xf32>
    %18 = tpu.matmul %17, %16, %cst_14 {dimension_numbers = #tpu.dot_dimension_numbers<[1], [0], [0], [1], [0, 0, 1, 1], [], []>} : vector<1024x128xbf16>, vector<128x128xbf16>, vector<1024x128xf32> -> vector<1024x128xf32>
    %c0_15 = arith.constant 0 : index
    %c0_16 = arith.constant 0 : index
    %19 = vector.load %arg7[%c0_15, %c0_16] : memref<1024x1xf32, #tpu.memory_space<vmem>>, vector<1024x1xf32>
    %20 = vector.broadcast %19 : vector<1024x1xf32> to vector<1024x128xf32>
    %21 = arith.addf %18, %20 : vector<1024x128xf32>
    %22 = arith.truncf %21 : vector<1024x128xf32> to vector<1024x128xbf16>
    %c0_17 = arith.constant 0 : index
    %c0_18 = arith.constant 0 : index
    %23 = vector.load %arg8[%c0_17, %c0_18] : memref<512x1024xbf16, #tpu.memory_space<vmem>>, vector<512x1024xbf16>
    %cst_19 = arith.constant dense<0.000000e+00> : vector<512x128xf32>
    %24 = tpu.matmul %23, %22, %cst_19 {dimension_numbers = #tpu.dot_dimension_numbers<[1], [0], [0], [1], [0, 0, 1, 1], [], []>} : vector<512x1024xbf16>, vector<1024x128xbf16>, vector<512x128xf32> -> vector<512x128xf32>
    %c0_20 = arith.constant 0 : index
    %c0_21 = arith.constant 0 : index
    %25 = vector.load %arg9[%c0_20, %c0_21] : memref<512x1xf32, #tpu.memory_space<vmem>>, vector<512x1xf32>
    %26 = vector.broadcast %25 : vector<512x1xf32> to vector<512x128xf32>
    %27 = arith.addf %24, %26 : vector<512x128xf32>
    %cst_22 = arith.constant 0.000000e+00 : f32
    %28 = vector.broadcast %cst_22 : f32 to vector<512x128xf32>
    %29 = arith.maximumf %27, %28 : vector<512x128xf32>
    %30 = arith.truncf %29 : vector<512x128xf32> to vector<512x128xbf16>
    %c0_23 = arith.constant 0 : index
    %c0_24 = arith.constant 0 : index
    %31 = vector.load %arg10[%c0_23, %c0_24] : memref<256x512xbf16, #tpu.memory_space<vmem>>, vector<256x512xbf16>
    %cst_25 = arith.constant dense<0.000000e+00> : vector<256x128xf32>
    %32 = tpu.matmul %31, %30, %cst_25 {dimension_numbers = #tpu.dot_dimension_numbers<[1], [0], [0], [1], [0, 0, 1, 1], [], []>} : vector<256x512xbf16>, vector<512x128xbf16>, vector<256x128xf32> -> vector<256x128xf32>
    %c0_26 = arith.constant 0 : index
    %c0_27 = arith.constant 0 : index
    %33 = vector.load %arg11[%c0_26, %c0_27] : memref<256x1xf32, #tpu.memory_space<vmem>>, vector<256x1xf32>
    %34 = vector.broadcast %33 : vector<256x1xf32> to vector<256x128xf32>
    %35 = arith.addf %32, %34 : vector<256x128xf32>
    %cst_28 = arith.constant 0.000000e+00 : f32
    %36 = vector.broadcast %cst_28 : f32 to vector<256x128xf32>
    %37 = arith.maximumf %35, %36 : vector<256x128xf32>
    %38 = arith.truncf %37 : vector<256x128xf32> to vector<256x128xbf16>
    %c0_29 = arith.constant 0 : index
    %c0_30 = arith.constant 0 : index
    %39 = vector.load %arg12[%c0_29, %c0_30] : memref<1x256xbf16, #tpu.memory_space<vmem>>, vector<1x256xbf16>
    %cst_31 = arith.constant dense<0.000000e+00> : vector<1x128xf32>
    %40 = tpu.matmul %39, %38, %cst_31 {dimension_numbers = #tpu.dot_dimension_numbers<[1], [0], [0], [1], [0, 0, 1, 1], [], []>} : vector<1x256xbf16>, vector<256x128xbf16>, vector<1x128xf32> -> vector<1x128xf32>
    %c0_32 = arith.constant 0 : index
    %c0_33 = arith.constant 0 : index
    %41 = vector.load %arg13[%c0_32, %c0_33] : memref<1x1xf32, #tpu.memory_space<vmem>>, vector<1x1xf32>
    %42 = vector.broadcast %41 : vector<1x1xf32> to vector<1x128xf32>
    %43 = arith.addf %40, %42 : vector<1x128xf32>
    %44 = arith.negf %43 : vector<1x128xf32>
    %45 = math.exp %44 : vector<1x128xf32>
    %cst_34 = arith.constant 1.000000e+00 : f32
    %46 = vector.broadcast %cst_34 : f32 to vector<1x128xf32>
    %47 = arith.addf %46, %45 : vector<1x128xf32>
    %48 = arith.divf %46, %47 : vector<1x128xf32>
    %c0_35 = arith.constant 0 : index
    %c0_36 = arith.constant 0 : index
    %49 = vector.load %arg14[%c0_35, %c0_36] : memref<1x128xf32, #tpu.memory_space<vmem>>, vector<1x128xf32>
    tpu.vector_store %arg14[%c0_35, %c0_36], %48 {strides = array<i32>} : memref<1x128xf32, #tpu.memory_space<vmem>>, vector<1x128xf32>,
    return
  }
  func.func @transform_0(%arg0: i32) -> (i32, i32) {
    %c0_i32 = arith.constant 0 : i32
    %c0_i32_0 = arith.constant 0 : i32
    return %c0_i32, %arg0 : i32, i32
  }
  func.func @transform_1(%arg0: i32) -> (i32, i32) {
    %c0_i32 = arith.constant 0 : i32
    %c0_i32_0 = arith.constant 0 : i32
    %c0_i32_1 = arith.constant 0 : i32
    return %c0_i32, %c0_i32_0 : i32, i32
  }
  func.func @transform_2(%arg0: i32) -> (i32, i32) {
    %c0_i32 = arith.constant 0 : i32
    %c0_i32_0 = arith.constant 0 : i32
    %c0_i32_1 = arith.constant 0 : i32
    return %c0_i32, %c0_i32_0 : i32, i32
  }
  func.func @transform_3(%arg0: i32) -> (i32, i32) {
    %c0_i32 = arith.constant 0 : i32
    %c0_i32_0 = arith.constant 0 : i32
    %c0_i32_1 = arith.constant 0 : i32
    return %c0_i32, %c0_i32_0 : i32, i32
  }
  func.func @transform_4(%arg0: i32) -> (i32, i32) {
    %c0_i32 = arith.constant 0 : i32
    %c0_i32_0 = arith.constant 0 : i32
    %c0_i32_1 = arith.constant 0 : i32
    return %c0_i32, %c0_i32_0 : i32, i32
  }
  func.func @transform_5(%arg0: i32) -> (i32, i32) {
    %c0_i32 = arith.constant 0 : i32
    %c0_i32_0 = arith.constant 0 : i32
    %c0_i32_1 = arith.constant 0 : i32
    return %c0_i32, %c0_i32_0 : i32, i32
  }
  func.func @transform_6(%arg0: i32) -> (i32, i32) {
    %c0_i32 = arith.constant 0 : i32
    %c0_i32_0 = arith.constant 0 : i32
    %c0_i32_1 = arith.constant 0 : i32
    return %c0_i32, %c0_i32_0 : i32, i32
  }
  func.func @transform_7(%arg0: i32) -> (i32, i32) {
    %c0_i32 = arith.constant 0 : i32
    %c0_i32_0 = arith.constant 0 : i32
    %c0_i32_1 = arith.constant 0 : i32
    return %c0_i32, %c0_i32_0 : i32, i32
  }
  func.func @transform_8(%arg0: i32) -> (i32, i32) {
    %c0_i32 = arith.constant 0 : i32
    %c0_i32_0 = arith.constant 0 : i32
    %c0_i32_1 = arith.constant 0 : i32
    return %c0_i32, %c0_i32_0 : i32, i32
  }
  func.func @transform_9(%arg0: i32) -> (i32, i32) {
    %c0_i32 = arith.constant 0 : i32
    %c0_i32_0 = arith.constant 0 : i32
    %c0_i32_1 = arith.constant 0 : i32
    return %c0_i32, %c0_i32_0 : i32, i32
  }
  func.func @transform_10(%arg0: i32) -> (i32, i32) {
    %c0_i32 = arith.constant 0 : i32
    %c0_i32_0 = arith.constant 0 : i32
    %c0_i32_1 = arith.constant 0 : i32
    return %c0_i32, %c0_i32_0 : i32, i32
  }
  func.func @transform_11(%arg0: i32) -> (i32, i32) {
    %c0_i32 = arith.constant 0 : i32
    %c0_i32_0 = arith.constant 0 : i32
    %c0_i32_1 = arith.constant 0 : i32
    return %c0_i32, %c0_i32_0 : i32, i32
  }
  func.func @transform_12(%arg0: i32) -> (i32, i32) {
    %c0_i32 = arith.constant 0 : i32
    %c0_i32_0 = arith.constant 0 : i32
    %c0_i32_1 = arith.constant 0 : i32
    return %c0_i32, %c0_i32_0 : i32, i32
  }
  func.func @transform_13(%arg0: i32) -> (i32, i32) {
    %c0_i32 = arith.constant 0 : i32
    %c0_i32_0 = arith.constant 0 : i32
    return %c0_i32, %arg0 : i32, i32
  }
}

</mosaic_0001>

<bundles_post_ra>
// kernel: tpu_custom_call.1
= control target key start
LH: loop header
LB: loop body
LE: loop exit
PB: predicated region body
PF: predicated region fallthrough
CT: control target
= control target key end

     0   :  { %s11125_s0 = inlined_call_operand.vmem [shape: bf16[24,128], index: 0, kind: input, shape index: {}]   ;;  %s11126_s1 = inlined_call_operand.vmem [shape: bf16[64,24], index: 1, kind: input, shape index: {}]   ;;  %s11127_s2 = inlined_call_operand.vmem [shape: f32[64,1], index: 2, kind: input, shape index: {}]   ;;  %s11128_s3 = inlined_call_operand.vmem [shape: bf16[128,64], index: 3, kind: input, shape index: {}]   ;;  %s11129_s4 = inlined_call_operand.vmem [shape: f32[128,1], index: 4, kind: input, shape index: {}]   ;;  %s11130_s5 = inlined_call_operand.hbm [shape: bf16[1024,128], index: 5, kind: input, shape index: {}]   ;;  %s11131_s6 = inlined_call_operand.vmem [shape: f32[1024,1], index: 6, kind: input, shape index: {}]   ;;  %s11132_s7 = inlined_call_operand.vmem [shape: bf16[512,1024], index: 7, kind: input, shape index: {}]   ;;  %s11133_s8 = inlined_call_operand.vmem [shape: f32[512,1], index: 8, kind: input, shape index: {}]   ;;  %s11134_s9 = inlined_call_operand.hbm [shape: bf16[256,512], index: 9, kind: input, shape index: {}]   ;;  %s11135_s10 = inlined_call_operand.vmem [shape: f32[256,1], index: 10, kind: input, shape index: {}]   ;;  %s11136_s11 = inlined_call_operand.vmem [shape: bf16[1,256], index: 11, kind: input, shape index: {}]   ;;  %s11137_s12 = inlined_call_operand.<no memory space> [shape: f32[1,1], index: 12, kind: input, shape index: {}]   ;;  %s11138_s13 = inlined_call_operand.hbm [shape: f32[1,128], index: 13, kind: output, shape index: {}]  }
   0x1   :  { %v18_v0 = vstv %s11137_s12 }
   0x2   :  { %19 = vst [vmem:[#allocation2] sm:$0x1] %v18_v0 }
   0x3   :  { %20 = vsyncpa [#allocation4], 0 }
   0x4   :  { %21 = vsyncpa [#allocation7], 0 }
   0x5   :  { %22 = vsyncpa [#allocation5], 0  ;;  %s8236_s27 = smov [#allocation3]   ;;  %s8164_s14 = scalar_lea.hbm %s11130_s5, 8192 }
   0x6   :  { %s38_s28 = sshll.u32 %s8236_s27, 4  ;;  %p8165_p0 = scmp.ne.s32.totalorder %s11130_s5, %s8164_s14  ;;  %s39_s28 = int_to_ptr.vmem [resolvable:$true] %s38_s28 }
   0x7   :  { %p8168_p1 = scmp.lt.u32.totalorder %s8164_s14, %s11130_s5 }
   0x9   :  { %p8170_p2 = pnand %p8168_p1, %p8165_p0 }
   0xb   :  { %8173 = shalt.err (!%p8170_p2)
}
   0xc   :  { %s8174_s12 = scalar_lea.vmem %s39_s28, 8192  ;;  %p8179_p4 = scmp.lt.s32.totalorder %s39_s28, %s39_s28 }
   0xd   :  { %p8175_p3 = scmp.ne.s32.totalorder %s39_s28, %s8174_s12  ;;  %p8180_p5 = scmp.lt.s32.totalorder %s8174_s12, %s8174_s12 }
   0xf   :  { %p8181_p6 = por %p8180_p5, %p8179_p4 }
  0x11   :  { %p8182_p7 = pnand %p8181_p6, %p8175_p3 }
  0x13   :  { %8185 = shalt.err (!%p8182_p7)
}
  0x14   :  { %s8237_s19 = smov 64   ;;  %s8238_s20 = smov 4  }
  0x15   :  { %44 = dma.hbm_to_vmem [thread:$0]  %s11130_s5, 8192, %s39_s28, [#allocation4], %s8237_s19, %s8237_s19, %s8238_s20  }
  0x16   :  { %s8239_s23 = smov [#allocation6]   ;;  %s8186_s27 = scalar_lea.hbm %s11134_s9, 8192 }
  0x17   :  { %s56_s24 = sshll.u32 %s8239_s23, 4  ;;  %p8187_p8 = scmp.ne.s32.totalorder %s11134_s9, %s8186_s27  ;;  %s57_s24 = int_to_ptr.vmem [resolvable:$true] %s56_s24 }
  0x18   :  { %p8190_p9 = scmp.lt.u32.totalorder %s8186_s27, %s11134_s9 }
  0x1a   :  { %p8192_p10 = pnand %p8190_p9, %p8187_p8 }
  0x1c   :  { %8195 = shalt.err (!%p8192_p10)
}
  0x1d   :  { %s8196_s16 = scalar_lea.vmem %s57_s24, 8192  ;;  %p8201_p12 = scmp.lt.s32.totalorder %s57_s24, %s57_s24 }
  0x1e   :  { %p8197_p11 = scmp.ne.s32.totalorder %s57_s24, %s8196_s16  ;;  %p8202_p13 = scmp.lt.s32.totalorder %s8196_s16, %s8196_s16 }
  0x20   :  { %p8203_p0 = por %p8202_p13, %p8201_p12 }
  0x22   :  { %p8204_p1 = pnand %p8203_p0, %p8197_p11 }
  0x24   :  { %8207 = shalt.err (!%p8204_p1)
}
  0x25   :  { %s8240_s5 = smov 256   ;;  %s8241_s28 = smov 16  }
  0x26   :  { %62 = dma.hbm_to_vmem [thread:$0]  %s11134_s9, 8192, %s57_s24, [#allocation7], %s8240_s5, %s8240_s5, %s8241_s28  }
  0x27   :  { %8230 = dma.done.wait [#allocation4], 8192  }
  0x28   :  { %8231 = vsyncadd [#allocation4], 4294959104 }
  0x29   :  { %8232 = dma.done.wait [#allocation7], 8192  }
  0x2a   :  { %8233 = vsyncadd [#allocation7], 4294959104  ;;  %v11139_v1 = vmov 0   ;;  %v89_v2 = vld [vmem:[%s11127_s2 + $0x10] sm:$0xff]  ;;  %v87_v3 = vld [vmem:[%s11127_s2] sm:$0xff]  ;;  %vm177_vm0 = vcmask 1043456  }
  0x2b   :  { %7985 = vset.pattern.permute.xlu1 %v11139_v1  ;;  %7984 = vset.pattern.permute.xlu0 %v11139_v1  ;;  %v7986_v4 = vld [vmem:[%s11125_s0] sm:$0xff]   ;;  %v90_v5 = vld [vmem:[%s11127_s2 + $0x18] sm:$0xff]  ;;  %v88_v6 = vld [vmem:[%s11127_s2 + $0x8] sm:$0xff]  ;;  %vm164_vm1 = vcmask 195584   ;;  %vm410_vm2 = vcmask 523264  }
  0x2c   :  { %4654 = vmatprep.subr.bf16.mxu1 %v11139_v1  ;;  %107 = vperm.xlu1 %7985, %v89_v2   ;;  %v7987_v7 = vld [vmem:[%s11125_s0 + $0x8] ss:$0 sps:$4 sm:$0xff]   ;;  %v7988_v8 = vld [vmem:[%s11126_s1] sm:$0xff]   ;;  %v7990_v13 = vld [vmem:[%s11126_s1 + $0x10] sm:$0xff]  }
  0x2d   :  { %97 = vperm.xlu0 %7984, %v87_v3   ;;  %7410 = vmatprep.subr.bf16.mxu0 %v7986_v4  ;;  %v179_v9 = vsel %vm177_vm0, %v7987_v7, 0  ;;  %v92_v10 = vld [vmem:[%s11127_s2 + $0x28] sm:$0xff]  ;;  %v91_v11 = vld [vmem:[%s11127_s2 + $0x20] sm:$0xff]  ;;  %v94_v14 = vld [vmem:[%s11127_s2 + $0x38] sm:$0xff] }
  0x2e   :  { %7411 = vmatpush3.bf16.msra.mxu0 %v7986_v4  ;;  %7414 = vmatprep.mubr.msk.bf16.mxu0 %vm164_vm1, %v7988_v8  ;;  %v7989_v12 = vld [vmem:[%s11126_s1 + $0x8] sm:$0xff]   ;;  %v93_v15 = vld [vmem:[%s11127_s2 + $0x30] sm:$0xff]  ;;  %v274_v17 = vld [vmem:[%s11129_s4] sm:$0xff] }
  0x2f   :  { %7974 = vmatprep.subr.msk.bf16.mxu0 %vm177_vm0, %v7987_v7  ;;  %v275_v16 = vld [vmem:[%s11129_s4 + $0x8] sm:$0xff]  ;;  %v7991_v18 = vld [vmem:[%s11126_s1 + $0x18] sm:$0xff]   ;;  %v276_v20 = vld [vmem:[%s11129_s4 + $0x10] sm:$0xff] }
  0x30   :  { %112 = vperm.xlu1 %7985, %v90_v5   ;;  %v277_v19 = vld [vmem:[%s11129_s4 + $0x18] sm:$0xff]  ;;  %v279_v21 = vld [vmem:[%s11129_s4 + $0x28] sm:$0xff]  ;;  %v278_v22 = vld [vmem:[%s11129_s4 + $0x20] sm:$0xff] }
  0x31   :  { %102 = vperm.xlu0 %7984, %v88_v6   ;;  %v281_v23 = vld [vmem:[%s11129_s4 + $0x38] sm:$0xff]  ;;  %v280_v24 = vld [vmem:[%s11129_s4 + $0x30] sm:$0xff]  ;;  %v283_v25 = vld [vmem:[%s11129_s4 + $0x48] sm:$0xff] }
  0x32   :  { %7413 = vmatpush3.bf16.msra.mxu0 %v179_v9  ;;  %v282_v26 = vld [vmem:[%s11129_s4 + $0x40] sm:$0xff]  ;;  %v285_v27 = vld [vmem:[%s11129_s4 + $0x58] sm:$0xff]  ;;  %v284_v28 = vld [vmem:[%s11129_s4 + $0x50] sm:$0xff] }
  0x33   :  { %v287_v29 = vld [vmem:[%s11129_s4 + $0x68] sm:$0xff]  ;;  %v286_v30 = vld [vmem:[%s11129_s4 + $0x60] sm:$0xff]  ;;  %v289_v31 = vld [vmem:[%s11129_s4 + $0x78] sm:$0xff] }
  0x34   :  { %122 = vperm.xlu1 %7985, %v92_v10   ;;  %v288_v32 = vld [vmem:[%s11129_s4 + $0x70] sm:$0xff]  ;;  %v717_v33 = vld [vmem:[%s11131_s6 + $0x108] sm:$0xff]  ;;  %v716_v34 = vld [vmem:[%s11131_s6 + $0x100] sm:$0xff] }
  0x35   :  { %117 = vperm.xlu0 %7984, %v91_v11   ;;  %7415 = vmatmul.mubr.msk.bf16.vlgmr.msra.gmra.mrb[0].mxu0 %vm164_vm1, %v7989_v12  ;;  %v719_v35 = vld [vmem:[%s11131_s6 + $0x118] sm:$0xff]  ;;  %v718_v36 = vld [vmem:[%s11131_s6 + $0x110] sm:$0xff]  ;;  %v721_v37 = vld [vmem:[%s11131_s6 + $0x128] sm:$0xff] }
  0x36   :  { %7418 = vmatprep.mubr.msk.bf16.mxu0 %vm164_vm1, %v7990_v13  ;;  %v720_v38 = vld [vmem:[%s11131_s6 + $0x120] sm:$0xff]  ;;  %v723_v39 = vld [vmem:[%s11131_s6 + $0x138] sm:$0xff]  ;;  %v722_v40 = vld [vmem:[%s11131_s6 + $0x130] sm:$0xff] }
  0x37   :  { %v725_v41 = vld [vmem:[%s11131_s6 + $0x148] sm:$0xff]  ;;  %v724_v42 = vld [vmem:[%s11131_s6 + $0x140] sm:$0xff]  ;;  %v727_v43 = vld [vmem:[%s11131_s6 + $0x158] sm:$0xff] }
  0x38   :  { %132 = vperm.xlu1 %7985, %v94_v14   ;;  %v726_v44 = vld [vmem:[%s11131_s6 + $0x150] sm:$0xff]  ;;  %v729_v45 = vld [vmem:[%s11131_s6 + $0x168] sm:$0xff]  ;;  %v728_v46 = vld [vmem:[%s11131_s6 + $0x160] sm:$0xff] }
  0x39   :  { %127 = vperm.xlu0 %7984, %v93_v15   ;;  %v731_v47 = vld [vmem:[%s11131_s6 + $0x178] sm:$0xff]  ;;  %v730_v48 = vld [vmem:[%s11131_s6 + $0x170] sm:$0xff]  ;;  %v733_v49 = vld [vmem:[%s11131_s6 + $0x188] sm:$0xff] }
  0x3a   :  { %v732_v50 = vld [vmem:[%s11131_s6 + $0x180] sm:$0xff]  ;;  %v735_v51 = vld [vmem:[%s11131_s6 + $0x198] sm:$0xff]  ;;  %v734_v52 = vld [vmem:[%s11131_s6 + $0x190] sm:$0xff] }
  0x3b   :  { %v737_v53 = vld [vmem:[%s11131_s6 + $0x1a8] sm:$0xff]  ;;  %v736_v54 = vld [vmem:[%s11131_s6 + $0x1a0] sm:$0xff]  ;;  %v739_v55 = vld [vmem:[%s11131_s6 + $0x1b8] sm:$0xff] }
  0x3c   :  { %297 = vperm.xlu1 %7985, %v275_v16   ;;  %v738_v56 = vld [vmem:[%s11131_s6 + $0x1b0] sm:$0xff]  ;;  %v741_v57 = vld [vmem:[%s11131_s6 + $0x1c8] sm:$0xff]  ;;  %v740_v58 = vld [vmem:[%s11131_s6 + $0x1c0] sm:$0xff] }
  0x3d   :  { %292 = vperm.xlu0 %7984, %v274_v17   ;;  %7419 = vmatmul.mubr.msk.bf16.gmra.mrb[4].mxu0 %vm164_vm1, %v7991_v18  ;;  %v743_v59 = vld [vmem:[%s11131_s6 + $0x1d8] sm:$0xff]  ;;  %v742_v60 = vld [vmem:[%s11131_s6 + $0x1d0] sm:$0xff]  ;;  %v745_v61 = vld [vmem:[%s11131_s6 + $0x1e8] sm:$0xff] }
  0x3e   :  { %v744_v62 = vld [vmem:[%s11131_s6 + $0x1e0] sm:$0xff]  ;;  %v747_v63 = vld [vmem:[%s11131_s6 + $0x1f8] sm:$0xff]  ;;  %v746_v0 = vld [vmem:[%s11131_s6 + $0x1f0] sm:$0xff] }
  0x3f   :  { %v749_v2 = vld [vmem:[%s11131_s6 + $0x208] sm:$0xff]  ;;  %v748_v3 = vld [vmem:[%s11131_s6 + $0x200] sm:$0xff]  ;;  %v751_v4 = vld [vmem:[%s11131_s6 + $0x218] sm:$0xff] }
  0x40   :  { %307 = vperm.xlu1 %7985, %v277_v19   ;;  %v750_v5 = vld [vmem:[%s11131_s6 + $0x210] sm:$0xff]  ;;  %v753_v6 = vld [vmem:[%s11131_s6 + $0x228] sm:$0xff]  ;;  %v752_v7 = vld [vmem:[%s11131_s6 + $0x220] sm:$0xff] }
  0x41   :  { %302 = vperm.xlu0 %7984, %v276_v20   ;;  %v7992_v8 = vld [vmem:[%s11128_s3] sm:$0xff]   ;;  %v755_v9 = vld [vmem:[%s11131_s6 + $0x238] sm:$0xff]  ;;  %v754_v10 = vld [vmem:[%s11131_s6 + $0x230] sm:$0xff] }
  0x42   :  { %7430 = vmatprep.mubr.msk.bf16.mxu0 %vm410_vm2, %v7992_v8  ;;  %v757_v11 = vld [vmem:[%s11131_s6 + $0x248] sm:$0xff]  ;;  %v756_v12 = vld [vmem:[%s11131_s6 + $0x240] sm:$0xff]  ;;  %v759_v15 = vld [vmem:[%s11131_s6 + $0x258] sm:$0xff] }
  0x43   :  { %v758_v16 = vld [vmem:[%s11131_s6 + $0x250] sm:$0xff]  ;;  %v761_v19 = vld [vmem:[%s11131_s6 + $0x268] sm:$0xff]  ;;  %v760_v20 = vld [vmem:[%s11131_s6 + $0x260] sm:$0xff] }
  0x44   :  { %317 = vperm.xlu1 %7985, %v279_v21   ;;  %v783_v8 = vld [vmem:[%s11131_s6 + $0x318] sm:$0xff] }
  0x45   :  { %312 = vperm.xlu0 %7984, %v278_v22  }
  0x48   :  { %327 = vperm.xlu1 %7985, %v281_v23   ;;  %v763_v23 = vld [vmem:[%s11131_s6 + $0x278] sm:$0xff] }
  0x49   :  { %322 = vperm.xlu0 %7984, %v280_v24   ;;  %v762_v24 = vld [vmem:[%s11131_s6 + $0x270] sm:$0xff] }
  0x4c   :  { %337 = vperm.xlu1 %7985, %v283_v25  }
  0x4d   :  { %332 = vperm.xlu0 %7984, %v282_v26  }
  0x50   :  { %347 = vperm.xlu1 %7985, %v285_v27   ;;  %v765_v27 = vld [vmem:[%s11131_s6 + $0x288] sm:$0xff] }
  0x51   :  { %342 = vperm.xlu0 %7984, %v284_v28   ;;  %v764_v28 = vld [vmem:[%s11131_s6 + $0x280] sm:$0xff] }
  0x54   :  { %357 = vperm.xlu1 %7985, %v287_v29  }
  0x55   :  { %352 = vperm.xlu0 %7984, %v286_v30  }
  0x58   :  { %367 = vperm.xlu1 %7985, %v289_v31   ;;  %v767_v31 = vld [vmem:[%s11131_s6 + $0x298] sm:$0xff] }
  0x59   :  { %362 = vperm.xlu0 %7984, %v288_v32   ;;  %v766_v32 = vld [vmem:[%s11131_s6 + $0x290] sm:$0xff] }
  0x5c   :  { %979 = vperm.xlu1 %7985, %v717_v33  }
  0x5d   :  { %974 = vperm.xlu0 %7984, %v716_v34  }
  0x60   :  { %989 = vperm.xlu1 %7985, %v719_v35   ;;  %v769_v35 = vld [vmem:[%s11131_s6 + $0x2a8] sm:$0xff] }
  0x61   :  { %984 = vperm.xlu0 %7984, %v718_v36   ;;  %v768_v36 = vld [vmem:[%s11131_s6 + $0x2a0] sm:$0xff] }
  0x64   :  { %999 = vperm.xlu1 %7985, %v721_v37  }
  0x65   :  { %994 = vperm.xlu0 %7984, %v720_v38  }
  0x68   :  { %1009 = vperm.xlu1 %7985, %v723_v39   ;;  %v771_v39 = vld [vmem:[%s11131_s6 + $0x2b8] sm:$0xff] }
  0x69   :  { %1004 = vperm.xlu0 %7984, %v722_v40   ;;  %v770_v40 = vld [vmem:[%s11131_s6 + $0x2b0] sm:$0xff] }
  0x6c   :  { %1019 = vperm.xlu1 %7985, %v725_v41  }
  0x6d   :  { %1014 = vperm.xlu0 %7984, %v724_v42  }
  0x70   :  { %1029 = vperm.xlu1 %7985, %v727_v43   ;;  %v773_v43 = vld [vmem:[%s11131_s6 + $0x2c8] sm:$0xff] }
  0x71   :  { %1024 = vperm.xlu0 %7984, %v726_v44   ;;  %v772_v44 = vld [vmem:[%s11131_s6 + $0x2c0] sm:$0xff] }
  0x74   :  { %1039 = vperm.xlu1 %7985, %v729_v45  }
  0x75   :  { %1034 = vperm.xlu0 %7984, %v728_v46  }
  0x78   :  { %1049 = vperm.xlu1 %7985, %v731_v47   ;;  %v775_v47 = vld [vmem:[%s11131_s6 + $0x2d8] sm:$0xff] }
  0x79   :  { %1044 = vperm.xlu0 %7984, %v730_v48   ;;  %v774_v48 = vld [vmem:[%s11131_s6 + $0x2d0] sm:$0xff] }
  0x7c   :  { %1059 = vperm.xlu1 %7985, %v733_v49  }
  0x7d   :  { %1054 = vperm.xlu0 %7984, %v732_v50  }
  0x80   :  { %1069 = vperm.xlu1 %7985, %v735_v51   ;;  %v777_v51 = vld [vmem:[%s11131_s6 + $0x2e8] sm:$0xff] }
  0x81   :  { %1064 = vperm.xlu0 %7984, %v734_v52   ;;  %v776_v52 = vld [vmem:[%s11131_s6 + $0x2e0] sm:$0xff] }
  0x84   :  { %1079 = vperm.xlu1 %7985, %v737_v53  }
  0x85   :  { %1074 = vperm.xlu0 %7984, %v736_v54  }
  0x88   :  { %1089 = vperm.xlu1 %7985, %v739_v55   ;;  %v779_v55 = vld [vmem:[%s11131_s6 + $0x2f8] sm:$0xff] }
  0x89   :  { %1084 = vperm.xlu0 %7984, %v738_v56   ;;  %v778_v56 = vld [vmem:[%s11131_s6 + $0x2f0] sm:$0xff] }
  0x8c   :  { %1099 = vperm.xlu1 %7985, %v741_v57  }
  0x8d   :  { %1094 = vperm.xlu0 %7984, %v740_v58  }
  0x90   :  { %1109 = vperm.xlu1 %7985, %v743_v59   ;;  %v685_v59 = vld [vmem:[%s11131_s6 + $0x8] sm:$0xff] }
  0x91   :  { %1104 = vperm.xlu0 %7984, %v742_v60   ;;  %v684_v60 = vld [vmem:[%s11131_s6] sm:$0xff] }
  0x94   :  { %1119 = vperm.xlu1 %7985, %v745_v61  }
  0x95   :  { %1114 = vperm.xlu0 %7984, %v744_v62  }
  0x98   :  { %1129 = vperm.xlu1 %7985, %v747_v63   ;;  %v781_v63 = vld [vmem:[%s11131_s6 + $0x308] sm:$0xff] }
  0x99   :  { %1124 = vperm.xlu0 %7984, %v746_v0   ;;  %v780_v0 = vld [vmem:[%s11131_s6 + $0x300] sm:$0xff] }
  0x9c   :  { %1139 = vperm.xlu1 %7985, %v749_v2  }
  0x9d   :  { %1134 = vperm.xlu0 %7984, %v748_v3  }
  0xa0   :  { %1149 = vperm.xlu1 %7985, %v751_v4   ;;  %v687_v4 = vld [vmem:[%s11131_s6 + $0x18] sm:$0xff] }
  0xa1   :  { %1144 = vperm.xlu0 %7984, %v750_v5   ;;  %v686_v5 = vld [vmem:[%s11131_s6 + $0x10] sm:$0xff] }
  0xa4   :  { %1159 = vperm.xlu1 %7985, %v753_v6  }
  0xa5   :  { %1154 = vperm.xlu0 %7984, %v752_v7  }
  0xa8   :  { %1169 = vperm.xlu1 %7985, %v755_v9   ;;  %v782_v9 = vld [vmem:[%s11131_s6 + $0x310] sm:$0xff] }
  0xa9   :  { %1164 = vperm.xlu0 %7984, %v754_v10  }
  0xab   :  { %v8569_v13 = vpop.permute.xlu1 %107 }
  0xac   :  { %v8571_v14 = vpop.permute.xlu0 %97  ;;  %1179 = vperm.xlu1 %7985, %v757_v11  }
  0xad   :  { %1174 = vperm.xlu0 %7984, %v756_v12   ;;  %v689_v12 = vld [vmem:[%s11131_s6 + $0x28] sm:$0xff] }
  0xaf   :  { %v8579_v17 = vpop.permute.xlu1 %112 }
  0xb0   :  { %v8581_v18 = vpop.permute.xlu0 %102  ;;  %1189 = vperm.xlu1 %7985, %v759_v15   ;;  %v688_v15 = vld [vmem:[%s11131_s6 + $0x20] sm:$0xff] }
  0xb1   :  { %1184 = vperm.xlu0 %7984, %v758_v16  }
  0xb3   :  { %v8589_v21 = vpop.permute.xlu1 %122 }
  0xb4   :  { %v8591_v22 = vpop.permute.xlu0 %117  ;;  %1199 = vperm.xlu1 %7985, %v761_v19  }
  0xb5   :  { %1194 = vperm.xlu0 %7984, %v760_v20   ;;  %v785_v20 = vld [vmem:[%s11131_s6 + $0x328] sm:$0xff] }
  0xb7   :  { %v8599_v25 = vpop.permute.xlu1 %132 }
  0xb8   :  { %v8601_v26 = vpop.permute.xlu0 %127  ;;  %1209 = vperm.xlu1 %7985, %v763_v23   ;;  %v784_v23 = vld [vmem:[%s11131_s6 + $0x320] sm:$0xff] }
  0xb9   :  { %1204 = vperm.xlu0 %7984, %v762_v24  }
  0xbb   :  { %v8609_v29 = vpop.permute.xlu1 %297 }
  0xbc   :  { %v8611_v30 = vpop.permute.xlu0 %292  ;;  %1219 = vperm.xlu1 %7985, %v765_v27  }
  0xbd   :  { %1214 = vperm.xlu0 %7984, %v764_v28   ;;  %v691_v28 = vld [vmem:[%s11131_s6 + $0x38] sm:$0xff] }
  0xbf   :  { %v8619_v33 = vpop.permute.xlu1 %307 }
  0xc0   :  { %v8621_v34 = vpop.permute.xlu0 %302  ;;  %1229 = vperm.xlu1 %7985, %v767_v31   ;;  %v690_v31 = vld [vmem:[%s11131_s6 + $0x30] sm:$0xff] }
  0xc1   :  { %1224 = vperm.xlu0 %7984, %v766_v32  }
  0xc3   :  { %v8629_v37 = vpop.permute.xlu1 %317 }
  0xc4   :  { %v8631_v38 = vpop.permute.xlu0 %312  ;;  %1239 = vperm.xlu1 %7985, %v769_v35  }
  0xc5   :  { %1234 = vperm.xlu0 %7984, %v768_v36   ;;  %v787_v36 = vld [vmem:[%s11131_s6 + $0x338] sm:$0xff] }
  0xc7   :  { %v8639_v41 = vpop.permute.xlu1 %327 }
  0xc8   :  { %v8641_v42 = vpop.permute.xlu0 %322  ;;  %1249 = vperm.xlu1 %7985, %v771_v39   ;;  %v786_v39 = vld [vmem:[%s11131_s6 + $0x330] sm:$0xff] }
  0xc9   :  { %1244 = vperm.xlu0 %7984, %v770_v40  }
  0xcb   :  { %v8649_v45 = vpop.permute.xlu1 %337 }
  0xcc   :  { %v8651_v46 = vpop.permute.xlu0 %332  ;;  %1259 = vperm.xlu1 %7985, %v773_v43  }
  0xcd   :  { %1254 = vperm.xlu0 %7984, %v772_v44   ;;  %v693_v44 = vld [vmem:[%s11131_s6 + $0x48] sm:$0xff] }
  0xcf   :  { %v8659_v49 = vpop.permute.xlu1 %347 }
  0xd0   :  { %v8661_v50 = vpop.permute.xlu0 %342  ;;  %1269 = vperm.xlu1 %7985, %v775_v47   ;;  %v692_v47 = vld [vmem:[%s11131_s6 + $0x40] sm:$0xff] }
  0xd1   :  { %1264 = vperm.xlu0 %7984, %v774_v48  }
  0xd3   :  { %v8669_v53 = vpop.permute.xlu1 %357 }
  0xd4   :  { %v8671_v54 = vpop.permute.xlu0 %352  ;;  %1279 = vperm.xlu1 %7985, %v777_v51  }
  0xd5   :  { %1274 = vperm.xlu0 %7984, %v776_v52   ;;  %v789_v52 = vld [vmem:[%s11131_s6 + $0x348] sm:$0xff] }
  0xd7   :  { %v8679_v57 = vpop.permute.xlu1 %367 }
  0xd8   :  { %v8681_v58 = vpop.permute.xlu0 %362  ;;  %1289 = vperm.xlu1 %7985, %v779_v55   ;;  %v788_v55 = vld [vmem:[%s11131_s6 + $0x340] sm:$0xff] }
  0xd9   :  { %1284 = vperm.xlu0 %7984, %v778_v56  }
  0xdb   :  { %v8689_v61 = vpop.permute.xlu1 %979 }
  0xdc   :  { %v8691_v62 = vpop.permute.xlu0 %974  ;;  %819 = vperm.xlu1 %7985, %v685_v59  }
  0xdd   :  { %814 = vperm.xlu0 %7984, %v684_v60   ;;  %v695_v60 = vld [vmem:[%s11131_s6 + $0x58] sm:$0xff] }
  0xdf   :  { %v8699_v2 = vpop.permute.xlu1 %989 }
  0xe0   :  { %v8701_v3 = vpop.permute.xlu0 %984  ;;  %1299 = vperm.xlu1 %7985, %v781_v63   ;;  %v694_v63 = vld [vmem:[%s11131_s6 + $0x50] sm:$0xff] }
  0xe1   :  { %1294 = vperm.xlu0 %7984, %v780_v0  }
  0xe3   :  { %v8709_v6 = vpop.permute.xlu1 %999 }
  0xe4   :  { %v8711_v7 = vpop.permute.xlu0 %994  ;;  %829 = vperm.xlu1 %7985, %v687_v4  }
  0xe5   :  { %824 = vperm.xlu0 %7984, %v686_v5   ;;  %v791_v5 = vld [vmem:[%s11131_s6 + $0x358] sm:$0xff] }
  0xe7   :  { %v8719_v10 = vpop.permute.xlu1 %1009 }
  0xe8   :  { %v8721_v11 = vpop.permute.xlu0 %1004  ;;  %1309 = vperm.xlu1 %7985, %v783_v8   ;;  %v790_v8 = vld [vmem:[%s11131_s6 + $0x350] sm:$0xff] }
  0xe9   :  { %1304 = vperm.xlu0 %7984, %v782_v9  }
  0xeb   :  { %v8729_v16 = vpop.permute.xlu1 %1019 }
  0xec   :  { %11144 = vst [vmem:[#allocation12_spill] sm:$0xff] %v8729_v16  ;;  %v8731_v19 = vpop.permute.xlu0 %1014  ;;  %839 = vperm.xlu1 %7985, %v689_v12  }
  0xed   :  { %11145 = vst [vmem:[#allocation13_spill] sm:$0xff] %v8731_v19  ;;  %834 = vperm.xlu0 %7984, %v688_v15  }
  0xef   :  { %v8739_v24 = vpop.permute.xlu1 %1029 }
  0xf0   :  { %11146 = vst [vmem:[#allocation14_spill] sm:$0xff] %v8739_v24  ;;  %v8741_v27 = vpop.permute.xlu0 %1024  ;;  %1319 = vperm.xlu1 %7985, %v785_v20   ;;  %v697_v20 = vld [vmem:[%s11131_s6 + $0x68] sm:$0xff] }
  0xf1   :  { %11147 = vst [vmem:[#allocation15_spill] sm:$0xff] %v8741_v27  ;;  %1314 = vperm.xlu0 %7984, %v784_v23   ;;  %v696_v23 = vld [vmem:[%s11131_s6 + $0x60] sm:$0xff] }
  0xf3   :  { %v8749_v32 = vpop.permute.xlu1 %1039 }
  0xf4   :  { %11148 = vst [vmem:[#allocation16_spill] sm:$0xff] %v8749_v32  ;;  %v8751_v35 = vpop.permute.xlu0 %1034  ;;  %849 = vperm.xlu1 %7985, %v691_v28  }
  0xf5   :  { %11149 = vst [vmem:[#allocation17_spill] sm:$0xff] %v8751_v35  ;;  %844 = vperm.xlu0 %7984, %v690_v31  }
  0xf7   :  { %v8759_v40 = vpop.permute.xlu1 %1049 }
  0xf8   :  { %11150 = vst [vmem:[#allocation18_spill] sm:$0xff] %v8759_v40  ;;  %v8761_v43 = vpop.permute.xlu0 %1044  ;;  %1329 = vperm.xlu1 %7985, %v787_v36  }
  0xf9   :  { %11151 = vst [vmem:[#allocation19_spill] sm:$0xff] %v8761_v43  ;;  %1324 = vperm.xlu0 %7984, %v786_v39  }
  0xfb   :  { %v8769_v48 = vpop.permute.xlu1 %1059 }
  0xfc   :  { %11152 = vst [vmem:[#allocation20_spill] sm:$0xff] %v8769_v48  ;;  %v8771_v51 = vpop.permute.xlu0 %1054  ;;  %859 = vperm.xlu1 %7985, %v693_v44  }
  0xfd   :  { %11153 = vst [vmem:[#allocation21_spill] sm:$0xff] %v8771_v51  ;;  %854 = vperm.xlu0 %7984, %v692_v47   ;;  %v5686_v51 = vld [vmem:[%s11135_s10 + $0x28] sm:$0xff] }
  0xff   :  { %v8779_v56 = vpop.permute.xlu1 %1069 }
 0x100   :  { %11154 = vst [vmem:[#allocation22_spill] sm:$0xff] %v8779_v56  ;;  %v8781_v59 = vpop.permute.xlu0 %1064  ;;  %1339 = vperm.xlu1 %7985, %v789_v52  }
 0x101   :  { %11155 = vst [vmem:[#allocation23_spill] sm:$0xff] %v8781_v59  ;;  %1334 = vperm.xlu0 %7984, %v788_v55  }
 0x103   :  { %v8789_v0 = vpop.permute.xlu1 %1079 }
 0x104   :  { %11156 = vst [vmem:[#allocation24_spill] sm:$0xff] %v8789_v0  ;;  %v8791_v4 = vpop.permute.xlu0 %1074  ;;  %869 = vperm.xlu1 %7985, %v695_v60   ;;  %v793_v60 = vld [vmem:[%s11131_s6 + $0x368] sm:$0xff] }
 0x105   :  { %11157 = vst [vmem:[#allocation25_spill] sm:$0xff] %v8791_v4  ;;  %864 = vperm.xlu0 %7984, %v694_v63   ;;  %v2748_v4 = vld [vmem:[%s11133_s8 + $0x178] sm:$0xff] }
 0x107   :  { %v8799_v9 = vpop.permute.xlu1 %1089 }
 0x108   :  { %11158 = vst [vmem:[#allocation26_spill] sm:$0xff] %v8799_v9  ;;  %v8801_v12 = vpop.permute.xlu0 %1084  ;;  %1349 = vperm.xlu1 %7985, %v791_v5   ;;  %v7416_v15 = vpop.f32.mrb[0].mxu0 }
 0x109   :  { %11159 = vst [vmem:[#allocation27_spill] sm:$0xff] %v8801_v12  ;;  %1344 = vperm.xlu0 %7984, %v790_v8   ;;  %v215_v28 = vpop.f32.mrb[1].mxu0  ;;  %v224_v31 = vadd.f32 %v7416_v15, %v8569_v13  ;;  %v792_v13 = vld [vmem:[%s11131_s6 + $0x360] sm:$0xff]  ;;  %v5700_v12 = vld [vmem:[%s11135_s10 + $0x98] sm:$0xff] }
 0x10a   :  { %v216_v44 = vadd.f32 %v215_v28, %v8571_v14  ;;  %v7417_v47 = vpop.f32.mrb[2].mxu0  ;;  %v699_v28 = vld [vmem:[%s11131_s6 + $0x78] sm:$0xff] }
 0x10b   :  { %v8810_v36 = vpop.permute.xlu1 %1099  ;;  %v227_v52 = vadd.f32 %v7417_v47, %v8579_v17  ;;  %v218_v55 = vpop.f32.mrb[3].mxu0  ;;  %v248_v5 = vmax.f32 %v224_v31, 0.0 }
 0x10c   :  { %11160 = vst [vmem:[#allocation28_spill] sm:$0xff] %v8810_v36  ;;  %v8812_v39 = vpop.permute.xlu0 %1094  ;;  %879 = vperm.xlu1 %7985, %v697_v20   ;;  %v219_v63 = vadd.f32 %v218_v55, %v8581_v18  ;;  %v246_v20 = vmax.f32 %v216_v44, 0.0  ;;  %v698_v18 = vld [vmem:[%s11131_s6 + $0x70] sm:$0xff] }
 0x10d   :  { %11161 = vst [vmem:[#allocation29_spill] sm:$0xff] %v8812_v39  ;;  %874 = vperm.xlu0 %7984, %v696_v23   ;;  %v249_v8 = vmax.f32 %v227_v52, 0.0  ;;  %v2742_v39 = vld [vmem:[%s11133_s8 + $0x148] sm:$0xff] }
 0x10e   :  { %v247_v23 = vmax.f32 %v219_v63, 0.0 }
 0x10f   :  { %v8823_v15 = vpop.permute.xlu1 %1109  ;;  %v255_v47 = vpack.c.bf16 %v249_v8, %v248_v5  ;;  %v795_v5 = vld [vmem:[%s11131_s6 + $0x378] sm:$0xff]  ;;  %v794_v8 = vld [vmem:[%s11131_s6 + $0x370] sm:$0xff] }
 0x110   :  { %11162 = vst [vmem:[#allocation30_spill] sm:$0xff] %v8823_v15  ;;  %v8825_v14 = vpop.permute.xlu0 %1104  ;;  %1359 = vperm.xlu1 %7985, %v793_v60   ;;  %v7420_v17 = vpop.f32.mrb[4].mxu0  ;;  %v254_v36 = vpack.c.bf16 %v247_v23, %v246_v20 }
 0x111   :  { %11163 = vst [vmem:[#allocation31_spill] sm:$0xff] %v8825_v14  ;;  %1354 = vperm.xlu0 %7984, %v792_v13   ;;  %v231_v1 = vpop.f32.mrb[5].mxu0  ;;  %v240_v31 = vadd.f32 %v7420_v17, %v8601_v26  ;;  %v2762_v14 = vld [vmem:[%s11133_s8 + $0x1e8] sm:$0xff] }
 0x112   :  { %v232_v55 = vadd.f32 %v231_v1, %v8591_v22  ;;  %v7421_v60 = vpop.f32.mrb[6].mxu0  ;;  %7422 = vmatprep.subr.bf16.mxu0 %v254_v36 }
 0x113   :  { %v8834_v52 = vpop.permute.xlu1 %1119  ;;  %v243_v13 = vadd.f32 %v7421_v60, %v8599_v25  ;;  %v234_v63 = vpop.f32.mrb[7].mxu0  ;;  %7423 = vmatpush3.bf16.msra.mxu0 %v254_v36  ;;  %v252_v1 = vmax.f32 %v240_v31, 0.0 }
 0x114   :  { %11164 = vst [vmem:[#allocation32_spill] sm:$0xff] %v8834_v52  ;;  %v8836_v44 = vpop.permute.xlu0 %1114  ;;  %889 = vperm.xlu1 %7985, %v699_v28   ;;  %v235_v26 = vadd.f32 %v234_v63, %v8589_v21  ;;  %7424 = vmatprep.subr.bf16.mxu0 %v255_v47  ;;  %v250_v25 = vmax.f32 %v232_v55, 0.0  ;;  %v701_v21 = vld [vmem:[%s11131_s6 + $0x88] sm:$0xff]  ;;  %v796_v55 = vld [vmem:[%s11131_s6 + $0x380] sm:$0xff] }
 0x115   :  { %11165 = vst [vmem:[#allocation33_spill] sm:$0xff] %v8836_v44  ;;  %884 = vperm.xlu0 %7984, %v698_v18   ;;  %v253_v22 = vmax.f32 %v243_v13, 0.0  ;;  %v700_v18 = vld [vmem:[%s11131_s6 + $0x80] sm:$0xff]  ;;  %v2736_v44 = vld [vmem:[%s11133_s8 + $0x118] sm:$0xff] }
 0x116   :  { %v251_v17 = vmax.f32 %v235_v26, 0.0  ;;  %v703_v26 = vld [vmem:[%s11131_s6 + $0x98] sm:$0xff] }
 0x117   :  { %v8847_v20 = vpop.permute.xlu1 %1129  ;;  %7425 = vmatpush3.bf16.msra.mxu0 %v255_v47  ;;  %v257_v36 = vpack.c.bf16 %v253_v22, %v252_v1  ;;  %v797_v47 = vld [vmem:[%s11131_s6 + $0x388] sm:$0xff]  ;;  %v702_v1 = vld [vmem:[%s11131_s6 + $0x90] sm:$0xff] }
 0x118   :  { %11166 = vst [vmem:[#allocation34_spill] sm:$0xff] %v8847_v20  ;;  %v8849_v23 = vpop.permute.xlu0 %1124  ;;  %1369 = vperm.xlu1 %7985, %v795_v5   ;;  %v256_v28 = vpack.c.bf16 %v251_v17, %v250_v25  ;;  %v7993_v5 = vld [vmem:[%s11128_s3 + $0x8] sm:$0xff]   ;;  %v799_v17 = vld [vmem:[%s11131_s6 + $0x398] sm:$0xff] }
 0x119   :  { %11167 = vst [vmem:[#allocation35_spill] sm:$0xff] %v8849_v23  ;;  %1364 = vperm.xlu0 %7984, %v794_v8   ;;  %v7994_v8 = vld [vmem:[%s11128_s3 + $0x10] sm:$0xff]  }
 0x11a   :  { %7426 = vmatprep.subr.bf16.mxu0 %v256_v28 }
 0x11b   :  { %v8857_v31 = vpop.permute.xlu1 %1139  ;;  %7427 = vmatpush3.bf16.msra.mxu0 %v256_v28 }
 0x11c   :  { %11168 = vst [vmem:[#allocation36_spill] sm:$0xff] %v8857_v31  ;;  %v8859_v60 = vpop.permute.xlu0 %1134  ;;  %899 = vperm.xlu1 %7985, %v701_v21   ;;  %7428 = vmatprep.subr.bf16.mxu0 %v257_v36  ;;  %v798_v21 = vld [vmem:[%s11131_s6 + $0x390] sm:$0xff]  ;;  %v2714_v31 = vld [vmem:[%s11133_s8 + $0x68] sm:$0xff] }
 0x11d   :  { %11169 = vst [vmem:[#allocation37_spill] sm:$0xff] %v8859_v60  ;;  %894 = vperm.xlu0 %7984, %v700_v18   ;;  %v7995_v18 = vld [vmem:[%s11128_s3 + $0x18] sm:$0xff]  }
 0x11f   :  { %v8867_v13 = vpop.permute.xlu1 %1149  ;;  %7429 = vmatpush3.bf16.msra.mxu0 %v257_v36 }
 0x120   :  { %11170 = vst [vmem:[#allocation38_spill] sm:$0xff] %v8867_v13  ;;  %v8869_v63 = vpop.permute.xlu0 %1144  ;;  %1379 = vperm.xlu1 %7985, %v797_v47   ;;  %v705_v47 = vld [vmem:[%s11131_s6 + $0xa8] sm:$0xff] }
 0x121   :  { %11171 = vst [vmem:[#allocation39_spill] sm:$0xff] %v8869_v63  ;;  %1374 = vperm.xlu0 %7984, %v796_v55   ;;  %v7996_v55 = vld [vmem:[%s11128_s3 + $0x20] sm:$0xff]   ;;  %v2750_v13 = vld [vmem:[%s11133_s8 + $0x188] sm:$0xff] }
 0x122   :  { %7431 = vmatmul.mubr.msk.bf16.vlgmr.msra.gmra.mrb[8].mxu0 %vm410_vm2, %v7993_v5  ;;  %v704_v5 = vld [vmem:[%s11131_s6 + $0xa0] sm:$0xff] }
 0x123   :  { %v8883_v22 = vpop.permute.xlu1 %1159  ;;  %7434 = vmatprep.mubr.msk.bf16.mxu0 %vm410_vm2, %v7994_v8 }
 0x124   :  { %11172 = vst [vmem:[#allocation40_spill] sm:$0xff] %v8883_v22  ;;  %v8885_v25 = vpop.permute.xlu0 %1154  ;;  %909 = vperm.xlu1 %7985, %v703_v26  }
 0x125   :  { %11173 = vst [vmem:[#allocation41_spill] sm:$0xff] %v8885_v25  ;;  %904 = vperm.xlu0 %7984, %v702_v1   ;;  %v801_v1 = vld [vmem:[%s11131_s6 + $0x3a8] sm:$0xff] }
 0x127   :  { %v8895_v36 = vpop.permute.xlu1 %1169 }
 0x128   :  { %11174 = vst [vmem:[#allocation42_spill] sm:$0xff] %v8895_v36  ;;  %v8897_v28 = vpop.permute.xlu0 %1164  ;;  %1389 = vperm.xlu1 %7985, %v799_v17   ;;  %v800_v17 = vld [vmem:[%s11131_s6 + $0x3a0] sm:$0xff]  ;;  %v2728_v36 = vld [vmem:[%s11133_s8 + $0xd8] sm:$0xff] }
 0x129   :  { %11175 = vst [vmem:[#allocation43_spill] sm:$0xff] %v8897_v28  ;;  %1384 = vperm.xlu0 %7984, %v798_v21  }
 0x12a   :  { %7435 = vmatmul.mubr.msk.bf16.gmra.mrb[12].mxu0 %vm410_vm2, %v7995_v18  ;;  %v7997_v18 = vld [vmem:[%s11128_s3 + $0x28] sm:$0xff]  }
 0x12b   :  { %v8911_v26 = vpop.permute.xlu1 %1179  ;;  %7438 = vmatprep.mubr.msk.bf16.mxu0 %vm410_vm2, %v7996_v55  ;;  %v7998_v55 = vld [vmem:[%s11128_s3 + $0x30] sm:$0xff]  }
 0x12c   :  { %11176 = vst [vmem:[#allocation44_spill] sm:$0xff] %v8911_v26  ;;  %v8913_v8 = vpop.permute.xlu0 %1174  ;;  %919 = vperm.xlu1 %7985, %v705_v47   ;;  %v707_v47 = vld [vmem:[%s11131_s6 + $0xb8] sm:$0xff] }
 0x12d   :  { %11177 = vst [vmem:[#allocation45_spill] sm:$0xff] %v8913_v8  ;;  %914 = vperm.xlu0 %7984, %v704_v5   ;;  %v706_v5 = vld [vmem:[%s11131_s6 + $0xb0] sm:$0xff] }
 0x12e   :  { %v802_v8 = vld [vmem:[%s11131_s6 + $0x3b0] sm:$0xff] }
 0x12f   :  { %v8923_v21 = vpop.permute.xlu1 %1189 }
 0x130   :  { %11178 = vst [vmem:[#allocation46_spill] sm:$0xff] %v8923_v21  ;;  %v8925_v22 = vpop.permute.xlu0 %1184  ;;  %1399 = vperm.xlu1 %7985, %v801_v1  }
 0x131   :  { %11179 = vst [vmem:[#allocation47_spill] sm:$0xff] %v8925_v22  ;;  %1394 = vperm.xlu0 %7984, %v800_v17   ;;  %v803_v17 = vld [vmem:[%s11131_s6 + $0x3b8] sm:$0xff] }
 0x132   :  { %7439 = vmatmul.mubr.msk.bf16.gmra.mrb[16].mxu0 %vm410_vm2, %v7997_v18  ;;  %v7999_v18 = vld [vmem:[%s11128_s3 + $0x38] sm:$0xff]  }
 0x133   :  { %v8939_v26 = vpop.permute.xlu1 %1199  ;;  %7442 = vmatprep.mubr.msk.bf16.mxu0 %vm410_vm2, %v7998_v55  ;;  %v708_v55 = vld [vmem:[%s11131_s6 + $0xc0] sm:$0xff] }
 0x134   :  { %11180 = vst [vmem:[#allocation48_spill] sm:$0xff] %v8939_v26  ;;  %v8941_v1 = vpop.permute.xlu0 %1194  ;;  %929 = vperm.xlu1 %7985, %v707_v47   ;;  %v709_v47 = vld [vmem:[%s11131_s6 + $0xc8] sm:$0xff] }
 0x135   :  { %11181 = vst [vmem:[#allocation49_spill] sm:$0xff] %v8941_v1  ;;  %924 = vperm.xlu0 %7984, %v706_v5  }
 0x137   :  { %v8951_v21 = vpop.permute.xlu1 %1209 }
 0x138   :  { %11182 = vst [vmem:[#allocation50_spill] sm:$0xff] %v8951_v21  ;;  %v8953_v22 = vpop.permute.xlu0 %1204  ;;  %1409 = vperm.xlu1 %7985, %v803_v17   ;;  %v804_v17 = vld [vmem:[%s11131_s6 + $0x3c0] sm:$0xff] }
 0x139   :  { %11183 = vst [vmem:[#allocation51_spill] sm:$0xff] %v8953_v22  ;;  %1404 = vperm.xlu0 %7984, %v802_v8   ;;  %v805_v8 = vld [vmem:[%s11131_s6 + $0x3c8] sm:$0xff]  ;;  %v2708_v22 = vld [vmem:[%s11133_s8 + $0x38] sm:$0xff] }
 0x13a   :  { %7443 = vmatmul.mubr.msk.bf16.gmra.mrb[20].mxu0 %vm410_vm2, %v7999_v18  ;;  %v711_v18 = vld [vmem:[%s11131_s6 + $0xd8] sm:$0xff] }
 0x13b   :  { %v8964_v5 = vpop.permute.xlu1 %1219 }
 0x13c   :  { %11184 = vst [vmem:[#allocation52_spill] sm:$0xff] %v8964_v5  ;;  %v8966_v26 = vpop.permute.xlu0 %1214  ;;  %939 = vperm.xlu1 %7985, %v709_v47   ;;  %v710_v47 = vld [vmem:[%s11131_s6 + $0xd0] sm:$0xff] }
 0x13d   :  { %11185 = vst [vmem:[#allocation53_spill] sm:$0xff] %v8966_v26  ;;  %934 = vperm.xlu0 %7984, %v708_v55   ;;  %v807_v26 = vld [vmem:[%s11131_s6 + $0x3d8] sm:$0xff] }
 0x13f   :  { %v8975_v1 = vpop.permute.xlu1 %1229 }
 0x140   :  { %11186 = vst [vmem:[#allocation54_spill] sm:$0xff] %v8975_v1  ;;  %v8977_v21 = vpop.permute.xlu0 %1224  ;;  %1419 = vperm.xlu1 %7985, %v805_v8   ;;  %v806_v8 = vld [vmem:[%s11131_s6 + $0x3d0] sm:$0xff] }
 0x141   :  { %11187 = vst [vmem:[#allocation55_spill] sm:$0xff] %v8977_v21  ;;  %1414 = vperm.xlu0 %7984, %v804_v17  }
 0x143   :  { %v8985_v55 = vpop.permute.xlu1 %1239 }
 0x144   :  { %11188 = vst [vmem:[#allocation56_spill] sm:$0xff] %v8985_v55  ;;  %v8987_v5 = vpop.permute.xlu0 %1234  ;;  %949 = vperm.xlu1 %7985, %v711_v18   ;;  %v713_v55 = vld [vmem:[%s11131_s6 + $0xe8] sm:$0xff]  ;;  %v712_v18 = vld [vmem:[%s11131_s6 + $0xe0] sm:$0xff] }
 0x145   :  { %11189 = vst [vmem:[#allocation57_spill] sm:$0xff] %v8987_v5  ;;  %944 = vperm.xlu0 %7984, %v710_v47  }
 0x147   :  { %v8995_v17 = vpop.permute.xlu1 %1249 }
 0x148   :  { %11190 = vst [vmem:[#allocation58_spill] sm:$0xff] %v8995_v17  ;;  %v8997_v1 = vpop.permute.xlu0 %1244  ;;  %1429 = vperm.xlu1 %7985, %v807_v26   ;;  %v809_v17 = vld [vmem:[%s11131_s6 + $0x3e8] sm:$0xff]  ;;  %v808_v26 = vld [vmem:[%s11131_s6 + $0x3e0] sm:$0xff] }
 0x149   :  { %11191 = vst [vmem:[#allocation59_spill] sm:$0xff] %v8997_v1  ;;  %1424 = vperm.xlu0 %7984, %v806_v8  }
 0x14b   :  { %v9007_v5 = vpop.permute.xlu1 %1259 }
 0x14c   :  { %v9005_v47 = vpop.permute.xlu0 %1254  ;;  %11193 = vst [vmem:[#allocation61_spill] sm:$0xff] %v9007_v5  ;;  %959 = vperm.xlu1 %7985, %v713_v55   ;;  %v714_v55 = vld [vmem:[%s11131_s6 + $0xf0] sm:$0xff] }
 0x14d   :  { %11192 = vst [vmem:[#allocation60_spill] sm:$0xff] %v9005_v47  ;;  %954 = vperm.xlu0 %7984, %v712_v18   ;;  %v715_v47 = vld [vmem:[%s11131_s6 + $0xf8] sm:$0xff] }
 0x14e   :  { %v811_v18 = vld [vmem:[%s11131_s6 + $0x3f8] sm:$0xff] }
 0x14f   :  { %v9020_v1 = vpop.permute.xlu1 %1269 }
 0x150   :  { %1439 = vperm.xlu1 %7985, %v809_v17   ;;  %v9015_v8 = vpop.permute.xlu0 %1264  ;;  %11195 = vst [vmem:[#allocation63_spill] sm:$0xff] %v9020_v1  ;;  %v810_v17 = vld [vmem:[%s11131_s6 + $0x3f0] sm:$0xff]  ;;  %v2718_v1 = vld [vmem:[%s11133_s8 + $0x88] sm:$0xff] }
 0x151   :  { %11194 = vst [vmem:[#allocation62_spill] sm:$0xff] %v9015_v8  ;;  %1434 = vperm.xlu0 %7984, %v808_v26  }
 0x153   :  { %v9033_v5 = vpop.permute.xlu1 %1279 }
 0x154   :  { %969 = vperm.xlu1 %7985, %v715_v47   ;;  %v9031_v26 = vpop.permute.xlu0 %1274  ;;  %11197 = vst [vmem:[#allocation65_spill] sm:$0xff] %v9033_v5  ;;  %v2717_v47 = vld [vmem:[%s11133_s8 + $0x80] sm:$0xff] }
 0x155   :  { %964 = vperm.xlu0 %7984, %v714_v55   ;;  %11196 = vst [vmem:[#allocation64_spill] sm:$0xff] %v9031_v26  ;;  %v2702_v26 = vld [vmem:[%s11133_s8 + $0x8] sm:$0xff] }
 0x157   :  { %v9046_v8 = vpop.permute.xlu1 %1289 }
 0x158   :  { %1449 = vperm.xlu1 %7985, %v811_v18   ;;  %v9041_v55 = vpop.permute.xlu0 %1284  ;;  %11199 = vst [vmem:[#allocation67_spill] sm:$0xff] %v9046_v8  ;;  %v2701_v18 = vld [vmem:[%s11133_s8] sm:$0xff]  ;;  %v2704_v8 = vld [vmem:[%s11133_s8 + $0x18] sm:$0xff] }
 0x159   :  { %1444 = vperm.xlu0 %7984, %v810_v17   ;;  %11198 = vst [vmem:[#allocation66_spill] sm:$0xff] %v9041_v55  ;;  %v2720_v17 = vld [vmem:[%s11133_s8 + $0x98] sm:$0xff]  ;;  %v2722_v55 = vld [vmem:[%s11133_s8 + $0xa8] sm:$0xff] }
 0x15b   :  { %v9059_v5 = vpop.permute.xlu1 %819 }
 0x15c   :  { %2852 = vperm.xlu1 %7985, %v2718_v1   ;;  %v2719_v1 = vld [vmem:[%s11133_s8 + $0x90] sm:$0xff] }
 0x15d   :  { %2847 = vperm.xlu0 %7984, %v2717_v47   ;;  %v9057_v47 = vpop.permute.xlu0 %814 }
 0x15f   :  { %v9072_v21 = vpop.permute.xlu1 %1299 }
 0x160   :  { %2772 = vperm.xlu1 %7985, %v2702_v26   ;;  %v2703_v26 = vld [vmem:[%s11133_s8 + $0x10] sm:$0xff]  ;;  %11201 = vst [vmem:[#allocation69_spill] sm:$0xff] %v9072_v21  ;;  %v2724_v21 = vld [vmem:[%s11133_s8 + $0xb8] sm:$0xff] }
 0x161   :  { %2767 = vperm.xlu0 %7984, %v2701_v18   ;;  %v9067_v18 = vpop.permute.xlu0 %1294 }
 0x162   :  { %11200 = vst [vmem:[#allocation68_spill] sm:$0xff] %v9067_v18 }
 0x163   :  { %v9085_v18 = vpop.permute.xlu1 %829 }
 0x164   :  { %2862 = vperm.xlu1 %7985, %v2720_v17   ;;  %v2721_v17 = vld [vmem:[%s11133_s8 + $0xa0] sm:$0xff] }
 0x165   :  { %2857 = vperm.xlu0 %7984, %v2719_v1   ;;  %v2706_v1 = vld [vmem:[%s11133_s8 + $0x28] sm:$0xff] }
 0x167   :  { %v9098_v25 = vpop.permute.xlu1 %1309 }
 0x168   :  { %2782 = vperm.xlu1 %7985, %v2704_v8   ;;  %v2705_v8 = vld [vmem:[%s11133_s8 + $0x20] sm:$0xff]  ;;  %11203 = vst [vmem:[#allocation71_spill] sm:$0xff] %v9098_v25  ;;  %v2710_v25 = vld [vmem:[%s11133_s8 + $0x48] sm:$0xff] }
 0x169   :  { %2777 = vperm.xlu0 %7984, %v2703_v26   ;;  %v9083_v26 = vpop.permute.xlu0 %824 }
 0x16c   :  { %2872 = vperm.xlu1 %7985, %v2722_v55   ;;  %v2723_v55 = vld [vmem:[%s11133_s8 + $0xb0] sm:$0xff] }
 0x16d   :  { %2867 = vperm.xlu0 %7984, %v2721_v17   ;;  %v9093_v17 = vpop.permute.xlu0 %1304 }
 0x16e   :  { %11202 = vst [vmem:[#allocation70_spill] sm:$0xff] %v9093_v17  ;;  %v9111_v17 = vpop.permute.xlu1 %839 }
 0x170   :  { %2792 = vperm.xlu1 %7985, %v2706_v1   ;;  %v2707_v1 = vld [vmem:[%s11133_s8 + $0x30] sm:$0xff] }
 0x171   :  { %2787 = vperm.xlu0 %7984, %v2705_v8   ;;  %v2726_v8 = vld [vmem:[%s11133_s8 + $0xc8] sm:$0xff] }
 0x172   :  { %v9124_v28 = vpop.permute.xlu1 %1319 }
 0x173   :  { %11205 = vst [vmem:[#allocation73_spill] sm:$0xff] %v9124_v28  ;;  %v2730_v28 = vld [vmem:[%s11133_s8 + $0xe8] sm:$0xff] }
 0x174   :  { %2882 = vperm.xlu1 %7985, %v2724_v21   ;;  %v2725_v21 = vld [vmem:[%s11133_s8 + $0xc0] sm:$0xff] }
 0x175   :  { %2877 = vperm.xlu0 %7984, %v2723_v55   ;;  %v9109_v55 = vpop.permute.xlu0 %834 }
 0x178   :  { %2802 = vperm.xlu1 %7985, %v2708_v22   ;;  %v2709_v22 = vld [vmem:[%s11133_s8 + $0x40] sm:$0xff] }
 0x179   :  { %2797 = vperm.xlu0 %7984, %v2707_v1   ;;  %v9119_v1 = vpop.permute.xlu0 %1314 }
 0x17a   :  { %11204 = vst [vmem:[#allocation72_spill] sm:$0xff] %v9119_v1  ;;  %v9137_v1 = vpop.permute.xlu1 %849 }
 0x17c   :  { %2892 = vperm.xlu1 %7985, %v2726_v8   ;;  %v2727_v8 = vld [vmem:[%s11133_s8 + $0xd0] sm:$0xff] }
 0x17d   :  { %2887 = vperm.xlu0 %7984, %v2725_v21   ;;  %v2712_v21 = vld [vmem:[%s11133_s8 + $0x58] sm:$0xff] }
 0x17e   :  { %v9150_v60 = vpop.permute.xlu1 %1329 }
 0x17f   :  { %11207 = vst [vmem:[#allocation75_spill] sm:$0xff] %v9150_v60  ;;  %v2716_v60 = vld [vmem:[%s11133_s8 + $0x78] sm:$0xff] }
 0x180   :  { %2812 = vperm.xlu1 %7985, %v2710_v25   ;;  %v2711_v25 = vld [vmem:[%s11133_s8 + $0x50] sm:$0xff] }
 0x181   :  { %2807 = vperm.xlu0 %7984, %v2709_v22   ;;  %v9135_v22 = vpop.permute.xlu0 %844 }
 0x184   :  { %2902 = vperm.xlu1 %7985, %v2728_v36   ;;  %v2729_v36 = vld [vmem:[%s11133_s8 + $0xe0] sm:$0xff] }
 0x185   :  { %2897 = vperm.xlu0 %7984, %v2727_v8   ;;  %v9145_v8 = vpop.permute.xlu0 %1324 }
 0x186   :  { %11206 = vst [vmem:[#allocation74_spill] sm:$0xff] %v9145_v8  ;;  %v9163_v8 = vpop.permute.xlu1 %859 }
 0x188   :  { %2822 = vperm.xlu1 %7985, %v2712_v21   ;;  %v2713_v21 = vld [vmem:[%s11133_s8 + $0x60] sm:$0xff] }
 0x189   :  { %2817 = vperm.xlu0 %7984, %v2711_v25   ;;  %v2732_v25 = vld [vmem:[%s11133_s8 + $0xf8] sm:$0xff] }
 0x18a   :  { %v9176_v63 = vpop.permute.xlu1 %1339 }
 0x18b   :  { %11209 = vst [vmem:[#allocation77_spill] sm:$0xff] %v9176_v63 }
 0x18c   :  { %2912 = vperm.xlu1 %7985, %v2730_v28   ;;  %v2731_v28 = vld [vmem:[%s11133_s8 + $0xf0] sm:$0xff] }
 0x18d   :  { %2907 = vperm.xlu0 %7984, %v2729_v36   ;;  %v9161_v36 = vpop.permute.xlu0 %854 }
 0x18e   :  { %v9189_v52 = vpop.permute.xlu1 %869 }
 0x190   :  { %2832 = vperm.xlu1 %7985, %v2714_v31   ;;  %v2715_v31 = vld [vmem:[%s11133_s8 + $0x70] sm:$0xff] }
 0x191   :  { %2827 = vperm.xlu0 %7984, %v2713_v21   ;;  %v9171_v21 = vpop.permute.xlu0 %1334 }
 0x192   :  { %11208 = vst [vmem:[#allocation76_spill] sm:$0xff] %v9171_v21  ;;  %v9202_v20 = vpop.permute.xlu1 %1349 }
 0x193   :  { %11211 = vst [vmem:[#allocation79_spill] sm:$0xff] %v9202_v20  ;;  %v2738_v20 = vld [vmem:[%s11133_s8 + $0x128] sm:$0xff] }
 0x194   :  { %2922 = vperm.xlu1 %7985, %v2732_v25   ;;  %v2749_v25 = vld [vmem:[%s11133_s8 + $0x180] sm:$0xff] }
 0x195   :  { %2917 = vperm.xlu0 %7984, %v2731_v28   ;;  %v2734_v28 = vld [vmem:[%s11133_s8 + $0x108] sm:$0xff]  ;;  %v9187_v21 = vpop.permute.xlu0 %864 }
 0x198   :  { %2842 = vperm.xlu1 %7985, %v2716_v60   ;;  %v2733_v60 = vld [vmem:[%s11133_s8 + $0x100] sm:$0xff] }
 0x199   :  { %2837 = vperm.xlu0 %7984, %v2715_v31   ;;  %v8000_v31 = vld [vmem:[#allocation3] sm:$0xff]   ;;  %v9197_v63 = vpop.permute.xlu0 %1344 }
 0x19a   :  { %7462 = vmatprep.mubr.bf16.mxu0 %v8000_v31  ;;  %11210 = vst [vmem:[#allocation78_spill] sm:$0xff] %v9197_v63  ;;  %v2753_v31 = vld [vmem:[%s11133_s8 + $0x1a0] sm:$0xff]  ;;  %v2756_v63 = vld [vmem:[%s11133_s8 + $0x1b8] sm:$0xff] }
 0x19c   :  { %3012 = vperm.xlu1 %7985, %v2750_v13   ;;  %v2752_v13 = vld [vmem:[%s11133_s8 + $0x198] sm:$0xff] }
 0x19d   :  { %3007 = vperm.xlu0 %7984, %v2749_v25   ;;  %v2751_v25 = vld [vmem:[%s11133_s8 + $0x190] sm:$0xff] }
 0x1a0   :  { %2932 = vperm.xlu1 %7985, %v2734_v28   ;;  %v2735_v28 = vld [vmem:[%s11133_s8 + $0x110] sm:$0xff] }
 0x1a1   :  { %2927 = vperm.xlu0 %7984, %v2733_v60   ;;  %v2754_v60 = vld [vmem:[%s11133_s8 + $0x1a8] sm:$0xff] }
 0x1a4   :  { %3022 = vperm.xlu1 %7985, %v2752_v13   ;;  %v9213_v13 = vpop.permute.xlu0 %874 }
 0x1a5   :  { %3017 = vperm.xlu0 %7984, %v2751_v25   ;;  %v9215_v25 = vpop.permute.xlu1 %879 }
 0x1a8   :  { %2942 = vperm.xlu1 %7985, %v2736_v44   ;;  %v2737_v44 = vld [vmem:[%s11133_s8 + $0x120] sm:$0xff] }
 0x1a9   :  { %2937 = vperm.xlu0 %7984, %v2735_v28   ;;  %v9223_v28 = vpop.permute.xlu0 %1354  ;;  %v9228_v23 = vpop.permute.xlu1 %1359 }
 0x1aa   :  { %11212 = vst [vmem:[#allocation80_spill] sm:$0xff] %v9223_v28  ;;  %11213 = vst [vmem:[#allocation81_spill] sm:$0xff] %v9228_v23  ;;  %v2758_v23 = vld [vmem:[%s11133_s8 + $0x1c8] sm:$0xff] }
 0x1ac   :  { %3032 = vperm.xlu1 %7985, %v2754_v60   ;;  %v2755_v60 = vld [vmem:[%s11133_s8 + $0x1b0] sm:$0xff] }
 0x1ad   :  { %3027 = vperm.xlu0 %7984, %v2753_v31   ;;  %v2740_v31 = vld [vmem:[%s11133_s8 + $0x138] sm:$0xff]  ;;  %v9241_v28 = vpop.permute.xlu1 %889 }
 0x1b0   :  { %2952 = vperm.xlu1 %7985, %v2738_v20   ;;  %v2739_v20 = vld [vmem:[%s11133_s8 + $0x130] sm:$0xff] }
 0x1b1   :  { %2947 = vperm.xlu0 %7984, %v2737_v44   ;;  %v9239_v44 = vpop.permute.xlu0 %884  ;;  %v9254_v15 = vpop.permute.xlu1 %1369 }
 0x1b2   :  { %11215 = vst [vmem:[#allocation83_spill] sm:$0xff] %v9254_v15  ;;  %v2744_v15 = vld [vmem:[%s11133_s8 + $0x158] sm:$0xff] }
 0x1b4   :  { %3042 = vperm.xlu1 %7985, %v2756_v63   ;;  %v2757_v63 = vld [vmem:[%s11133_s8 + $0x1c0] sm:$0xff] }
 0x1b5   :  { %3037 = vperm.xlu0 %7984, %v2755_v60   ;;  %v9249_v60 = vpop.permute.xlu0 %1364 }
 0x1b6   :  { %11214 = vst [vmem:[#allocation82_spill] sm:$0xff] %v9249_v60  ;;  %v9267_v60 = vpop.permute.xlu1 %899 }
 0x1b8   :  { %2962 = vperm.xlu1 %7985, %v2740_v31   ;;  %v2741_v31 = vld [vmem:[%s11133_s8 + $0x140] sm:$0xff] }
 0x1b9   :  { %2957 = vperm.xlu0 %7984, %v2739_v20   ;;  %v2760_v20 = vld [vmem:[%s11133_s8 + $0x1d8] sm:$0xff] }
 0x1ba   :  { %v9280_v0 = vpop.permute.xlu1 %1379 }
 0x1bb   :  { %11217 = vst [vmem:[#allocation85_spill] sm:$0xff] %v9280_v0  ;;  %v2764_v0 = vld [vmem:[%s11133_s8 + $0x1f8] sm:$0xff] }
 0x1bc   :  { %3052 = vperm.xlu1 %7985, %v2758_v23   ;;  %v2759_v23 = vld [vmem:[%s11133_s8 + $0x1d0] sm:$0xff] }
 0x1bd   :  { %3047 = vperm.xlu0 %7984, %v2757_v63   ;;  %v9265_v63 = vpop.permute.xlu0 %894 }
 0x1c0   :  { %2972 = vperm.xlu1 %7985, %v2742_v39   ;;  %v2743_v39 = vld [vmem:[%s11133_s8 + $0x150] sm:$0xff] }
 0x1c1   :  { %2967 = vperm.xlu0 %7984, %v2741_v31   ;;  %v9275_v31 = vpop.permute.xlu0 %1374 }
 0x1c2   :  { %11216 = vst [vmem:[#allocation84_spill] sm:$0xff] %v9275_v31  ;;  %v9293_v31 = vpop.permute.xlu1 %909 }
 0x1c4   :  { %3062 = vperm.xlu1 %7985, %v2760_v20   ;;  %v2761_v20 = vld [vmem:[%s11133_s8 + $0x1e0] sm:$0xff] }
 0x1c5   :  { %3057 = vperm.xlu0 %7984, %v2759_v23   ;;  %v2746_v23 = vld [vmem:[%s11133_s8 + $0x168] sm:$0xff] }
 0x1c6   :  { %v9306_v9 = vpop.permute.xlu1 %1389 }
 0x1c7   :  { %11219 = vst [vmem:[#allocation87_spill] sm:$0xff] %v9306_v9  ;;  %v5682_v9 = vld [vmem:[%s11135_s10 + $0x8] sm:$0xff] }
 0x1c8   :  { %2982 = vperm.xlu1 %7985, %v2744_v15   ;;  %v2745_v15 = vld [vmem:[%s11133_s8 + $0x160] sm:$0xff] }
 0x1c9   :  { %2977 = vperm.xlu0 %7984, %v2743_v39   ;;  %v9291_v39 = vpop.permute.xlu0 %904 }
 0x1cc   :  { %3072 = vperm.xlu1 %7985, %v2762_v14   ;;  %v2763_v14 = vld [vmem:[%s11133_s8 + $0x1f0] sm:$0xff] }
 0x1cd   :  { %3067 = vperm.xlu0 %7984, %v2761_v20   ;;  %v9301_v20 = vpop.permute.xlu0 %1384 }
 0x1ce   :  { %11218 = vst [vmem:[#allocation86_spill] sm:$0xff] %v9301_v20  ;;  %v9319_v20 = vpop.permute.xlu1 %919 }
 0x1d0   :  { %2992 = vperm.xlu1 %7985, %v2746_v23   ;;  %v2747_v23 = vld [vmem:[%s11133_s8 + $0x170] sm:$0xff] }
 0x1d1   :  { %2987 = vperm.xlu0 %7984, %v2745_v15   ;;  %v5698_v15 = vld [vmem:[%s11135_s10 + $0x88] sm:$0xff] }
 0x1d2   :  { %v9332_v48 = vpop.permute.xlu1 %1399 }
 0x1d3   :  { %11221 = vst [vmem:[#allocation89_spill] sm:$0xff] %v9332_v48  ;;  %v5702_v48 = vld [vmem:[%s11135_s10 + $0xa8] sm:$0xff] }
 0x1d4   :  { %3082 = vperm.xlu1 %7985, %v2764_v0   ;;  %v5697_v0 = vld [vmem:[%s11135_s10 + $0x80] sm:$0xff] }
 0x1d5   :  { %3077 = vperm.xlu0 %7984, %v2763_v14   ;;  %v9317_v14 = vpop.permute.xlu0 %914 }
 0x1d8   :  { %3002 = vperm.xlu1 %7985, %v2748_v4   ;;  %v5681_v4 = vld [vmem:[%s11135_s10] sm:$0xff] }
 0x1d9   :  { %2997 = vperm.xlu0 %7984, %v2747_v23   ;;  %v9327_v23 = vpop.permute.xlu0 %1394 }
 0x1da   :  { %11220 = vst [vmem:[#allocation88_spill] sm:$0xff] %v9327_v23  ;;  %v9345_v23 = vpop.permute.xlu1 %929 }
 0x1dc   :  { %5800 = vperm.xlu1 %7985, %v5698_v15   ;;  %v5699_v15 = vld [vmem:[%s11135_s10 + $0x90] sm:$0xff] }
 0x1dd   :  { %5795 = vperm.xlu0 %7984, %v5697_v0   ;;  %v5684_v0 = vld [vmem:[%s11135_s10 + $0x18] sm:$0xff] }
 0x1de   :  { %v9358_v56 = vpop.permute.xlu1 %1409 }
 0x1df   :  { %11223 = vst [vmem:[#allocation91_spill] sm:$0xff] %v9358_v56  ;;  %v5688_v56 = vld [vmem:[%s11135_s10 + $0x38] sm:$0xff] }
 0x1e0   :  { %5720 = vperm.xlu1 %7985, %v5682_v9   ;;  %v5683_v9 = vld [vmem:[%s11135_s10 + $0x10] sm:$0xff] }
 0x1e1   :  { %5715 = vperm.xlu0 %7984, %v5681_v4   ;;  %v9343_v4 = vpop.permute.xlu0 %924 }
 0x1e4   :  { %5810 = vperm.xlu1 %7985, %v5700_v12   ;;  %v5701_v12 = vld [vmem:[%s11135_s10 + $0xa0] sm:$0xff] }
 0x1e5   :  { %5805 = vperm.xlu0 %7984, %v5699_v15   ;;  %v9353_v15 = vpop.permute.xlu0 %1404 }
 0x1e6   :  { %11222 = vst [vmem:[#allocation90_spill] sm:$0xff] %v9353_v15  ;;  %v9371_v15 = vpop.permute.xlu1 %939 }
 0x1e8   :  { %5730 = vperm.xlu1 %7985, %v5684_v0   ;;  %v5685_v0 = vld [vmem:[%s11135_s10 + $0x20] sm:$0xff] }
 0x1e9   :  { %5725 = vperm.xlu0 %7984, %v5683_v9   ;;  %v5704_v9 = vld [vmem:[%s11135_s10 + $0xb8] sm:$0xff] }
 0x1ea   :  { %v9386_v43 = vpop.permute.xlu1 %1419 }
 0x1eb   :  { %11225 = vst [vmem:[#allocation93_spill] sm:$0xff] %v9386_v43 }
 0x1ec   :  { %5820 = vperm.xlu1 %7985, %v5702_v48   ;;  %v5703_v48 = vld [vmem:[%s11135_s10 + $0xb0] sm:$0xff] }
 0x1ed   :  { %5815 = vperm.xlu0 %7984, %v5701_v12   ;;  %v9369_v12 = vpop.permute.xlu0 %934 }
 0x1f0   :  { %5740 = vperm.xlu1 %7985, %v5686_v51   ;;  %v5687_v51 = vld [vmem:[%s11135_s10 + $0x30] sm:$0xff] }
 0x1f1   :  { %5735 = vperm.xlu0 %7984, %v5685_v0   ;;  %v9380_v35 = vpop.permute.xlu0 %1414 }
 0x1f2   :  { %11224 = vst [vmem:[#allocation92_spill] sm:$0xff] %v9380_v35 }
 0x1f4   :  { %5830 = vperm.xlu1 %7985, %v5704_v9  }
 0x1f5   :  { %5825 = vperm.xlu0 %7984, %v5703_v48   ;;  %v7432_v0 = vpop.f32.mrb[8].mxu0  ;;  %v5706_v48 = vld [vmem:[%s11135_s10 + $0xc8] sm:$0xff]  ;;  %v9399_v43 = vpop.permute.xlu0 %944 }
 0x1f6   :  { %v478_v59 = vadd.f32 %v7432_v0, %v8621_v34  ;;  %v469_v32 = vpop.f32.mrb[9].mxu0  ;;  %v5705_v34 = vld [vmem:[%s11135_s10 + $0xc0] sm:$0xff] }
 0x1f7   :  { %v470_v40 = vadd.f32 %v469_v32, %v8611_v30  ;;  %v7433_v9 = vpop.f32.mrb[10].mxu0 }
 0x1f8   :  { %5750 = vperm.xlu1 %7985, %v5688_v56   ;;  %v481_v16 = vadd.f32 %v7433_v9, %v8619_v33  ;;  %v472_v19 = vpop.f32.mrb[11].mxu0  ;;  %v534_v0 = vmax.f32 %v478_v59, 0.0  ;;  %v5689_v33 = vld [vmem:[%s11135_s10 + $0x40] sm:$0xff] }
 0x1f9   :  { %5745 = vperm.xlu0 %7984, %v5687_v51   ;;  %v473_v56 = vadd.f32 %v472_v19, %v8609_v29  ;;  %v532_v30 = vmax.f32 %v470_v40, 0.0  ;;  %v5690_v51 = vld [vmem:[%s11135_s10 + $0x48] sm:$0xff]  ;;  %v9401_v29 = vpop.permute.xlu1 %949 }
 0x1fa   :  { %v535_v35 = vmax.f32 %v481_v16, 0.0 }
 0x1fb   :  { %v533_v32 = vmax.f32 %v473_v56, 0.0  ;;  %v5707_v56 = vld [vmem:[%s11135_s10 + $0xd0] sm:$0xff] }
 0x1fc   :  { %5840 = vperm.xlu1 %7985, %v5706_v48   ;;  %v549_v9 = vpack.c.bf16 %v535_v35, %v534_v0  ;;  %v5708_v48 = vld [vmem:[%s11135_s10 + $0xd8] sm:$0xff]  ;;  %v9413_v0 = vpop.permute.xlu0 %1424 }
 0x1fd   :  { %5835 = vperm.xlu0 %7984, %v5705_v34   ;;  %v7436_v24 = vpop.f32.mrb[12].mxu0  ;;  %v548_v27 = vpack.c.bf16 %v533_v32, %v532_v30 }
 0x1fe   :  { %v494_v16 = vadd.f32 %v7436_v24, %v8641_v42  ;;  %v485_v19 = vpop.f32.mrb[13].mxu0 }
 0x1ff   :  { %v486_v40 = vadd.f32 %v485_v19, %v8631_v38  ;;  %v7437_v59 = vpop.f32.mrb[14].mxu0  ;;  %7446 = vmatprep.subr.bf16.mxu0 %v548_v27 }
 0x200   :  { %5760 = vperm.xlu1 %7985, %v5690_v51   ;;  %v497_v35 = vadd.f32 %v7437_v59, %v8639_v41  ;;  %v488_v34 = vpop.f32.mrb[15].mxu0  ;;  %7447 = vmatpush3.bf16.msra.mxu0 %v548_v27  ;;  %v538_v24 = vmax.f32 %v494_v16, 0.0  ;;  %v5692_v41 = vld [vmem:[%s11135_s10 + $0x58] sm:$0xff]  ;;  %v9418_v27 = vpop.permute.xlu1 %1429 }
 0x201   :  { %5755 = vperm.xlu0 %7984, %v5689_v33   ;;  %v489_v42 = vadd.f32 %v488_v34, %v8629_v37  ;;  %7448 = vmatprep.subr.bf16.mxu0 %v549_v9  ;;  %v536_v30 = vmax.f32 %v486_v40, 0.0  ;;  %v5691_v37 = vld [vmem:[%s11135_s10 + $0x50] sm:$0xff] }
 0x202   :  { %v539_v38 = vmax.f32 %v497_v35, 0.0 }
 0x203   :  { %v537_v32 = vmax.f32 %v489_v42, 0.0 }
 0x204   :  { %5850 = vperm.xlu1 %7985, %v5708_v48   ;;  %7449 = vmatpush3.bf16.msra.mxu0 %v549_v9  ;;  %v551_v51 = vpack.c.bf16 %v539_v38, %v538_v24  ;;  %v5710_v9 = vld [vmem:[%s11135_s10 + $0xe8] sm:$0xff] }
 0x205   :  { %5845 = vperm.xlu0 %7984, %v5707_v56   ;;  %v7440_v33 = vpop.f32.mrb[16].mxu0  ;;  %v550_v16 = vpack.c.bf16 %v537_v32, %v536_v30  ;;  %v5709_v56 = vld [vmem:[%s11135_s10 + $0xe0] sm:$0xff] }
 0x206   :  { %v510_v19 = vadd.f32 %v7440_v33, %v8661_v50  ;;  %v501_v59 = vpop.f32.mrb[17].mxu0  ;;  %v9432_v50 = vpop.permute.xlu0 %954 }
 0x207   :  { %v502_v40 = vadd.f32 %v501_v59, %v8651_v46  ;;  %v7441_v48 = vpop.f32.mrb[18].mxu0  ;;  %7450 = vmatprep.subr.bf16.mxu0 %v550_v16  ;;  %v9435_v46 = vpop.permute.xlu1 %959 }
 0x208   :  { %5770 = vperm.xlu1 %7985, %v5692_v41   ;;  %v513_v35 = vadd.f32 %v7441_v48, %v8659_v49  ;;  %v504_v34 = vpop.f32.mrb[19].mxu0  ;;  %7451 = vmatpush3.bf16.msra.mxu0 %v550_v16  ;;  %v542_v24 = vmax.f32 %v510_v19, 0.0  ;;  %v5694_v49 = vld [vmem:[%s11135_s10 + $0x68] sm:$0xff]  ;;  %v5693_v41 = vld [vmem:[%s11135_s10 + $0x60] sm:$0xff] }
 0x209   :  { %5765 = vperm.xlu0 %7984, %v5691_v37   ;;  %v505_v42 = vadd.f32 %v504_v34, %v8649_v45  ;;  %7452 = vmatprep.subr.bf16.mxu0 %v551_v51  ;;  %v540_v30 = vmax.f32 %v502_v40, 0.0 }
 0x20a   :  { %v543_v38 = vmax.f32 %v513_v35, 0.0  ;;  %v9444_v59 = vpop.permute.xlu0 %1434 }
 0x20b   :  { %v541_v32 = vmax.f32 %v505_v42, 0.0 }
 0x20c   :  { %5860 = vperm.xlu1 %7985, %v5710_v9   ;;  %7453 = vmatpush3.bf16.msra.mxu0 %v551_v51  ;;  %v553_v37 = vpack.c.bf16 %v543_v38, %v542_v24  ;;  %v5712_v51 = vld [vmem:[%s11135_s10 + $0xf8] sm:$0xff]  ;;  %v9450_v9 = vpop.permute.xlu1 %1439 }
 0x20d   :  { %5855 = vperm.xlu0 %7984, %v5709_v56   ;;  %v7444_v45 = vpop.f32.mrb[20].mxu0  ;;  %v552_v33 = vpack.c.bf16 %v541_v32, %v540_v30  ;;  %v5696_v30 = vld [vmem:[%s11135_s10 + $0x78] sm:$0xff] }
 0x20e   :  { %v526_v16 = vadd.f32 %v7444_v45, %v8681_v58  ;;  %v517_v19 = vpop.f32.mrb[21].mxu0  ;;  %v5711_v58 = vld [vmem:[%s11135_s10 + $0xf0] sm:$0xff]  ;;  %v6564_v45 = vld [vmem:[#allocation2] sm:$0x1] }
 0x20f   :  { %v518_v40 = vadd.f32 %v517_v19, %v8671_v54  ;;  %v7445_v48 = vpop.f32.mrb[22].mxu0  ;;  %7454 = vmatprep.subr.bf16.mxu0 %v552_v33  ;;  %v11226_v19 = vmov 0  }
 0x210   :  { %5780 = vperm.xlu1 %7985, %v5694_v49   ;;  %v529_v35 = vadd.f32 %v7445_v48, %v8679_v57  ;;  %v520_v34 = vpop.f32.mrb[23].mxu0  ;;  %7455 = vmatpush3.bf16.msra.mxu0 %v552_v33  ;;  %v546_v54 = vmax.f32 %v526_v16, 0.0  ;;  %v5695_v57 = vld [vmem:[%s11135_s10 + $0x70] sm:$0xff]  ;;  %v9463_v49 = vpop.permute.xlu0 %964  ;;  %v8004_v48 = vld [vmem:[#allocation3 + $0x20] sm:$0xff]  }
 0x211   :  { %5775 = vperm.xlu0 %7984, %v5693_v41   ;;  %v521_v56 = vadd.f32 %v520_v34, %v8669_v53  ;;  %7456 = vmatprep.subr.bf16.mxu0 %v553_v37  ;;  %v544_v24 = vmax.f32 %v518_v40, 0.0  ;;  %v9465_v41 = vpop.permute.xlu1 %969  ;;  %v8002_v16 = vld [vmem:[#allocation3 + $0x10] sm:$0xff]   ;;  %v8003_v40 = vld [vmem:[#allocation3 + $0x18] sm:$0xff]  }
 0x212   :  { %v547_v42 = vmax.f32 %v529_v35, 0.0  ;;  %v8006_v35 = vld [vmem:[#allocation3 + $0x30] sm:$0xff]   ;;  %v8007_v34 = vld [vmem:[#allocation3 + $0x38] sm:$0xff]  }
 0x213   :  { %v545_v38 = vmax.f32 %v521_v56, 0.0  ;;  %v8009_v56 = vld [vmem:[#allocation3 + $0x48] sm:$0xff]  }
 0x214   :  { %5870 = vperm.xlu1 %7985, %v5712_v51   ;;  %7457 = vmatpush3.bf16.msra.mxu0 %v553_v37  ;;  %v555_v32 = vpack.c.bf16 %v547_v42, %v546_v54  ;;  %v9467_v33 = vpop.permute.xlu0 %1444  ;;  %v8001_v37 = vld [vmem:[#allocation3 + $0x8] sm:$0xff]   ;;  %v8010_v54 = vld [vmem:[#allocation3 + $0x50] sm:$0xff]   ;;  %v8011_v42 = vld [vmem:[#allocation3 + $0x58] sm:$0xff]  }
 0x215   :  { %5865 = vperm.xlu0 %7984, %v5711_v58   ;;  %v554_v53 = vpack.c.bf16 %v545_v38, %v544_v24  ;;  %v8005_v51 = vld [vmem:[#allocation3 + $0x28] sm:$0xff]   ;;  %v8008_v58 = vld [vmem:[#allocation3 + $0x40] sm:$0xff]  }
 0x216   :  { %v8012_v24 = vld [vmem:[#allocation3 + $0x60] sm:$0xff]   ;;  %v8013_v38 = vld [vmem:[#allocation3 + $0x68] sm:$0xff]  }
 0x217   :  { %7458 = vmatprep.subr.bf16.mxu0 %v554_v53 }
 0x218   :  { %5790 = vperm.xlu1 %7985, %v5696_v30   ;;  %7459 = vmatpush3.bf16.msra.mxu0 %v554_v53  ;;  %v8014_v30 = vld [vmem:[#allocation3 + $0x70] sm:$0xff]   ;;  %v8017_v53 = vld [vmem:[#allocation3 + $0x88] sm:$0xff]  }
 0x219   :  { %5785 = vperm.xlu0 %7984, %v5695_v57   ;;  %7460 = vmatprep.subr.bf16.mxu0 %v555_v32  ;;  %v8015_v57 = vld [vmem:[#allocation3 + $0x78] sm:$0xff]  }
 0x21c   :  { %7461 = vmatpush3.bf16.msra.mxu0 %v555_v32  ;;  %v8016_v32 = vld [vmem:[#allocation3 + $0x80] sm:$0xff]  }
 0x21d   :  { %6567 = vperm.xlu0 %7984, %v6564_v45   ;;  %4365 = vmatprep.subr.bf16.mxu0 %v11226_v19  ;;  %v8018_v45 = vld [vmem:[#allocation3 + $0x90] sm:$0xff]  }
 0x21f   :  { %7463 = vmatmul.mubr.bf16.vlgmr.msra.gmra.mrb[24].mxu0 %v8001_v37  ;;  %v8019_v37 = vld [vmem:[#allocation3 + $0x98] sm:$0xff]  }
 0x220   :  { %7466 = vmatprep.mubr.bf16.mxu0 %v8002_v16  ;;  %v8020_v16 = vld [vmem:[#allocation3 + $0xa0] sm:$0xff]  }
 0x227   :  { %7467 = vmatmul.mubr.bf16.gmra.mrb[28].mxu0 %v8003_v40  ;;  %v8021_v40 = vld [vmem:[#allocation3 + $0xa8] sm:$0xff]  }
 0x228   :  { %7470 = vmatprep.mubr.bf16.mxu0 %v8004_v48  ;;  %v8022_v48 = vld [vmem:[#allocation3 + $0xb0] sm:$0xff]  }
 0x22f   :  { %7471 = vmatmul.mubr.bf16.gmra.mrb[32].mxu0 %v8005_v51  ;;  %v8023_v51 = vld [vmem:[#allocation3 + $0xb8] sm:$0xff]  }
 0x230   :  { %7474 = vmatprep.mubr.bf16.mxu0 %v8006_v35  ;;  %v8024_v35 = vld [vmem:[#allocation3 + $0xc0] sm:$0xff]  }
 0x237   :  { %7475 = vmatmul.mubr.bf16.gmra.mrb[36].mxu0 %v8007_v34  ;;  %v8025_v34 = vld [vmem:[#allocation3 + $0xc8] sm:$0xff]  }
 0x238   :  { %7478 = vmatprep.mubr.bf16.mxu0 %v8008_v58  ;;  %v8026_v58 = vld [vmem:[#allocation3 + $0xd0] sm:$0xff]  }
 0x23f   :  { %7479 = vmatmul.mubr.bf16.gmra.mrb[40].mxu0 %v8009_v56  ;;  %v8027_v56 = vld [vmem:[#allocation3 + $0xd8] sm:$0xff]  }
 0x240   :  { %7482 = vmatprep.mubr.bf16.mxu0 %v8010_v54  ;;  %v8028_v54 = vld [vmem:[#allocation3 + $0xe0] sm:$0xff]  }
 0x247   :  { %7483 = vmatmul.mubr.bf16.gmra.mrb[44].mxu0 %v8011_v42  ;;  %v8029_v42 = vld [vmem:[#allocation3 + $0xe8] sm:$0xff]  }
 0x248   :  { %7486 = vmatprep.mubr.bf16.mxu0 %v8012_v24  ;;  %v8030_v24 = vld [vmem:[#allocation3 + $0xf0] sm:$0xff]  }
 0x24f   :  { %7487 = vmatmul.mubr.bf16.gmra.mrb[48].mxu0 %v8013_v38  ;;  %v8031_v38 = vld [vmem:[#allocation3 + $0xf8] sm:$0xff]  }
 0x250   :  { %7490 = vmatprep.mubr.bf16.mxu0 %v8014_v30  ;;  %v8032_v30 = vld [vmem:[#allocation3 + $0x100] sm:$0xff]  }
 0x257   :  { %7491 = vmatmul.mubr.bf16.gmra.mrb[52].mxu0 %v8015_v57  ;;  %v8033_v57 = vld [vmem:[#allocation3 + $0x108] sm:$0xff]  }
 0x258   :  { %7494 = vmatprep.mubr.bf16.mxu0 %v8016_v32  ;;  %v8034_v32 = vld [vmem:[#allocation3 + $0x110] sm:$0xff]  }
 0x25f   :  { %7495 = vmatmul.mubr.bf16.gmra.mrb[56].mxu0 %v8017_v53  ;;  %v8035_v53 = vld [vmem:[#allocation3 + $0x118] sm:$0xff]  }
 0x260   :  { %7498 = vmatprep.mubr.bf16.mxu0 %v8018_v45  ;;  %v8036_v45 = vld [vmem:[#allocation3 + $0x120] sm:$0xff]  }
 0x267   :  { %7499 = vmatmul.mubr.bf16.gmra.mrb[60].mxu0 %v8019_v37  ;;  %v8037_v37 = vld [vmem:[#allocation3 + $0x128] sm:$0xff]  }
 0x268   :  { %7502 = vmatprep.mubr.bf16.mxu0 %v8020_v16  ;;  %v8038_v16 = vld [vmem:[#allocation3 + $0x130] sm:$0xff]  }
 0x26f   :  { %7503 = vmatmul.mubr.bf16.gmra.mrb[64].mxu0 %v8021_v40  ;;  %v8039_v40 = vld [vmem:[#allocation3 + $0x138] sm:$0xff]  }
 0x270   :  { %7506 = vmatprep.mubr.bf16.mxu0 %v8022_v48  ;;  %v8040_v48 = vld [vmem:[#allocation3 + $0x140] sm:$0xff]  }
 0x277   :  { %7507 = vmatmul.mubr.bf16.gmra.mrb[68].mxu0 %v8023_v51  ;;  %v8041_v51 = vld [vmem:[#allocation3 + $0x148] sm:$0xff]  }
 0x278   :  { %7510 = vmatprep.mubr.bf16.mxu0 %v8024_v35  ;;  %v8042_v35 = vld [vmem:[#allocation3 + $0x150] sm:$0xff]  }
 0x27f   :  { %7511 = vmatmul.mubr.bf16.gmra.mrb[72].mxu0 %v8025_v34  ;;  %v8043_v34 = vld [vmem:[#allocation3 + $0x158] sm:$0xff]  }
 0x280   :  { %7514 = vmatprep.mubr.bf16.mxu0 %v8026_v58  ;;  %v8044_v58 = vld [vmem:[#allocation3 + $0x160] sm:$0xff]  }
 0x287   :  { %7515 = vmatmul.mubr.bf16.gmra.mrb[76].mxu0 %v8027_v56  ;;  %v8045_v56 = vld [vmem:[#allocation3 + $0x168] sm:$0xff]  }
 0x288   :  { %7518 = vmatprep.mubr.bf16.mxu0 %v8028_v54  ;;  %v8046_v54 = vld [vmem:[#allocation3 + $0x170] sm:$0xff]  }
 0x28f   :  { %7519 = vmatmul.mubr.bf16.gmra.mrb[80].mxu0 %v8029_v42  ;;  %v8047_v42 = vld [vmem:[#allocation3 + $0x178] sm:$0xff]  }
 0x290   :  { %7522 = vmatprep.mubr.bf16.mxu0 %v8030_v24  ;;  %v8048_v24 = vld [vmem:[#allocation3 + $0x180] sm:$0xff]  }
 0x297   :  { %7523 = vmatmul.mubr.bf16.gmra.mrb[84].mxu0 %v8031_v38  ;;  %v8049_v38 = vld [vmem:[#allocation3 + $0x188] sm:$0xff]  }
 0x298   :  { %7526 = vmatprep.mubr.bf16.mxu0 %v8032_v30  ;;  %v8050_v30 = vld [vmem:[#allocation3 + $0x190] sm:$0xff]  }
 0x29f   :  { %7527 = vmatmul.mubr.bf16.gmra.mrb[88].mxu0 %v8033_v57  ;;  %v8051_v57 = vld [vmem:[#allocation3 + $0x198] sm:$0xff]  }
 0x2a0   :  { %7530 = vmatprep.mubr.bf16.mxu0 %v8034_v32  ;;  %v8052_v32 = vld [vmem:[#allocation3 + $0x1a0] sm:$0xff]  }
 0x2a7   :  { %7531 = vmatmul.mubr.bf16.gmra.mrb[92].mxu0 %v8035_v53  ;;  %v8053_v53 = vld [vmem:[#allocation3 + $0x1a8] sm:$0xff]  }
 0x2a8   :  { %7534 = vmatprep.mubr.bf16.mxu0 %v8036_v45  ;;  %v8054_v45 = vld [vmem:[#allocation3 + $0x1b0] sm:$0xff]  }
 0x2af   :  { %7535 = vmatmul.mubr.bf16.gmra.mrb[96].mxu0 %v8037_v37 }
 0x2b0   :  { %7538 = vmatprep.mubr.bf16.mxu0 %v8038_v16 }
 0x2b7   :  { %7539 = vmatmul.mubr.bf16.gmra.mrb[100].mxu0 %v8039_v40  ;;  %v8055_v40 = vld [vmem:[#allocation3 + $0x1b8] sm:$0xff]  }
 0x2b8   :  { %7542 = vmatprep.mubr.bf16.mxu0 %v8040_v48 }
 0x2bf   :  { %7543 = vmatmul.mubr.bf16.gmra.mrb[104].mxu0 %v8041_v51  ;;  %v8056_v51 = vld [vmem:[#allocation3 + $0x1c0] sm:$0xff]  }
 0x2c0   :  { %7546 = vmatprep.mubr.bf16.mxu0 %v8042_v35 }
 0x2c7   :  { %7547 = vmatmul.mubr.bf16.gmra.mrb[108].mxu0 %v8043_v34 }
 0x2c8   :  { %7550 = vmatprep.mubr.bf16.mxu0 %v8044_v58 }
 0x2cf   :  { %7551 = vmatmul.mubr.bf16.gmra.mrb[112].mxu0 %v8045_v56  ;;  %v9475_v56 = vld [vmem:[%s11132_s7 + $0x8] sm:$0xff] }
 0x2d0   :  { %7554 = vmatprep.mubr.bf16.mxu0 %v8046_v54 }
 0x2d7   :  { %7555 = vmatmul.mubr.bf16.gmra.mrb[116].mxu0 %v8047_v42 }
 0x2d8   :  { %7558 = vmatprep.mubr.bf16.mxu0 %v8048_v24  ;;  %v9482_v24 = vld [vmem:[%s11132_s7 + $0x28] sm:$0xff] }
 0x2df   :  { %7559 = vmatmul.mubr.bf16.gmra.mrb[120].mxu0 %v8049_v38 }
 0x2e0   :  { %7562 = vmatprep.mubr.bf16.mxu0 %v8050_v30 }
 0x2e7   :  { %7563 = vmatmul.mubr.bf16.gmra.mrb[124].mxu0 %v8051_v57 }
 0x2e8   :  { %7566 = vmatprep.mubr.bf16.mxu0 %v8052_v32 }
 0x2ef   :  { %7567 = vmatmul.mubr.bf16.gmra.mrb[128].mxu0 %v8053_v53  ;;  %v8058_v53 = vld [vmem:[#allocation3 + $0x1d0] sm:$0xff]  }
 0x2f0   :  { %7570 = vmatprep.mubr.bf16.mxu0 %v8054_v45 }
 0x2f2   :  { %v7464_v37 = vpop.f32.mrb[24].mxu0 }
 0x2f3   :  { %v1870_v16 = vpop.f32.mrb[25].mxu0  ;;  %v1879_v35 = vadd.f32 %v7464_v37, %v9083_v26  ;;  %v6755_v26 = vcombine.high %v9475_v56, %v9482_v24 }
 0x2f4   :  { %v7465_v48 = vpop.f32.mrb[26].mxu0  ;;  %v1871_v54 = vadd.f32 %v1870_v16, %v9057_v47 }
 0x2f5   :  { %v1882_v34 = vadd.f32 %v7465_v48, %v9085_v18  ;;  %v1873_v58 = vpop.f32.mrb[27].mxu0  ;;  %v6754_v18 = vcombine.low %v9475_v56, %v9482_v24  ;;  %4686 = vmatprep.mubr.bf16.mxu1 %v6755_v26  ;;  %v2462_v56 = vld [vmem:[%s11132_s7 + $0x88] sm:$0xff] }
 0x2f6   :  { %v1874_v42 = vadd.f32 %v1873_v58, %v9059_v5  ;;  %v8057_v5 = vld [vmem:[#allocation3 + $0x1c8] sm:$0xff]  }
 0x2f7   :  { %v2382_v38 = vpack.c.bf16 %v1882_v34, %v1879_v35  ;;  %7571 = vmatmul.mubr.bf16.gmra.mrb[132].mxu0 %v8055_v40  ;;  %v2466_v24 = vld [vmem:[%s11132_s7 + $0xa8] sm:$0xff] }
 0x2f8   :  { %v2381_v30 = vpack.c.bf16 %v1874_v42, %v1871_v54  ;;  %7574 = vmatprep.mubr.bf16.mxu0 %v8056_v51 }
 0x2fa   :  { %v7468_v57 = vpop.f32.mrb[28].mxu0  ;;  %4366 = vmatpush1.bf16.msra.mxu0 %v2381_v30 }
 0x2fb   :  { %v1886_v47 = vpop.f32.mrb[29].mxu0  ;;  %4367 = vmatprep.subr.bf16.mxu0 %v11226_v19  ;;  %v1895_v45 = vadd.f32 %v7468_v57, %v9135_v22  ;;  %v8059_v22 = vld [vmem:[#allocation3 + $0x1d8] sm:$0xff]  }
 0x2fc   :  { %v7469_v32 = vpop.f32.mrb[30].mxu0  ;;  %v1887_v40 = vadd.f32 %v1886_v47, %v9109_v55 }
 0x2fd   :  { %v1898_v37 = vadd.f32 %v7469_v32, %v9137_v1  ;;  %v1889_v16 = vpop.f32.mrb[31].mxu0  ;;  %v8060_v1 = vld [vmem:[#allocation3 + $0x1e0] sm:$0xff]  }
 0x2fe   :  { %v1890_v48 = vadd.f32 %v1889_v16, %v9111_v17  ;;  %4368 = vmatpush1.bf16.msra.mxu0 %v2382_v38 }
 0x2ff   :  { %v2384_v51 = vpack.c.bf16 %v1898_v37, %v1895_v45  ;;  %7575 = vmatmul.mubr.bf16.gmra.mrb[136].mxu0 %v8057_v5  ;;  %4369 = vmatprep.subr.bf16.mxu0 %v11226_v19 }
 0x300   :  { %v2383_v35 = vpack.c.bf16 %v1890_v48, %v1887_v40  ;;  %7578 = vmatprep.mubr.bf16.mxu0 %v8058_v53  ;;  %v9509_v48 = vld [vmem:[%s11132_s7] sm:$0xff] }
 0x302   :  { %v7472_v34 = vpop.f32.mrb[32].mxu0  ;;  %4370 = vmatpush1.bf16.msra.mxu0 %v2383_v35 }
 0x303   :  { %v1902_v58 = vpop.f32.mrb[33].mxu0  ;;  %4371 = vmatprep.subr.bf16.mxu0 %v11226_v19  ;;  %v1911_v42 = vadd.f32 %v7472_v34, %v9187_v21  ;;  %v8061_v21 = vld [vmem:[#allocation3 + $0x1e8] sm:$0xff]  }
 0x304   :  { %v7473_v54 = vpop.f32.mrb[34].mxu0  ;;  %v1903_v38 = vadd.f32 %v1902_v58, %v9161_v36 }
 0x305   :  { %v1914_v55 = vadd.f32 %v7473_v54, %v9189_v52  ;;  %v1905_v17 = vpop.f32.mrb[35].mxu0  ;;  %v8062_v52 = vld [vmem:[#allocation3 + $0x1f0] sm:$0xff]  }
 0x306   :  { %v1906_v26 = vadd.f32 %v1905_v17, %v9163_v8  ;;  %4372 = vmatpush1.bf16.msra.mxu0 %v2384_v51 }
 0x307   :  { %v2386_v30 = vpack.c.bf16 %v1914_v55, %v1911_v42  ;;  %7579 = vmatmul.mubr.bf16.gmra.mrb[140].mxu0 %v8059_v22  ;;  %4373 = vmatprep.subr.bf16.mxu0 %v11226_v19 }
 0x308   :  { %v2385_v57 = vpack.c.bf16 %v1906_v26, %v1903_v38  ;;  %7582 = vmatprep.mubr.bf16.mxu0 %v8060_v1 }
 0x30a   :  { %v7476_v47 = vpop.f32.mrb[36].mxu0  ;;  %4374 = vmatpush1.bf16.msra.mxu0 %v2385_v57 }
 0x30b   :  { %v1918_v5 = vpop.f32.mrb[37].mxu0  ;;  %4375 = vmatprep.subr.bf16.mxu0 %v11226_v19  ;;  %v1927_v53 = vadd.f32 %v7476_v47, %v9239_v44  ;;  %v8063_v44 = vld [vmem:[#allocation3 + $0x1f8] sm:$0xff]  }
 0x30c   :  { %v7477_v32 = vpop.f32.mrb[38].mxu0  ;;  %v1919_v45 = vadd.f32 %v1918_v5, %v9213_v13 }
 0x30d   :  { %v1930_v36 = vadd.f32 %v7477_v32, %v9241_v28  ;;  %v1921_v8 = vpop.f32.mrb[39].mxu0  ;;  %v9514_v28 = vld [vmem:[%s11132_s7 + $0x20] sm:$0xff] }
 0x30e   :  { %v1922_v37 = vadd.f32 %v1921_v8, %v9215_v25  ;;  %4376 = vmatpush1.bf16.msra.mxu0 %v2386_v30  ;;  %v6753_v35 = vcombine.high %v9509_v48, %v9514_v28 }
 0x30f   :  { %v2388_v16 = vpack.c.bf16 %v1930_v36, %v1927_v53  ;;  %7583 = vmatmul.mubr.bf16.gmra.mrb[144].mxu0 %v8061_v21  ;;  %4377 = vmatprep.subr.bf16.mxu0 %v11226_v19 }
 0x310   :  { %v2387_v40 = vpack.c.bf16 %v1922_v37, %v1919_v45  ;;  %7586 = vmatprep.mubr.bf16.mxu0 %v8062_v52 }
 0x312   :  { %v7480_v13 = vpop.f32.mrb[40].mxu0  ;;  %4378 = vmatpush1.bf16.msra.mxu0 %v2387_v40 }
 0x313   :  { %v1934_v25 = vpop.f32.mrb[41].mxu0  ;;  %4379 = vmatprep.subr.bf16.mxu0 %v11226_v19  ;;  %v1943_v34 = vadd.f32 %v7480_v13, %v9291_v39 }
 0x314   :  { %v7481_v51 = vpop.f32.mrb[42].mxu0  ;;  %v1935_v54 = vadd.f32 %v1934_v25, %v9265_v63 }
 0x315   :  { %v1946_v58 = vadd.f32 %v7481_v51, %v9293_v31  ;;  %v1937_v22 = vpop.f32.mrb[43].mxu0 }
 0x316   :  { %v1938_v1 = vadd.f32 %v1937_v22, %v9267_v60  ;;  %4380 = vmatpush1.bf16.msra.mxu0 %v2388_v16 }
 0x317   :  { %v2390_v42 = vpack.c.bf16 %v1946_v58, %v1943_v34  ;;  %7587 = vmatmul.mubr.bf16.gmra.mrb[148].mxu0 %v8063_v44  ;;  %4381 = vmatprep.subr.bf16.mxu0 %v11226_v19  ;;  %v6752_v34 = vcombine.low %v9509_v48, %v9514_v28 }
 0x318   :  { %v2389_v55 = vpack.c.bf16 %v1938_v1, %v1935_v54  ;;  %4397 = vmatprep.mubr.bf16.mxu0 %v6753_v35 }
 0x31a   :  { %v7484_v17 = vpop.f32.mrb[44].mxu0  ;;  %4382 = vmatpush1.bf16.msra.mxu0 %v2389_v55 }
 0x31b   :  { %v1950_v38 = vpop.f32.mrb[45].mxu0  ;;  %4383 = vmatprep.subr.bf16.mxu0 %v11226_v19  ;;  %v1959_v31 = vadd.f32 %v7484_v17, %v9343_v4 }
 0x31c   :  { %v7485_v39 = vpop.f32.mrb[46].mxu0  ;;  %v1951_v60 = vadd.f32 %v1950_v38, %v9317_v14 }
 0x31d   :  { %v1962_v26 = vadd.f32 %v7485_v39, %v9345_v23  ;;  %v1953_v63 = vpop.f32.mrb[47].mxu0 }
 0x31e   :  { %v1954_v30 = vadd.f32 %v1953_v63, %v9319_v20  ;;  %4384 = vmatpush1.bf16.msra.mxu0 %v2390_v42 }
 0x31f   :  { %v2392_v57 = vpack.c.bf16 %v1962_v26, %v1959_v31  ;;  %4385 = vmatprep.subr.bf16.mxu0 %v11226_v19 }
 0x320   :  { %v2391_v47 = vpack.c.bf16 %v1954_v30, %v1951_v60 }
 0x322   :  { %v7488_v5 = vpop.f32.mrb[48].mxu0  ;;  %4386 = vmatpush1.bf16.msra.mxu0 %v2391_v47 }
 0x323   :  { %v1966_v21 = vpop.f32.mrb[49].mxu0  ;;  %4387 = vmatprep.subr.bf16.mxu0 %v11226_v19  ;;  %v1975_v4 = vadd.f32 %v7488_v5, %v9399_v43  ;;  %v11228_v5 = vld [vmem:[#allocation14_spill] sm:$0xff] }
 0x324   :  { %v7489_v32 = vpop.f32.mrb[50].mxu0  ;;  %v1967_v14 = vadd.f32 %v1966_v21, %v9369_v12 }
 0x325   :  { %v1978_v23 = vadd.f32 %v7489_v32, %v9401_v29  ;;  %v1969_v52 = vpop.f32.mrb[51].mxu0 }
 0x326   :  { %v1970_v20 = vadd.f32 %v1969_v52, %v9371_v15  ;;  %4388 = vmatpush1.bf16.msra.mxu0 %v2392_v57 }
 0x327   :  { %v2394_v53 = vpack.c.bf16 %v1978_v23, %v1975_v4  ;;  %4389 = vmatprep.subr.bf16.mxu0 %v11226_v19  ;;  %v11229_v23 = vld [vmem:[#allocation13_spill] sm:$0xff] }
 0x328   :  { %v2393_v36 = vpack.c.bf16 %v1970_v20, %v1967_v14  ;;  %v11230_v14 = vld [vmem:[#allocation12_spill] sm:$0xff] }
 0x32a   :  { %v7492_v8 = vpop.f32.mrb[52].mxu0  ;;  %4390 = vmatpush1.bf16.msra.mxu0 %v2393_v36 }
 0x32b   :  { %v1982_v45 = vpop.f32.mrb[53].mxu0  ;;  %4391 = vmatprep.subr.bf16.mxu0 %v11226_v19  ;;  %v1991_v43 = vadd.f32 %v7492_v8, %v9463_v49  ;;  %v2453_v49 = vld [vmem:[%s11132_s7 + $0x40] sm:$0xff] }
 0x32c   :  { %v7493_v37 = vpop.f32.mrb[54].mxu0  ;;  %v1983_v12 = vadd.f32 %v1982_v45, %v9432_v50  ;;  %v2457_v50 = vld [vmem:[%s11132_s7 + $0x60] sm:$0xff] }
 0x32d   :  { %v1994_v29 = vadd.f32 %v7493_v37, %v9465_v41  ;;  %v1985_v16 = vpop.f32.mrb[55].mxu0  ;;  %v6761_v54 = vcombine.high %v2453_v49, %v2457_v50  ;;  %v6760_v38 = vcombine.low %v2453_v49, %v2457_v50  ;;  %v11233_v49 = vld [vmem:[#allocation17_spill] sm:$0xff] }
 0x32e   :  { %v1986_v15 = vadd.f32 %v1985_v16, %v9435_v46  ;;  %4392 = vmatpush1.bf16.msra.mxu0 %v2394_v53 }
 0x32f   :  { %v2396_v40 = vpack.c.bf16 %v1994_v29, %v1991_v43  ;;  %4393 = vmatprep.subr.bf16.mxu0 %v11226_v19  ;;  %v2477_v43 = vld [vmem:[%s11132_s7 + $0x100] sm:$0xff] }
 0x330   :  { %v2395_v13 = vpack.c.bf16 %v1986_v15, %v1983_v12  ;;  %v2481_v29 = vld [vmem:[%s11132_s7 + $0x120] sm:$0xff] }
 0x331   :  { %v11231_v12 = vld [vmem:[#allocation19_spill] sm:$0xff] }
 0x332   :  { %v7496_v25 = vpop.f32.mrb[56].mxu0  ;;  %4394 = vmatpush1.bf16.msra.mxu0 %v2395_v13 }
 0x333   :  { %v1998_v44 = vpop.f32.mrb[57].mxu0  ;;  %4395 = vmatprep.subr.bf16.mxu0 %v11226_v19  ;;  %v2007_v46 = vadd.f32 %v7496_v25, %v8701_v3 }
 0x334   :  { %v7497_v41 = vpop.f32.mrb[58].mxu0  ;;  %v1999_v58 = vadd.f32 %v1998_v44, %v8691_v62  ;;  %v2465_v62 = vld [vmem:[%s11132_s7 + $0xa0] sm:$0xff] }
 0x335   :  { %v2010_v51 = vadd.f32 %v7497_v41, %v8699_v2  ;;  %v2001_v35 = vpop.f32.mrb[59].mxu0  ;;  %v2461_v2 = vld [vmem:[%s11132_s7 + $0x80] sm:$0xff] }
 0x336   :  { %4396 = vmatpush1.bf16.msra.mxu0 %v2396_v40  ;;  %v2002_v22 = vadd.f32 %v2001_v35, %v8689_v61  ;;  %v6769_v26 = vcombine.high %v2461_v2, %v2465_v62  ;;  %v6768_v4 = vcombine.low %v2461_v2, %v2465_v62  ;;  %v11232_v40 = vld [vmem:[#allocation18_spill] sm:$0xff]  ;;  %v11234_v41 = vld [vmem:[#allocation16_spill] sm:$0xff] }
 0x337   :  { %v2398_v1 = vpack.c.bf16 %v2010_v51, %v2007_v46  ;;  %v6785_v51 = vcombine.high %v2477_v43, %v2481_v29  ;;  %v11236_v2 = vld [vmem:[#allocation22_spill] sm:$0xff] }
 0x338   :  { %v2397_v42 = vpack.c.bf16 %v2002_v22, %v1999_v58 }
 0x339   :  { %4398 = vmatmul.mubr.bf16.vlgmr.msra.gmra.mrb[152].mxu0 %v6752_v34 }
 0x33a   :  { %v7500_v55 = vpop.f32.mrb[60].mxu0  ;;  %4655 = vmatpush1.bf16.msra.mxu1 %v2397_v42  ;;  %4405 = vmatprep.mubr.bf16.mxu0 %v6761_v54  ;;  %v2485_v54 = vld [vmem:[%s11132_s7 + $0x140] sm:$0xff] }
 0x33b   :  { %v2014_v17 = vpop.f32.mrb[61].mxu0  ;;  %4656 = vmatprep.subr.bf16.mxu1 %v11226_v19  ;;  %v2023_v61 = vadd.f32 %v7500_v55, %v8721_v11  ;;  %v11227_v11 = vld [vmem:[#allocation15_spill] sm:$0xff] }
 0x33c   :  { %v7501_v3 = vpop.f32.mrb[62].mxu0  ;;  %v2015_v39 = vadd.f32 %v2014_v17, %v8711_v7  ;;  %v11235_v55 = vld [vmem:[#allocation23_spill] sm:$0xff] }
 0x33d   :  { %v2026_v48 = vadd.f32 %v7501_v3, %v8719_v10  ;;  %v2017_v28 = vpop.f32.mrb[63].mxu0  ;;  %v2469_v10 = vld [vmem:[%s11132_s7 + $0xc0] sm:$0xff] }
 0x33e   :  { %v2018_v31 = vadd.f32 %v2017_v28, %v8709_v6  ;;  %4657 = vmatpush1.bf16.msra.mxu1 %v2398_v1  ;;  %v2473_v6 = vld [vmem:[%s11132_s7 + $0xe0] sm:$0xff] }
 0x33f   :  { %4658 = vmatprep.subr.bf16.mxu1 %v11226_v19  ;;  %v2400_v63 = vpack.c.bf16 %v2026_v48, %v2023_v61  ;;  %v6777_v53 = vcombine.high %v2469_v10, %v2473_v6  ;;  %v6776_v44 = vcombine.low %v2469_v10, %v2473_v6  ;;  %v2489_v1 = vld [vmem:[%s11132_s7 + $0x160] sm:$0xff]  ;;  %v6784_v61 = vcombine.low %v2477_v43, %v2481_v29  ;;  %v11237_v48 = vld [vmem:[#allocation21_spill] sm:$0xff] }
 0x340   :  { %v2399_v60 = vpack.c.bf16 %v2018_v31, %v2015_v39  ;;  %v6793_v31 = vcombine.high %v2485_v54, %v2489_v1  ;;  %v2497_v10 = vld [vmem:[%s11132_s7 + $0x1a0] sm:$0xff] }
 0x341   :  { %4406 = vmatmul.mubr.bf16.gmra.mrb[156].mxu0 %v6760_v38  ;;  %v11238_v38 = vld [vmem:[#allocation20_spill] sm:$0xff] }
 0x342   :  { %v7504_v30 = vpop.f32.mrb[64].mxu0  ;;  %4659 = vmatpush1.bf16.msra.mxu1 %v2399_v60  ;;  %4413 = vmatprep.mubr.bf16.mxu0 %v6769_v26  ;;  %v2505_v43 = vld [vmem:[%s11132_s7 + $0x1e0] sm:$0xff] }
 0x343   :  { %v2030_v57 = vpop.f32.mrb[65].mxu0  ;;  %4660 = vmatprep.subr.bf16.mxu1 %v11226_v19  ;;  %v2039_v47 = vadd.f32 %v7504_v30, %v11227_v11 }
 0x344   :  { %v7505_v7 = vpop.f32.mrb[66].mxu0  ;;  %v2031_v52 = vadd.f32 %v2030_v57, %v11229_v23  ;;  %v2493_v57 = vld [vmem:[%s11132_s7 + $0x180] sm:$0xff] }
 0x345   :  { %v2042_v21 = vadd.f32 %v7505_v7, %v11228_v5  ;;  %v2033_v32 = vpop.f32.mrb[67].mxu0  ;;  %v11239_v7 = vld [vmem:[#allocation27_spill] sm:$0xff] }
 0x346   :  { %v2034_v20 = vadd.f32 %v2033_v32, %v11230_v14  ;;  %4661 = vmatpush1.bf16.msra.mxu1 %v2400_v63  ;;  %v6792_v32 = vcombine.low %v2485_v54, %v2489_v1  ;;  %v2513_v54 = vld [vmem:[%s11132_s7 + $0x220] sm:$0xff] }
 0x347   :  { %4662 = vmatprep.subr.bf16.mxu1 %v11226_v19  ;;  %v2402_v36 = vpack.c.bf16 %v2042_v21, %v2039_v47  ;;  %v11240_v47 = vld [vmem:[#allocation26_spill] sm:$0xff] }
 0x348   :  { %v2401_v8 = vpack.c.bf16 %v2034_v20, %v2031_v52  ;;  %v11242_v52 = vld [vmem:[#allocation24_spill] sm:$0xff]  ;;  %v6801_v20 = vcombine.high %v2493_v57, %v2497_v10 }
 0x349   :  { %4414 = vmatmul.mubr.bf16.gmra.mrb[160].mxu0 %v6768_v4  ;;  %v11241_v4 = vld [vmem:[#allocation25_spill] sm:$0xff] }
 0x34a   :  { %v7508_v45 = vpop.f32.mrb[68].mxu0  ;;  %4663 = vmatpush1.bf16.msra.mxu1 %v2401_v8  ;;  %4421 = vmatprep.mubr.bf16.mxu0 %v6777_v53 }
 0x34b   :  { %v2046_v37 = vpop.f32.mrb[69].mxu0  ;;  %4664 = vmatprep.subr.bf16.mxu1 %v11226_v19  ;;  %v2055_v15 = vadd.f32 %v7508_v45, %v11231_v12 }
 0x34c   :  { %v7509_v16 = vpop.f32.mrb[70].mxu0  ;;  %v2047_v50 = vadd.f32 %v2046_v37, %v11233_v49  ;;  %v2501_v37 = vld [vmem:[%s11132_s7 + $0x1c0] sm:$0xff] }
 0x34d   :  { %v2058_v13 = vadd.f32 %v7509_v16, %v11232_v40  ;;  %v2049_v25 = vpop.f32.mrb[71].mxu0  ;;  %v11243_v16 = vld [vmem:[#allocation31_spill] sm:$0xff] }
 0x34e   :  { %v2050_v46 = vadd.f32 %v2049_v25, %v11234_v41  ;;  %4665 = vmatpush1.bf16.msra.mxu1 %v2402_v36  ;;  %v6800_v25 = vcombine.low %v2493_v57, %v2497_v10  ;;  %v2521_v57 = vld [vmem:[%s11132_s7 + $0x260] sm:$0xff] }
 0x34f   :  { %4666 = vmatprep.subr.bf16.mxu1 %v11226_v19  ;;  %v2404_v35 = vpack.c.bf16 %v2058_v13, %v2055_v15  ;;  %v11244_v15 = vld [vmem:[#allocation30_spill] sm:$0xff] }
 0x350   :  { %v2403_v34 = vpack.c.bf16 %v2050_v46, %v2047_v50  ;;  %v11246_v50 = vld [vmem:[#allocation28_spill] sm:$0xff]  ;;  %v6809_v46 = vcombine.high %v2501_v37, %v2505_v43 }
 0x351   :  { %4422 = vmatmul.mubr.bf16.gmra.mrb[164].mxu0 %v6776_v44  ;;  %v11245_v44 = vld [vmem:[#allocation29_spill] sm:$0xff] }
 0x352   :  { %v7512_v58 = vpop.f32.mrb[72].mxu0  ;;  %4667 = vmatpush1.bf16.msra.mxu1 %v2403_v34  ;;  %4429 = vmatprep.mubr.bf16.mxu0 %v6785_v51 }
 0x353   :  { %v2062_v22 = vpop.f32.mrb[73].mxu0  ;;  %4668 = vmatprep.subr.bf16.mxu1 %v11226_v19  ;;  %v2071_v17 = vadd.f32 %v7512_v58, %v11235_v55 }
 0x354   :  { %v7513_v42 = vpop.f32.mrb[74].mxu0  ;;  %v2063_v28 = vadd.f32 %v2062_v22, %v11237_v48  ;;  %v2509_v22 = vld [vmem:[%s11132_s7 + $0x200] sm:$0xff] }
 0x355   :  { %v2074_v62 = vadd.f32 %v7513_v42, %v11236_v2  ;;  %v2065_v3 = vpop.f32.mrb[75].mxu0  ;;  %v11247_v42 = vld [vmem:[#allocation35_spill] sm:$0xff] }
 0x356   :  { %v2066_v39 = vadd.f32 %v2065_v3, %v11238_v38  ;;  %4669 = vmatpush1.bf16.msra.mxu1 %v2404_v35  ;;  %v6808_v3 = vcombine.low %v2501_v37, %v2505_v43 }
 0x357   :  { %4670 = vmatprep.subr.bf16.mxu1 %v11226_v19  ;;  %v2406_v26 = vpack.c.bf16 %v2074_v62, %v2071_v17  ;;  %v11248_v17 = vld [vmem:[#allocation34_spill] sm:$0xff] }
 0x358   :  { %v2405_v63 = vpack.c.bf16 %v2066_v39, %v2063_v28  ;;  %v11250_v28 = vld [vmem:[#allocation32_spill] sm:$0xff]  ;;  %v6817_v39 = vcombine.high %v2509_v22, %v2513_v54 }
 0x359   :  { %4430 = vmatmul.mubr.bf16.gmra.mrb[168].mxu0 %v6784_v61  ;;  %v11249_v61 = vld [vmem:[#allocation33_spill] sm:$0xff] }
 0x35a   :  { %v7516_v60 = vpop.f32.mrb[76].mxu0  ;;  %4671 = vmatpush1.bf16.msra.mxu1 %v2405_v63  ;;  %4437 = vmatprep.mubr.bf16.mxu0 %v6793_v31 }
 0x35b   :  { %v2078_v30 = vpop.f32.mrb[77].mxu0  ;;  %4672 = vmatprep.subr.bf16.mxu1 %v11226_v19  ;;  %v2087_v11 = vadd.f32 %v7516_v60, %v11239_v7  ;;  %v2458_v7 = vld [vmem:[%s11132_s7 + $0x68] sm:$0xff] }
 0x35c   :  { %v7517_v6 = vpop.f32.mrb[78].mxu0  ;;  %v2079_v23 = vadd.f32 %v2078_v30, %v11241_v4  ;;  %v2517_v30 = vld [vmem:[%s11132_s7 + $0x240] sm:$0xff]  ;;  %v6816_v4 = vcombine.low %v2509_v22, %v2513_v54 }
 0x35d   :  { %v2090_v5 = vadd.f32 %v7517_v6, %v11240_v47  ;;  %v2081_v21 = vpop.f32.mrb[79].mxu0  ;;  %v2454_v6 = vld [vmem:[%s11132_s7 + $0x48] sm:$0xff] }
 0x35e   :  { %v2082_v14 = vadd.f32 %v2081_v21, %v11242_v52  ;;  %4673 = vmatpush1.bf16.msra.mxu1 %v2406_v26 }
 0x35f   :  { %4674 = vmatprep.subr.bf16.mxu1 %v11226_v19  ;;  %v2408_v53 = vpack.c.bf16 %v2090_v5, %v2087_v11  ;;  %v11251_v11 = vld [vmem:[#allocation39_spill] sm:$0xff]  ;;  %v11252_v5 = vld [vmem:[#allocation38_spill] sm:$0xff] }
 0x360   :  { %v2407_v36 = vpack.c.bf16 %v2082_v14, %v2079_v23  ;;  %v11253_v23 = vld [vmem:[#allocation37_spill] sm:$0xff]  ;;  %v11254_v14 = vld [vmem:[#allocation36_spill] sm:$0xff] }
 0x361   :  { %4438 = vmatmul.mubr.bf16.gmra.mrb[172].mxu0 %v6792_v32 }
 0x362   :  { %v7520_v8 = vpop.f32.mrb[80].mxu0  ;;  %4675 = vmatpush1.bf16.msra.mxu1 %v2407_v36  ;;  %4445 = vmatprep.mubr.bf16.mxu0 %v6801_v20 }
 0x363   :  { %v2094_v45 = vpop.f32.mrb[81].mxu0  ;;  %4676 = vmatprep.subr.bf16.mxu1 %v11226_v19  ;;  %v2103_v12 = vadd.f32 %v7520_v8, %v11243_v16  ;;  %v6763_v8 = vcombine.high %v2454_v6, %v2458_v7  ;;  %v2529_v16 = vld [vmem:[%s11132_s7 + $0x2a0] sm:$0xff] }
 0x364   :  { %v7521_v29 = vpop.f32.mrb[82].mxu0  ;;  %v2095_v49 = vadd.f32 %v2094_v45, %v11245_v44  ;;  %v6824_v44 = vcombine.low %v2517_v30, %v2521_v57 }
 0x365   :  { %v2106_v40 = vadd.f32 %v7521_v29, %v11244_v15  ;;  %v2097_v13 = vpop.f32.mrb[83].mxu0  ;;  %v2525_v29 = vld [vmem:[%s11132_s7 + $0x280] sm:$0xff] }
 0x366   :  { %v2098_v41 = vadd.f32 %v2097_v13, %v11246_v50  ;;  %4677 = vmatpush1.bf16.msra.mxu1 %v2408_v53  ;;  %v6825_v53 = vcombine.high %v2517_v30, %v2521_v57  ;;  %v11257_v50 = vld [vmem:[#allocation41_spill] sm:$0xff] }
 0x367   :  { %4678 = vmatprep.subr.bf16.mxu1 %v11226_v19  ;;  %v2410_v51 = vpack.c.bf16 %v2106_v40, %v2103_v12  ;;  %v11256_v40 = vld [vmem:[#allocation42_spill] sm:$0xff] }
 0x368   :  { %v2409_v35 = vpack.c.bf16 %v2098_v41, %v2095_v49  ;;  %v6762_v49 = vcombine.low %v2454_v6, %v2458_v7 }
 0x369   :  { %4446 = vmatmul.mubr.bf16.gmra.mrb[176].mxu0 %v6800_v25 }
 0x36a   :  { %v7524_v34 = vpop.f32.mrb[84].mxu0  ;;  %4679 = vmatpush1.bf16.msra.mxu1 %v2409_v35  ;;  %4453 = vmatprep.mubr.bf16.mxu0 %v6809_v46  ;;  %v11258_v46 = vld [vmem:[#allocation40_spill] sm:$0xff]  ;;  %v6833_v35 = vcombine.high %v2525_v29, %v2529_v16 }
 0x36b   :  { %v2110_v58 = vpop.f32.mrb[85].mxu0  ;;  %4680 = vmatprep.subr.bf16.mxu1 %v11226_v19  ;;  %v2119_v55 = vadd.f32 %v7524_v34, %v11247_v42  ;;  %v2533_v42 = vld [vmem:[%s11132_s7 + $0x2c0] sm:$0xff] }
 0x36c   :  { %v7525_v1 = vpop.f32.mrb[86].mxu0  ;;  %v2111_v48 = vadd.f32 %v2110_v58, %v11249_v61  ;;  %v6771_v58 = vcombine.high %v2462_v56, %v2466_v24 }
 0x36d   :  { %v2122_v2 = vadd.f32 %v7525_v1, %v11248_v17  ;;  %v2113_v62 = vpop.f32.mrb[87].mxu0 }
 0x36e   :  { %v2114_v38 = vadd.f32 %v2113_v62, %v11250_v28  ;;  %4681 = vmatpush1.bf16.msra.mxu1 %v2410_v51  ;;  %v2474_v62 = vld [vmem:[%s11132_s7 + $0xe8] sm:$0xff] }
 0x36f   :  { %4682 = vmatprep.subr.bf16.mxu1 %v11226_v19  ;;  %v2412_v31 = vpack.c.bf16 %v2122_v2, %v2119_v55  ;;  %v2537_v55 = vld [vmem:[%s11132_s7 + $0x2e0] sm:$0xff]  ;;  %v2470_v2 = vld [vmem:[%s11132_s7 + $0xc8] sm:$0xff] }
 0x370   :  { %v2411_v26 = vpack.c.bf16 %v2114_v38, %v2111_v48  ;;  %v11260_v48 = vld [vmem:[#allocation46_spill] sm:$0xff]  ;;  %v6841_v57 = vcombine.high %v2533_v42, %v2537_v55  ;;  %v6779_v6 = vcombine.high %v2470_v2, %v2474_v62 }
 0x371   :  { %4454 = vmatmul.mubr.bf16.gmra.mrb[180].mxu0 %v6808_v3  ;;  %v11259_v3 = vld [vmem:[#allocation47_spill] sm:$0xff] }
 0x372   :  { %v7528_v63 = vpop.f32.mrb[88].mxu0  ;;  %4683 = vmatpush1.bf16.msra.mxu1 %v2411_v26  ;;  %4461 = vmatprep.mubr.bf16.mxu0 %v6817_v39  ;;  %v6832_v39 = vcombine.low %v2525_v29, %v2529_v16  ;;  %v11261_v26 = vld [vmem:[#allocation45_spill] sm:$0xff]  ;;  %v11266_v29 = vld [vmem:[#allocation48_spill] sm:$0xff] }
 0x373   :  { %v2126_v60 = vpop.f32.mrb[89].mxu0  ;;  %4684 = vmatprep.subr.bf16.mxu1 %v11226_v19  ;;  %v2135_v47 = vadd.f32 %v7528_v63, %v11251_v11 }
 0x374   :  { %v7529_v10 = vpop.f32.mrb[90].mxu0  ;;  %v2127_v52 = vadd.f32 %v2126_v60, %v11253_v23  ;;  %v11262_v60 = vld [vmem:[#allocation44_spill] sm:$0xff] }
 0x375   :  { %v2138_v21 = vadd.f32 %v7529_v10, %v11252_v5  ;;  %v2129_v32 = vpop.f32.mrb[91].mxu0  ;;  %v2541_v5 = vld [vmem:[%s11132_s7 + $0x300] sm:$0xff]  ;;  %v2482_v23 = vld [vmem:[%s11132_s7 + $0x128] sm:$0xff] }
 0x376   :  { %v2130_v20 = vadd.f32 %v2129_v32, %v11254_v14  ;;  %4685 = vmatpush1.bf16.msra.mxu1 %v2412_v31  ;;  %v6770_v31 = vcombine.low %v2462_v56, %v2466_v24 }
 0x377   :  { %v2414_v36 = vpack.c.bf16 %v2138_v21, %v2135_v47  ;;  %4943 = vmatprep.subr.bf16.mxu1 %v11226_v19  ;;  %v2545_v21 = vld [vmem:[%s11132_s7 + $0x320] sm:$0xff] }
 0x378   :  { %v2413_v45 = vpack.c.bf16 %v2130_v20, %v2127_v52  ;;  %v11263_v52 = vld [vmem:[#allocation51_spill] sm:$0xff]  ;;  %v11264_v20 = vld [vmem:[#allocation50_spill] sm:$0xff] }
 0x379   :  { %4462 = vmatmul.mubr.bf16.gmra.mrb[184].mxu0 %v6816_v4  ;;  %4687 = vmatmul.mubr.bf16.vlgmr.msra.gmra.mrb[0].mxu1 %v6754_v18  ;;  %v11255_v18 = vld [vmem:[#allocation43_spill] sm:$0xff]  ;;  %v2478_v4 = vld [vmem:[%s11132_s7 + $0x108] sm:$0xff] }
 0x37a   :  { %v7532_v37 = vpop.f32.mrb[92].mxu0  ;;  %4944 = vmatpush1.bf16.msra.mxu1 %v2413_v45  ;;  %4469 = vmatprep.mubr.bf16.mxu0 %v6825_v53  ;;  %v6778_v45 = vcombine.low %v2470_v2, %v2474_v62  ;;  %v6787_v24 = vcombine.high %v2478_v4, %v2482_v23 }
 0x37b   :  { %v2142_v43 = vpop.f32.mrb[93].mxu0  ;;  %4945 = vmatprep.subr.bf16.mxu1 %v11226_v19  ;;  %4694 = vmatprep.mubr.bf16.mxu1 %v6763_v8  ;;  %v2151_v15 = vadd.f32 %v7532_v37, %v11255_v18  ;;  %v6840_v8 = vcombine.low %v2533_v42, %v2537_v55  ;;  %v11265_v37 = vld [vmem:[#allocation49_spill] sm:$0xff]  ;;  %v11270_v42 = vld [vmem:[#allocation52_spill] sm:$0xff] }
 0x37c   :  { %v7533_v12 = vpop.f32.mrb[94].mxu0  ;;  %v2143_v41 = vadd.f32 %v2142_v43, %v11257_v50  ;;  %v2490_v50 = vld [vmem:[%s11132_s7 + $0x168] sm:$0xff] }
 0x37d   :  { %v2154_v13 = vadd.f32 %v7533_v12, %v11256_v40  ;;  %v2145_v25 = vpop.f32.mrb[95].mxu0  ;;  %v6849_v12 = vcombine.high %v2541_v5, %v2545_v21 }
 0x37e   :  { %v2146_v51 = vadd.f32 %v2145_v25, %v11258_v46  ;;  %4946 = vmatpush1.bf16.msra.mxu1 %v2414_v36  ;;  %v2553_v25 = vld [vmem:[%s11132_s7 + $0x360] sm:$0xff] }
 0x37f   :  { %v2416_v34 = vpack.c.bf16 %v2154_v13, %v2151_v15  ;;  %4947 = vmatprep.subr.bf16.mxu1 %v11226_v19  ;;  %v2549_v13 = vld [vmem:[%s11132_s7 + $0x340] sm:$0xff] }
 0x380   :  { %v2415_v22 = vpack.c.bf16 %v2146_v51, %v2143_v41  ;;  %v11267_v41 = vld [vmem:[#allocation55_spill] sm:$0xff]  ;;  %v11268_v51 = vld [vmem:[#allocation54_spill] sm:$0xff] }
 0x381   :  { %4470 = vmatmul.mubr.bf16.gmra.mrb[188].mxu0 %v6824_v44  ;;  %4695 = vmatmul.mubr.bf16.gmra.mrb[4].mxu1 %v6762_v49  ;;  %v2486_v49 = vld [vmem:[%s11132_s7 + $0x148] sm:$0xff] }
 0x382   :  { %v7536_v54 = vpop.f32.mrb[96].mxu0  ;;  %4948 = vmatpush1.bf16.msra.mxu1 %v2415_v22  ;;  %4477 = vmatprep.mubr.bf16.mxu0 %v6833_v35  ;;  %v6786_v22 = vcombine.low %v2478_v4, %v2482_v23  ;;  %v6795_v62 = vcombine.high %v2486_v49, %v2490_v50 }
 0x383   :  { %v2158_v1 = vpop.f32.mrb[97].mxu0  ;;  %4949 = vmatprep.subr.bf16.mxu1 %v11226_v19  ;;  %4702 = vmatprep.mubr.bf16.mxu1 %v6771_v58  ;;  %v2167_v61 = vadd.f32 %v7536_v54, %v11259_v3  ;;  %v6848_v58 = vcombine.low %v2541_v5, %v2545_v21  ;;  %v11269_v54 = vld [vmem:[#allocation53_spill] sm:$0xff]  ;;  %v11274_v5 = vld [vmem:[#allocation56_spill] sm:$0xff] }
 0x384   :  { %v7537_v17 = vpop.f32.mrb[98].mxu0  ;;  %v2159_v63 = vadd.f32 %v2158_v1, %v11261_v26  ;;  %v2498_v26 = vld [vmem:[%s11132_s7 + $0x1a8] sm:$0xff] }
 0x385   :  { %v2170_v28 = vadd.f32 %v7537_v17, %v11260_v48  ;;  %v2161_v38 = vpop.f32.mrb[99].mxu0  ;;  %v6857_v17 = vcombine.high %v2549_v13, %v2553_v25 }
 0x386   :  { %v2162_v30 = vadd.f32 %v2161_v38, %v11262_v60  ;;  %4950 = vmatpush1.bf16.msra.mxu1 %v2416_v34  ;;  %v2561_v38 = vld [vmem:[%s11132_s7 + $0x3a0] sm:$0xff] }
 0x387   :  { %v2418_v10 = vpack.c.bf16 %v2170_v28, %v2167_v61  ;;  %4951 = vmatprep.subr.bf16.mxu1 %v11226_v19  ;;  %v2557_v28 = vld [vmem:[%s11132_s7 + $0x380] sm:$0xff] }
 0x388   :  { %v2417_v7 = vpack.c.bf16 %v2162_v30, %v2159_v63  ;;  %v11271_v63 = vld [vmem:[#allocation59_spill] sm:$0xff]  ;;  %v11272_v30 = vld [vmem:[#allocation58_spill] sm:$0xff] }
 0x389   :  { %4478 = vmatmul.mubr.bf16.gmra.mrb[192].mxu0 %v6832_v39  ;;  %4703 = vmatmul.mubr.bf16.gmra.mrb[8].mxu1 %v6770_v31  ;;  %v2494_v31 = vld [vmem:[%s11132_s7 + $0x188] sm:$0xff] }
 0x38a   :  { %v7540_v11 = vpop.f32.mrb[100].mxu0  ;;  %4952 = vmatpush1.bf16.msra.mxu1 %v2417_v7  ;;  %4485 = vmatprep.mubr.bf16.mxu0 %v6841_v57  ;;  %v6794_v7 = vcombine.low %v2486_v49, %v2490_v50  ;;  %v6803_v23 = vcombine.high %v2494_v31, %v2498_v26 }
 0x38b   :  { %v2174_v47 = vpop.f32.mrb[101].mxu0  ;;  %4953 = vmatprep.subr.bf16.mxu1 %v11226_v19  ;;  %4710 = vmatprep.mubr.bf16.mxu1 %v6779_v6  ;;  %v2183_v14 = vadd.f32 %v7540_v11, %v11263_v52  ;;  %v6856_v6 = vcombine.low %v2549_v13, %v2553_v25  ;;  %v11273_v11 = vld [vmem:[#allocation57_spill] sm:$0xff] }
 0x38c   :  { %v7541_v32 = vpop.f32.mrb[102].mxu0  ;;  %v2175_v43 = vadd.f32 %v2174_v47, %v11265_v37  ;;  %v2506_v37 = vld [vmem:[%s11132_s7 + $0x1e8] sm:$0xff] }
 0x38d   :  { %v2186_v53 = vadd.f32 %v7541_v32, %v11264_v20  ;;  %v2177_v36 = vpop.f32.mrb[103].mxu0  ;;  %v6865_v32 = vcombine.high %v2557_v28, %v2561_v38  ;;  %v11278_v13 = vld [vmem:[#allocation61_spill] sm:$0xff] }
 0x38e   :  { %v2178_v16 = vadd.f32 %v2177_v36, %v11266_v29  ;;  %4954 = vmatpush1.bf16.msra.mxu1 %v2418_v10  ;;  %v2569_v36 = vld [vmem:[%s11132_s7 + $0x3e0] sm:$0xff] }
 0x38f   :  { %v2420_v56 = vpack.c.bf16 %v2186_v53, %v2183_v14  ;;  %4955 = vmatprep.subr.bf16.mxu1 %v11226_v19  ;;  %v2565_v53 = vld [vmem:[%s11132_s7 + $0x3c0] sm:$0xff] }
 0x390   :  { %v2419_v18 = vpack.c.bf16 %v2178_v16, %v2175_v43  ;;  %v11275_v43 = vld [vmem:[#allocation62_spill] sm:$0xff]  ;;  %v11276_v16 = vld [vmem:[#allocation63_spill] sm:$0xff] }
 0x391   :  { %4486 = vmatmul.mubr.bf16.gmra.mrb[196].mxu0 %v6840_v8  ;;  %4711 = vmatmul.mubr.bf16.gmra.mrb[12].mxu1 %v6778_v45  ;;  %v2502_v45 = vld [vmem:[%s11132_s7 + $0x1c8] sm:$0xff] }
 0x392   :  { %v7544_v15 = vpop.f32.mrb[104].mxu0  ;;  %4956 = vmatpush1.bf16.msra.mxu1 %v2419_v18  ;;  %4493 = vmatprep.mubr.bf16.mxu0 %v6849_v12  ;;  %v6802_v18 = vcombine.low %v2494_v31, %v2498_v26  ;;  %v6811_v50 = vcombine.high %v2502_v45, %v2506_v37 }
 0x393   :  { %v2190_v40 = vpop.f32.mrb[105].mxu0  ;;  %4957 = vmatprep.subr.bf16.mxu1 %v11226_v19  ;;  %4718 = vmatprep.mubr.bf16.mxu1 %v6787_v24  ;;  %v2199_v46 = vadd.f32 %v7544_v15, %v11267_v41  ;;  %v6864_v24 = vcombine.low %v2557_v28, %v2561_v38  ;;  %v11277_v15 = vld [vmem:[#allocation60_spill] sm:$0xff]  ;;  %v11282_v28 = vld [vmem:[#allocation65_spill] sm:$0xff] }
 0x394   :  { %v7545_v44 = vpop.f32.mrb[106].mxu0  ;;  %v2191_v1 = vadd.f32 %v2190_v40, %v11269_v54  ;;  %v2514_v54 = vld [vmem:[%s11132_s7 + $0x228] sm:$0xff] }
 0x395   :  { %v2202_v35 = vadd.f32 %v7545_v44, %v11268_v51  ;;  %v2193_v34 = vpop.f32.mrb[107].mxu0  ;;  %v6873_v44 = vcombine.high %v2565_v53, %v2569_v36 }
 0x396   :  { %v2194_v55 = vadd.f32 %v2193_v34, %v11270_v42  ;;  %4958 = vmatpush1.bf16.msra.mxu1 %v2420_v56  ;;  %v2577_v34 = vld [vmem:[%s11132_s7 + $0x420] sm:$0xff] }
 0x397   :  { %v2422_v2 = vpack.c.bf16 %v2202_v35, %v2199_v46  ;;  %4959 = vmatprep.subr.bf16.mxu1 %v11226_v19  ;;  %v2573_v35 = vld [vmem:[%s11132_s7 + $0x400] sm:$0xff] }
 0x398   :  { %v2421_v3 = vpack.c.bf16 %v2194_v55, %v2191_v1  ;;  %v11279_v1 = vld [vmem:[#allocation66_spill] sm:$0xff]  ;;  %v11280_v55 = vld [vmem:[#allocation67_spill] sm:$0xff] }
 0x399   :  { %4494 = vmatmul.mubr.bf16.gmra.mrb[200].mxu0 %v6848_v58  ;;  %4719 = vmatmul.mubr.bf16.gmra.mrb[16].mxu1 %v6786_v22  ;;  %v2510_v22 = vld [vmem:[%s11132_s7 + $0x208] sm:$0xff] }
 0x39a   :  { %v7548_v61 = vpop.f32.mrb[108].mxu0  ;;  %4960 = vmatpush1.bf16.msra.mxu1 %v2421_v3  ;;  %4501 = vmatprep.mubr.bf16.mxu0 %v6857_v17  ;;  %v6810_v3 = vcombine.low %v2502_v45, %v2506_v37  ;;  %v6819_v26 = vcombine.high %v2510_v22, %v2514_v54 }
 0x39b   :  { %v2206_v48 = vpop.f32.mrb[109].mxu0  ;;  %4961 = vmatprep.subr.bf16.mxu1 %v11226_v19  ;;  %4726 = vmatprep.mubr.bf16.mxu1 %v6795_v62  ;;  %v2215_v60 = vadd.f32 %v7548_v61, %v11271_v63  ;;  %v6872_v62 = vcombine.low %v2565_v53, %v2569_v36  ;;  %v11281_v61 = vld [vmem:[#allocation64_spill] sm:$0xff]  ;;  %v11286_v53 = vld [vmem:[#allocation69_spill] sm:$0xff] }
 0x39c   :  { %v7549_v39 = vpop.f32.mrb[110].mxu0  ;;  %v2207_v47 = vadd.f32 %v2206_v48, %v11273_v11 }
 0x39d   :  { %v2218_v57 = vadd.f32 %v7549_v39, %v11272_v30  ;;  %v2209_v10 = vpop.f32.mrb[111].mxu0  ;;  %v6881_v39 = vcombine.high %v2573_v35, %v2577_v34  ;;  %v2581_v30 = vld [vmem:[%s11132_s7 + $0x440] sm:$0xff] }
 0x39e   :  { %v2210_v21 = vadd.f32 %v2209_v10, %v11274_v5  ;;  %4962 = vmatpush1.bf16.msra.mxu1 %v2422_v2  ;;  %v2585_v10 = vld [vmem:[%s11132_s7 + $0x460] sm:$0xff] }
 0x39f   :  { %v2424_v4 = vpack.c.bf16 %v2218_v57, %v2215_v60  ;;  %4963 = vmatprep.subr.bf16.mxu1 %v11226_v19 }
 0x3a0   :  { %v2423_v52 = vpack.c.bf16 %v2210_v21, %v2207_v47  ;;  %v11283_v47 = vld [vmem:[#allocation70_spill] sm:$0xff]  ;;  %v11284_v21 = vld [vmem:[#allocation71_spill] sm:$0xff] }
 0x3a1   :  { %4502 = vmatmul.mubr.bf16.gmra.mrb[204].mxu0 %v6856_v6  ;;  %4727 = vmatmul.mubr.bf16.gmra.mrb[20].mxu1 %v6794_v7  ;;  %v2518_v6 = vld [vmem:[%s11132_s7 + $0x248] sm:$0xff] }
 0x3a2   :  { %v7552_v14 = vpop.f32.mrb[112].mxu0  ;;  %4964 = vmatpush1.bf16.msra.mxu1 %v2423_v52  ;;  %4509 = vmatprep.mubr.bf16.mxu0 %v6865_v32  ;;  %v2522_v7 = vld [vmem:[%s11132_s7 + $0x268] sm:$0xff]  ;;  %v6818_v52 = vcombine.low %v2510_v22, %v2514_v54 }
 0x3a3   :  { %v2222_v20 = vpop.f32.mrb[113].mxu0  ;;  %4965 = vmatprep.subr.bf16.mxu1 %v11226_v19  ;;  %4734 = vmatprep.mubr.bf16.mxu1 %v6803_v23  ;;  %v2231_v29 = vadd.f32 %v7552_v14, %v11275_v43  ;;  %v6880_v23 = vcombine.low %v2573_v35, %v2577_v34  ;;  %v11285_v14 = vld [vmem:[#allocation68_spill] sm:$0xff]  ;;  %v6827_v45 = vcombine.high %v2518_v6, %v2522_v7  ;;  %v11290_v35 = vld [vmem:[#allocation73_spill] sm:$0xff] }
 0x3a4   :  { %v7553_v8 = vpop.f32.mrb[114].mxu0  ;;  %v2223_v40 = vadd.f32 %v2222_v20, %v11277_v15 }
 0x3a5   :  { %v2234_v12 = vadd.f32 %v7553_v8, %v11276_v16  ;;  %v2225_v56 = vpop.f32.mrb[115].mxu0  ;;  %v6889_v8 = vcombine.high %v2581_v30, %v2585_v10  ;;  %v2589_v16 = vld [vmem:[%s11132_s7 + $0x480] sm:$0xff] }
 0x3a6   :  { %v2226_v25 = vadd.f32 %v2225_v56, %v11278_v13  ;;  %4966 = vmatpush1.bf16.msra.mxu1 %v2424_v4  ;;  %v2593_v56 = vld [vmem:[%s11132_s7 + $0x4a0] sm:$0xff] }
 0x3a7   :  { %v2426_v49 = vpack.c.bf16 %v2234_v12, %v2231_v29  ;;  %4967 = vmatprep.subr.bf16.mxu1 %v11226_v19 }
 0x3a8   :  { %v2425_v41 = vpack.c.bf16 %v2226_v25, %v2223_v40  ;;  %v11287_v40 = vld [vmem:[#allocation74_spill] sm:$0xff]  ;;  %v11288_v25 = vld [vmem:[#allocation75_spill] sm:$0xff] }
 0x3a9   :  { %4510 = vmatmul.mubr.bf16.gmra.mrb[208].mxu0 %v6864_v24  ;;  %4735 = vmatmul.mubr.bf16.gmra.mrb[24].mxu1 %v6802_v18  ;;  %v2526_v24 = vld [vmem:[%s11132_s7 + $0x288] sm:$0xff] }
 0x3aa   :  { %v7556_v46 = vpop.f32.mrb[116].mxu0  ;;  %4968 = vmatpush1.bf16.msra.mxu1 %v2425_v41  ;;  %4517 = vmatprep.mubr.bf16.mxu0 %v6873_v44  ;;  %v2530_v18 = vld [vmem:[%s11132_s7 + $0x2a8] sm:$0xff]  ;;  %v6826_v41 = vcombine.low %v2518_v6, %v2522_v7 }
 0x3ab   :  { %v2238_v51 = vpop.f32.mrb[117].mxu0  ;;  %4969 = vmatprep.subr.bf16.mxu1 %v11226_v19  ;;  %4742 = vmatprep.mubr.bf16.mxu1 %v6811_v50  ;;  %v2247_v42 = vadd.f32 %v7556_v46, %v11279_v1  ;;  %v6888_v50 = vcombine.low %v2581_v30, %v2585_v10  ;;  %v11289_v46 = vld [vmem:[#allocation72_spill] sm:$0xff]  ;;  %v6835_v22 = vcombine.high %v2526_v24, %v2530_v18 }
 0x3ac   :  { %v7557_v58 = vpop.f32.mrb[118].mxu0  ;;  %v2239_v48 = vadd.f32 %v2238_v51, %v11281_v61 }
 0x3ad   :  { %v2250_v17 = vadd.f32 %v7557_v58, %v11280_v55  ;;  %v2241_v2 = vpop.f32.mrb[119].mxu0  ;;  %v6897_v58 = vcombine.high %v2589_v16, %v2593_v56  ;;  %v2597_v55 = vld [vmem:[%s11132_s7 + $0x4c0] sm:$0xff] }
 0x3ae   :  { %v2242_v38 = vadd.f32 %v2241_v2, %v11282_v28  ;;  %4970 = vmatpush1.bf16.msra.mxu1 %v2426_v49  ;;  %v2601_v2 = vld [vmem:[%s11132_s7 + $0x4e0] sm:$0xff] }
 0x3af   :  { %v2428_v31 = vpack.c.bf16 %v2250_v17, %v2247_v42  ;;  %4971 = vmatprep.subr.bf16.mxu1 %v11226_v19  ;;  %v6905_v6 = vcombine.high %v2597_v55, %v2601_v2 }
 0x3b0   :  { %v2427_v63 = vpack.c.bf16 %v2242_v38, %v2239_v48  ;;  %v11291_v48 = vld [vmem:[#allocation78_spill] sm:$0xff]  ;;  %v11292_v38 = vld [vmem:[#allocation79_spill] sm:$0xff] }
 0x3b1   :  { %4518 = vmatmul.mubr.bf16.gmra.mrb[212].mxu0 %v6872_v62  ;;  %4743 = vmatmul.mubr.bf16.gmra.mrb[28].mxu1 %v6810_v3  ;;  %v2534_v62 = vld [vmem:[%s11132_s7 + $0x2c8] sm:$0xff] }
 0x3b2   :  { %v7560_v60 = vpop.f32.mrb[120].mxu0  ;;  %4972 = vmatpush1.bf16.msra.mxu1 %v2427_v63  ;;  %4525 = vmatprep.mubr.bf16.mxu0 %v6881_v39  ;;  %v2538_v3 = vld [vmem:[%s11132_s7 + $0x2e8] sm:$0xff]  ;;  %v6834_v63 = vcombine.low %v2526_v24, %v2530_v18  ;;  %v6904_v24 = vcombine.low %v2597_v55, %v2601_v2  ;;  %v2617_v55 = vld [vmem:[%s11132_s7 + $0x560] sm:$0xff] }
 0x3b3   :  { %v2254_v57 = vpop.f32.mrb[121].mxu0  ;;  %4973 = vmatprep.subr.bf16.mxu1 %v11226_v19  ;;  %4750 = vmatprep.mubr.bf16.mxu1 %v6819_v26  ;;  %v9800_v5 = vadd.f32 %v7560_v60, %v11283_v47  ;;  %v6896_v26 = vcombine.low %v2589_v16, %v2593_v56  ;;  %v11293_v60 = vld [vmem:[#allocation76_spill] sm:$0xff]  ;;  %v6843_v7 = vcombine.high %v2534_v62, %v2538_v3  ;;  %v11296_v16 = vld [vmem:[#allocation83_spill] sm:$0xff] }
 0x3b4   :  { %v7561_v11 = vpop.f32.mrb[122].mxu0  ;;  %v9806_v20 = vadd.f32 %v2254_v57, %v11285_v14  ;;  %v11294_v57 = vld [vmem:[#allocation77_spill] sm:$0xff]  ;;  %v6842_v18 = vcombine.low %v2534_v62, %v2538_v3  ;;  %v11299_v3 = vld [vmem:[#allocation86_spill] sm:$0xff] }
 0x3b5   :  { %v9803_v32 = vadd.f32 %v7561_v11, %v11284_v21  ;;  %v2257_v4 = vpop.f32.mrb[123].mxu0  ;;  %v2542_v14 = vld [vmem:[%s11132_s7 + $0x308] sm:$0xff] }
 0x3b6   :  { %v9809_v36 = vadd.f32 %v2257_v4, %v11286_v53  ;;  %4974 = vmatpush1.bf16.msra.mxu1 %v2428_v31  ;;  %v2605_v4 = vld [vmem:[%s11132_s7 + $0x500] sm:$0xff]  ;;  %v2546_v53 = vld [vmem:[%s11132_s7 + $0x328] sm:$0xff] }
 0x3b7   :  { %5232 = vmatprep.subr.bf16.mxu1 %v11226_v19  ;;  %v2554_v2 = vld [vmem:[%s11132_s7 + $0x368] sm:$0xff] }
 0x3b9   :  { %4526 = vmatmul.mubr.bf16.gmra.mrb[216].mxu0 %v6880_v23  ;;  %4751 = vmatmul.mubr.bf16.gmra.mrb[32].mxu1 %v6818_v52  ;;  %v2609_v52 = vld [vmem:[%s11132_s7 + $0x520] sm:$0xff] }
 0x3ba   :  { %v7564_v29 = vpop.f32.mrb[124].mxu0  ;;  %4533 = vmatprep.mubr.bf16.mxu0 %v6889_v8  ;;  %4758 = vmatprep.mubr.bf16.mxu1 %v6827_v45  ;;  %v11295_v45 = vld [vmem:[#allocation82_spill] sm:$0xff] }
 0x3bb   :  { %v2270_v12 = vpop.f32.mrb[125].mxu0  ;;  %v9829_v13 = vadd.f32 %v7564_v29, %v11287_v40 }
 0x3bc   :  { %v7565_v15 = vpop.f32.mrb[126].mxu0  ;;  %v9835_v51 = vadd.f32 %v2270_v12, %v11289_v46  ;;  %v2642_v46 = vld [vmem:[%s11132_s7 + $0x628] sm:$0xff] }
 0x3bd   :  { %v9832_v44 = vadd.f32 %v7565_v15, %v11288_v25  ;;  %v2273_v49 = vpop.f32.mrb[127].mxu0  ;;  %v11297_v15 = vld [vmem:[#allocation80_spill] sm:$0xff]  ;;  %v11298_v25 = vld [vmem:[#allocation81_spill] sm:$0xff] }
 0x3be   :  { %v9838_v34 = vadd.f32 %v2273_v49, %v11290_v35 }
 0x3c1   :  { %4534 = vmatmul.mubr.bf16.gmra.mrb[220].mxu0 %v6888_v50  ;;  %4759 = vmatmul.mubr.bf16.gmra.mrb[36].mxu1 %v6826_v41  ;;  %v6913_v50 = vcombine.high %v2605_v4, %v2609_v52  ;;  %v6851_v41 = vcombine.high %v2542_v14, %v2546_v53 }
 0x3c2   :  { %v7568_v42 = vpop.f32.mrb[128].mxu0  ;;  %4541 = vmatprep.mubr.bf16.mxu0 %v6897_v58  ;;  %4766 = vmatprep.mubr.bf16.mxu1 %v6835_v22  ;;  %v2613_v22 = vld [vmem:[%s11132_s7 + $0x540] sm:$0xff] }
 0x3c3   :  { %v2286_v17 = vpop.f32.mrb[129].mxu0  ;;  %v9857_v28 = vadd.f32 %v7568_v42, %v11291_v48  ;;  %v11300_v48 = vld [vmem:[#allocation87_spill] sm:$0xff] }
 0x3c4   :  { %v7569_v61 = vpop.f32.mrb[130].mxu0  ;;  %v9863_v30 = vadd.f32 %v2286_v17, %v11293_v60  ;;  %v2550_v17 = vld [vmem:[%s11132_s7 + $0x348] sm:$0xff] }
 0x3c5   :  { %v9860_v39 = vadd.f32 %v7569_v61, %v11292_v38  ;;  %v2289_v31 = vpop.f32.mrb[131].mxu0  ;;  %v11301_v60 = vld [vmem:[#allocation84_spill] sm:$0xff] }
 0x3c6   :  { %v9866_v10 = vadd.f32 %v2289_v31, %v11294_v57 }
 0x3c9   :  { %4542 = vmatmul.mubr.bf16.gmra.mrb[224].mxu0 %v6896_v26  ;;  %4767 = vmatmul.mubr.bf16.gmra.mrb[40].mxu1 %v6834_v63  ;;  %v6912_v26 = vcombine.low %v2605_v4, %v2609_v52  ;;  %v6850_v63 = vcombine.low %v2542_v14, %v2546_v53  ;;  %v2621_v4 = vld [vmem:[%s11132_s7 + $0x580] sm:$0xff]  ;;  %v2558_v53 = vld [vmem:[%s11132_s7 + $0x388] sm:$0xff] }
 0x3ca   :  { %v7572_v21 = vpop.f32.mrb[132].mxu0  ;;  %4549 = vmatprep.mubr.bf16.mxu0 %v6905_v6  ;;  %4774 = vmatprep.mubr.bf16.mxu1 %v6843_v7  ;;  %v11302_v6 = vld [vmem:[#allocation85_spill] sm:$0xff]  ;;  %v2625_v14 = vld [vmem:[%s11132_s7 + $0x5a0] sm:$0xff] }
 0x3cb   :  { %v2302_v23 = vpop.f32.mrb[133].mxu0  ;;  %v9885_v29 = vadd.f32 %v7572_v21, %v11295_v45  ;;  %v6921_v21 = vcombine.high %v2613_v22, %v2617_v55  ;;  %v2638_v45 = vld [vmem:[%s11132_s7 + $0x608] sm:$0xff] }
 0x3cc   :  { %v7573_v8 = vpop.f32.mrb[134].mxu0  ;;  %v9891_v40 = vadd.f32 %v2302_v23, %v11297_v15  ;;  %v6859_v23 = vcombine.high %v2550_v17, %v2554_v2 }
 0x3cd   :  { %v9888_v12 = vadd.f32 %v7573_v8, %v11296_v16  ;;  %v2305_v56 = vpop.f32.mrb[135].mxu0  ;;  %v2697_v8 = vld [vmem:[%s11132_s7 + $0x7e0] sm:$0xff] }
 0x3ce   :  { %v9894_v49 = vadd.f32 %v2305_v56, %v11298_v25  ;;  %v2562_v56 = vld [vmem:[%s11132_s7 + $0x3a8] sm:$0xff]  ;;  %v11304_v25 = vld [vmem:[#allocation91_spill] sm:$0xff] }
 0x3d1   :  { %4550 = vmatmul.mubr.bf16.gmra.mrb[228].mxu0 %v6904_v24  ;;  %4775 = vmatmul.mubr.bf16.gmra.mrb[44].mxu1 %v6842_v18  ;;  %v11303_v18 = vld [vmem:[#allocation90_spill] sm:$0xff] }
 0x3d2   :  { %v7576_v58 = vpop.f32.mrb[136].mxu0  ;;  %4557 = vmatprep.mubr.bf16.mxu0 %v6913_v50  ;;  %4782 = vmatprep.mubr.bf16.mxu1 %v6851_v41 }
 0x3d3   :  { %v2318_v42 = vpop.f32.mrb[137].mxu0  ;;  %v9913_v61 = vadd.f32 %v7576_v58, %v11299_v3  ;;  %v6920_v58 = vcombine.low %v2613_v22, %v2617_v55  ;;  %v2629_v22 = vld [vmem:[%s11132_s7 + $0x5c0] sm:$0xff] }
 0x3d4   :  { %v7577_v62 = vpop.f32.mrb[138].mxu0  ;;  %v9919_v57 = vadd.f32 %v2318_v42, %v11301_v60  ;;  %v6858_v42 = vcombine.low %v2550_v17, %v2554_v2  ;;  %v2633_v17 = vld [vmem:[%s11132_s7 + $0x5e0] sm:$0xff]  ;;  %v2566_v2 = vld [vmem:[%s11132_s7 + $0x3c8] sm:$0xff] }
 0x3d5   :  { %v9916_v38 = vadd.f32 %v7577_v62, %v11300_v48  ;;  %v2321_v31 = vpop.f32.mrb[139].mxu0  ;;  %v11305_v62 = vld [vmem:[#allocation88_spill] sm:$0xff]  ;;  %v11306_v48 = vld [vmem:[#allocation89_spill] sm:$0xff] }
 0x3d6   :  { %v9922_v7 = vadd.f32 %v2321_v31, %v11302_v6  ;;  %v2689_v6 = vld [vmem:[%s11132_s7 + $0x7a0] sm:$0xff] }
 0x3d9   :  { %4558 = vmatmul.mubr.bf16.gmra.mrb[232].mxu0 %v6912_v26  ;;  %4783 = vmatmul.mubr.bf16.gmra.mrb[48].mxu1 %v6850_v63  ;;  %v6929_v26 = vcombine.high %v2621_v4, %v2625_v14  ;;  %v6867_v63 = vcombine.high %v2558_v53, %v2562_v56 }
 0x3da   :  { %v7580_v16 = vpop.f32.mrb[140].mxu0  ;;  %4565 = vmatprep.mubr.bf16.mxu0 %v6921_v21  ;;  %4790 = vmatprep.mubr.bf16.mxu1 %v6859_v23  ;;  %v2570_v23 = vld [vmem:[%s11132_s7 + $0x3e8] sm:$0xff] }
 0x3db   :  { %v2334_v52 = vpop.f32.mrb[141].mxu0  ;;  %v9941_v15 = vadd.f32 %v7580_v16, %v11303_v18 }
 0x3dc   :  { %v7581_v24 = vpop.f32.mrb[142].mxu0  ;;  %v9947_v3 = vadd.f32 %v2334_v52, %v11305_v62  ;;  %v11308_v62 = vld [vmem:[#allocation93_spill] sm:$0xff] }
 0x3dd   :  { %v9944_v50 = vadd.f32 %v7581_v24, %v11304_v25  ;;  %v2337_v41 = vpop.f32.mrb[143].mxu0  ;;  %v6928_v25 = vcombine.low %v2621_v4, %v2625_v14  ;;  %v2637_v4 = vld [vmem:[%s11132_s7 + $0x600] sm:$0xff] }
 0x3de   :  { %v9950_v31 = vadd.f32 %v2337_v41, %v11306_v48  ;;  %v6866_v41 = vcombine.low %v2558_v53, %v2562_v56  ;;  %v2641_v53 = vld [vmem:[%s11132_s7 + $0x620] sm:$0xff]  ;;  %v2574_v56 = vld [vmem:[%s11132_s7 + $0x408] sm:$0xff] }
 0x3df   :  { %v6945_v60 = vcombine.high %v2637_v4, %v2641_v53 }
 0x3e1   :  { %4566 = vmatmul.mubr.bf16.gmra.mrb[236].mxu0 %v6920_v58  ;;  %4791 = vmatmul.mubr.bf16.gmra.mrb[52].mxu1 %v6858_v42  ;;  %v11307_v58 = vld [vmem:[#allocation92_spill] sm:$0xff] }
 0x3e2   :  { %v7584_v21 = vpop.f32.mrb[144].mxu0  ;;  %4573 = vmatprep.mubr.bf16.mxu0 %v6929_v26  ;;  %4798 = vmatprep.mubr.bf16.mxu1 %v6867_v63  ;;  %v6937_v26 = vcombine.high %v2629_v22, %v2633_v17  ;;  %v6875_v63 = vcombine.high %v2566_v2, %v2570_v23 }
 0x3e3   :  { %v2350_v55 = vpop.f32.mrb[145].mxu0  ;;  %v9969_v52 = vadd.f32 %v7584_v21, %v9413_v0  ;;  %v2578_v21 = vld [vmem:[%s11132_s7 + $0x428] sm:$0xff] }
 0x3e4   :  { %v7585_v16 = vpop.f32.mrb[146].mxu0  ;;  %v9975_v42 = vadd.f32 %v2350_v55, %v11307_v58  ;;  %v1450_v55 = vpop.permute.xlu1 %1449  ;;  %v6936_v58 = vcombine.low %v2629_v22, %v2633_v17  ;;  %v6883_v0 = vcombine.high %v2574_v56, %v2578_v21  ;;  %v2582_v22 = vld [vmem:[%s11132_s7 + $0x448] sm:$0xff] }
 0x3e5   :  { %v9972_v24 = vadd.f32 %v7585_v16, %v9418_v27  ;;  %v2353_v18 = vpop.f32.mrb[147].mxu0  ;;  %v2586_v17 = vld [vmem:[%s11132_s7 + $0x468] sm:$0xff] }
 0x3e6   :  { %v9978_v48 = vadd.f32 %v2353_v18, %v11308_v62  ;;  %v6874_v62 = vcombine.low %v2566_v2, %v2570_v23  ;;  %v6944_v2 = vcombine.low %v2637_v4, %v2641_v53  ;;  %v6882_v23 = vcombine.low %v2574_v56, %v2578_v21  ;;  %v2594_v4 = vld [vmem:[%s11132_s7 + $0x4a8] sm:$0xff] }
 0x3e7   :  { %v6890_v56 = vcombine.low %v2582_v22, %v2586_v17 }
 0x3e9   :  { %4574 = vmatmul.mubr.bf16.gmra.mrb[240].mxu0 %v6928_v25  ;;  %4799 = vmatmul.mubr.bf16.gmra.mrb[56].mxu1 %v6866_v41 }
 0x3ea   :  { %v7588_v27 = vpop.f32.mrb[148].mxu0  ;;  %4581 = vmatprep.mubr.bf16.mxu0 %v6937_v26  ;;  %4806 = vmatprep.mubr.bf16.mxu1 %v6875_v63 }
 0x3eb   :  { %v2366_v14 = vpop.f32.mrb[149].mxu0  ;;  %v9997_v18 = vadd.f32 %v7588_v27, %v9467_v33  ;;  %v2653_v27 = vld [vmem:[%s11132_s7 + $0x680] sm:$0xff] }
 0x3ec   :  { %v7589_v16 = vpop.f32.mrb[150].mxu0  ;;  %v10002_v26 = vadd.f32 %v2366_v14, %v9444_v59  ;;  %v2645_v59 = vld [vmem:[%s11132_s7 + $0x640] sm:$0xff] }
 0x3ed   :  { %v9999_v25 = vadd.f32 %v7589_v16, %v1450_v55  ;;  %v2369_v41 = vpop.f32.mrb[151].mxu0  ;;  %v2657_v14 = vld [vmem:[%s11132_s7 + $0x6a0] sm:$0xff]  ;;  %v2590_v55 = vld [vmem:[%s11132_s7 + $0x488] sm:$0xff] }
 0x3ee   :  { %v10005_v63 = vadd.f32 %v2369_v41, %v9450_v9  ;;  %v2649_v9 = vld [vmem:[%s11132_s7 + $0x660] sm:$0xff]  ;;  %v6961_v21 = vcombine.high %v2653_v27, %v2657_v14  ;;  %v6899_v16 = vcombine.high %v2590_v55, %v2594_v4 }
 0x3ef   :  { %v6952_v53 = vcombine.low %v2645_v59, %v2649_v9  ;;  %v2661_v41 = vld [vmem:[%s11132_s7 + $0x6c0] sm:$0xff] }
 0x3f0   :  { %v2693_v33 = vld [vmem:[%s11132_s7 + $0x7c0] sm:$0xff] }
 0x3f1   :  { %4582 = vmatmul.mubr.bf16.gmra.mrb[244].mxu0 %v6936_v58  ;;  %4807 = vmatmul.mubr.bf16.gmra.mrb[60].mxu1 %v6874_v62  ;;  %v2665_v58 = vld [vmem:[%s11132_s7 + $0x6e0] sm:$0xff]  ;;  %v2598_v62 = vld [vmem:[%s11132_s7 + $0x4c8] sm:$0xff] }
 0x3f2   :  { %4589 = vmatprep.mubr.bf16.mxu0 %v6945_v60  ;;  %4814 = vmatprep.mubr.bf16.mxu1 %v6883_v0  ;;  %v6953_v60 = vcombine.high %v2645_v59, %v2649_v9  ;;  %v6891_v0 = vcombine.high %v2582_v22, %v2586_v17  ;;  %v2602_v59 = vld [vmem:[%s11132_s7 + $0x4e8] sm:$0xff]  ;;  %v6960_v9 = vcombine.low %v2653_v27, %v2657_v14 }
 0x3f3   :  { %v6898_v22 = vcombine.low %v2590_v55, %v2594_v4  ;;  %v6969_v17 = vcombine.high %v2661_v41, %v2665_v58  ;;  %v2610_v27 = vld [vmem:[%s11132_s7 + $0x528] sm:$0xff]  ;;  %v6968_v4 = vcombine.low %v2661_v41, %v2665_v58 }
 0x3f4   :  { %v2614_v41 = vld [vmem:[%s11132_s7 + $0x548] sm:$0xff] }
 0x3f5   :  { %v2618_v58 = vld [vmem:[%s11132_s7 + $0x568] sm:$0xff] }
 0x3f9   :  { %4590 = vmatmul.mubr.bf16.gmra.mrb[248].mxu0 %v6944_v2  ;;  %4815 = vmatmul.mubr.bf16.gmra.mrb[64].mxu1 %v6882_v23  ;;  %v6907_v2 = vcombine.high %v2598_v62, %v2602_v59  ;;  %v2669_v23 = vld [vmem:[%s11132_s7 + $0x700] sm:$0xff] }
 0x3fa   :  { %4597 = vmatprep.mubr.bf16.mxu0 %v6953_v60  ;;  %4822 = vmatprep.mubr.bf16.mxu1 %v6891_v0  ;;  %v2673_v60 = vld [vmem:[%s11132_s7 + $0x720] sm:$0xff]  ;;  %v2606_v0 = vld [vmem:[%s11132_s7 + $0x508] sm:$0xff] }
 0x401   :  { %4598 = vmatmul.mubr.bf16.gmra.mrb[252].mxu0 %v6952_v53  ;;  %4823 = vmatmul.mubr.bf16.gmra.mrb[68].mxu1 %v6890_v56  ;;  %v6906_v53 = vcombine.low %v2598_v62, %v2602_v59 }
 0x402   :  { %4605 = vmatprep.mubr.bf16.mxu0 %v6961_v21  ;;  %4830 = vmatprep.mubr.bf16.mxu1 %v6899_v16  ;;  %v6977_v21 = vcombine.high %v2669_v23, %v2673_v60  ;;  %v6915_v16 = vcombine.high %v2606_v0, %v2610_v27 }
 0x409   :  { %4606 = vmatmul.mubr.bf16.gmra.mrb[0].mxu0 %v6960_v9  ;;  %4831 = vmatmul.mubr.bf16.gmra.mrb[72].mxu1 %v6898_v22  ;;  %v2677_v22 = vld [vmem:[%s11132_s7 + $0x740] sm:$0xff] }
 0x40a   :  { %4613 = vmatprep.mubr.bf16.mxu0 %v6969_v17  ;;  %4838 = vmatprep.mubr.bf16.mxu1 %v6907_v2  ;;  %v2681_v17 = vld [vmem:[%s11132_s7 + $0x760] sm:$0xff]  ;;  %v6976_v2 = vcombine.low %v2669_v23, %v2673_v60  ;;  %v2622_v23 = vld [vmem:[%s11132_s7 + $0x588] sm:$0xff] }
 0x40b   :  { %v2626_v60 = vld [vmem:[%s11132_s7 + $0x5a8] sm:$0xff] }
 0x40c   :  { %v10059_v14 = vpop.f32.mrb[152].mxu0 }
 0x40d   :  { %v4401_v55 = vpop.f32.mrb[153].mxu0 }
 0x40e   :  { %v10061_v56 = vpop.f32.mrb[154].mxu0  ;;  %v6914_v55 = vcombine.low %v2606_v0, %v2610_v27 }
 0x40f   :  { %v4404_v9 = vpop.f32.mrb[155].mxu0 }
 0x410   :  { %v2685_v9 = vld [vmem:[%s11132_s7 + $0x780] sm:$0xff] }
 0x411   :  { %4614 = vmatmul.mubr.bf16.gmra.mrb[4].mxu0 %v6968_v4  ;;  %4839 = vmatmul.mubr.bf16.gmra.mrb[76].mxu1 %v6906_v53  ;;  %v6985_v53 = vcombine.high %v2677_v22, %v2681_v17 }
 0x412   :  { %4621 = vmatprep.mubr.bf16.mxu0 %v6977_v21  ;;  %4846 = vmatprep.mubr.bf16.mxu1 %v6915_v16  ;;  %v6923_v21 = vcombine.high %v2614_v41, %v2618_v58 }
 0x414   :  { %v10075_v62 = vpop.f32.mrb[156].mxu0 }
 0x415   :  { %v4409_v59 = vpop.f32.mrb[157].mxu0 }
 0x416   :  { %v10077_v4 = vpop.f32.mrb[158].mxu0  ;;  %v6984_v59 = vcombine.low %v2677_v22, %v2681_v17  ;;  %v2630_v22 = vld [vmem:[%s11132_s7 + $0x5c8] sm:$0xff] }
 0x417   :  { %v4412_v16 = vpop.f32.mrb[159].mxu0  ;;  %v2634_v17 = vld [vmem:[%s11132_s7 + $0x5e8] sm:$0xff] }
 0x419   :  { %4622 = vmatmul.mubr.bf16.gmra.mrb[8].mxu0 %v6976_v2  ;;  %4847 = vmatmul.mubr.bf16.gmra.mrb[80].mxu1 %v6914_v55  ;;  %v6922_v2 = vcombine.low %v2614_v41, %v2618_v58 }
 0x41a   :  { %4629 = vmatprep.mubr.bf16.mxu0 %v6985_v53  ;;  %4854 = vmatprep.mubr.bf16.mxu1 %v6923_v21  ;;  %v6993_v53 = vcombine.high %v2685_v9, %v2689_v6  ;;  %v6931_v21 = vcombine.high %v2622_v23, %v2626_v60 }
 0x41c   :  { %v10091_v0 = vpop.f32.mrb[160].mxu0 }
 0x41d   :  { %v4417_v27 = vpop.f32.mrb[161].mxu0 }
 0x41e   :  { %v10093_v55 = vpop.f32.mrb[162].mxu0  ;;  %v6992_v27 = vcombine.low %v2685_v9, %v2689_v6  ;;  %v7000_v9 = vcombine.low %v2693_v33, %v2697_v8 }
 0x41f   :  { %v4420_v16 = vpop.f32.mrb[163].mxu0 }
 0x421   :  { %4630 = vmatmul.mubr.bf16.gmra.mrb[12].mxu0 %v6984_v59  ;;  %4855 = vmatmul.mubr.bf16.gmra.mrb[84].mxu1 %v6922_v2  ;;  %v6930_v59 = vcombine.low %v2622_v23, %v2626_v60  ;;  %v6938_v23 = vcombine.low %v2630_v22, %v2634_v17 }
 0x422   :  { %4637 = vmatprep.mubr.bf16.mxu0 %v6993_v53  ;;  %4862 = vmatprep.mubr.bf16.mxu1 %v6931_v21  ;;  %v7001_v53 = vcombine.high %v2693_v33, %v2697_v8  ;;  %v6939_v21 = vcombine.high %v2630_v22, %v2634_v17  ;;  %v6946_v8 = vcombine.low %v2638_v45, %v2642_v46 }
 0x424   :  { %v10107_v41 = vpop.f32.mrb[164].mxu0 }
 0x425   :  { %v4425_v58 = vpop.f32.mrb[165].mxu0 }
 0x426   :  { %v10109_v2 = vpop.f32.mrb[166].mxu0 }
 0x427   :  { %v4428_v16 = vpop.f32.mrb[167].mxu0 }
 0x428   :  { %v6947_v16 = vcombine.high %v2638_v45, %v2642_v46 }
 0x429   :  { %4638 = vmatmul.mubr.bf16.gmra.mrb[16].mxu0 %v6992_v27  ;;  %4863 = vmatmul.mubr.bf16.gmra.mrb[88].mxu1 %v6930_v59  ;;  %v2646_v59 = vld [vmem:[%s11132_s7 + $0x648] sm:$0xff] }
 0x42a   :  { %4645 = vmatprep.mubr.bf16.mxu0 %v7001_v53  ;;  %4870 = vmatprep.mubr.bf16.mxu1 %v6939_v21  ;;  %v2650_v53 = vld [vmem:[%s11132_s7 + $0x668] sm:$0xff] }
 0x42b   :  { %v6955_v22 = vcombine.high %v2646_v59, %v2650_v53  ;;  %v6954_v35 = vcombine.low %v2646_v59, %v2650_v53 }
 0x42c   :  { %v10117_v58 = vpop.f32.mrb[168].mxu0 }
 0x42d   :  { %v4433_v6 = vpop.f32.mrb[169].mxu0 }
 0x42e   :  { %v10119_v60 = vpop.f32.mrb[170].mxu0 }
 0x42f   :  { %v4436_v27 = vpop.f32.mrb[171].mxu0 }
 0x431   :  { %4646 = vmatmul.mubr.bf16.gmra.mrb[20].mxu0 %v7000_v9  ;;  %4871 = vmatmul.mubr.bf16.gmra.mrb[92].mxu1 %v6938_v23  ;;  %v2654_v9 = vld [vmem:[%s11132_s7 + $0x688] sm:$0xff] }
 0x432   :  { %4878 = vmatprep.mubr.bf16.mxu1 %v6947_v16  ;;  %v2658_v23 = vld [vmem:[%s11132_s7 + $0x6a8] sm:$0xff] }
 0x433   :  { %v6963_v46 = vcombine.high %v2654_v9, %v2658_v23  ;;  %v6962_v47 = vcombine.low %v2654_v9, %v2658_v23 }
 0x434   :  { %v10127_v21 = vpop.f32.mrb[172].mxu0 }
 0x435   :  { %v4441_v6 = vpop.f32.mrb[173].mxu0 }
 0x436   :  { %v10129_v33 = vpop.f32.mrb[174].mxu0 }
 0x437   :  { %v4444_v17 = vpop.f32.mrb[175].mxu0 }
 0x439   :  { %4879 = vmatmul.mubr.bf16.gmra.mrb[96].mxu1 %v6946_v8  ;;  %v2662_v8 = vld [vmem:[%s11132_s7 + $0x6c8] sm:$0xff] }
 0x43a   :  { %4886 = vmatprep.mubr.bf16.mxu1 %v6955_v22  ;;  %v2666_v22 = vld [vmem:[%s11132_s7 + $0x6e8] sm:$0xff] }
 0x43b   :  { %v6971_v59 = vcombine.high %v2662_v8, %v2666_v22  ;;  %v6970_v1 = vcombine.low %v2662_v8, %v2666_v22 }
 0x43c   :  { %v10137_v16 = vpop.f32.mrb[176].mxu0 }
 0x43d   :  { %v4449_v27 = vpop.f32.mrb[177].mxu0 }
 0x43e   :  { %v10139_v6 = vpop.f32.mrb[178].mxu0 }
 0x43f   :  { %v4452_v45 = vpop.f32.mrb[179].mxu0 }
 0x441   :  { %4887 = vmatmul.mubr.bf16.gmra.mrb[100].mxu1 %v6954_v35  ;;  %v2670_v35 = vld [vmem:[%s11132_s7 + $0x708] sm:$0xff] }
 0x442   :  { %4894 = vmatprep.mubr.bf16.mxu1 %v6963_v46  ;;  %v2674_v46 = vld [vmem:[%s11132_s7 + $0x728] sm:$0xff] }
 0x443   :  { %v6979_v9 = vcombine.high %v2670_v35, %v2674_v46  ;;  %v6978_v43 = vcombine.low %v2670_v35, %v2674_v46 }
 0x444   :  { %v10147_v17 = vpop.f32.mrb[180].mxu0 }
 0x445   :  { %v4457_v11 = vpop.f32.mrb[181].mxu0 }
 0x446   :  { %v10149_v27 = vpop.f32.mrb[182].mxu0 }
 0x447   :  { %v4460_v53 = vpop.f32.mrb[183].mxu0 }
 0x449   :  { %4895 = vmatmul.mubr.bf16.gmra.mrb[104].mxu1 %v6962_v47  ;;  %v2678_v47 = vld [vmem:[%s11132_s7 + $0x748] sm:$0xff] }
 0x44a   :  { %4902 = vmatprep.mubr.bf16.mxu1 %v6971_v59  ;;  %v2682_v59 = vld [vmem:[%s11132_s7 + $0x768] sm:$0xff] }
 0x44b   :  { %v6987_v8 = vcombine.high %v2678_v47, %v2682_v59 }
 0x44c   :  { %v10157_v45 = vpop.f32.mrb[184].mxu0 }
 0x44d   :  { %v4465_v54 = vpop.f32.mrb[185].mxu0 }
 0x44e   :  { %v10159_v11 = vpop.f32.mrb[186].mxu0 }
 0x44f   :  { %11309 = vst [vmem:[#allocation15_spill] sm:$0xff] %v10159_v11  ;;  %v4468_v23 = vpop.f32.mrb[187].mxu0 }
 0x451   :  { %4903 = vmatmul.mubr.bf16.gmra.mrb[108].mxu1 %v6970_v1  ;;  %v2686_v1 = vld [vmem:[%s11132_s7 + $0x788] sm:$0xff] }
 0x452   :  { %4910 = vmatprep.mubr.bf16.mxu1 %v6979_v9  ;;  %v2690_v9 = vld [vmem:[%s11132_s7 + $0x7a8] sm:$0xff] }
 0x453   :  { %v6995_v35 = vcombine.high %v2686_v1, %v2690_v9 }
 0x454   :  { %v10167_v53 = vpop.f32.mrb[188].mxu0 }
 0x455   :  { %11310 = vst [vmem:[#allocation14_spill] sm:$0xff] %v10167_v53  ;;  %v4473_v37 = vpop.f32.mrb[189].mxu0  ;;  %v6986_v53 = vcombine.low %v2678_v47, %v2682_v59 }
 0x456   :  { %v10169_v54 = vpop.f32.mrb[190].mxu0 }
 0x457   :  { %11311 = vst [vmem:[#allocation13_spill] sm:$0xff] %v10169_v54  ;;  %v4476_v22 = vpop.f32.mrb[191].mxu0 }
 0x459   :  { %4911 = vmatmul.mubr.bf16.gmra.mrb[112].mxu1 %v6978_v43  ;;  %v2694_v43 = vld [vmem:[%s11132_s7 + $0x7c8] sm:$0xff] }
 0x45a   :  { %4918 = vmatprep.mubr.bf16.mxu1 %v6987_v8  ;;  %v2698_v8 = vld [vmem:[%s11132_s7 + $0x7e8] sm:$0xff] }
 0x45b   :  { %v7003_v47 = vcombine.high %v2694_v43, %v2698_v8 }
 0x45c   :  { %v10177_v23 = vpop.f32.mrb[192].mxu0 }
 0x45d   :  { %11312 = vst [vmem:[#allocation12_spill] sm:$0xff] %v10177_v23  ;;  %v4481_v11 = vpop.f32.mrb[193].mxu0  ;;  %v6994_v23 = vcombine.low %v2686_v1, %v2690_v9 }
 0x45e   :  { %v10179_v37 = vpop.f32.mrb[194].mxu0 }
 0x45f   :  { %11313 = vst [vmem:[#allocation19_spill] sm:$0xff] %v10179_v37  ;;  %v4484_v46 = vpop.f32.mrb[195].mxu0 }
 0x461   :  { %4919 = vmatmul.mubr.bf16.gmra.mrb[116].mxu1 %v6986_v53  ;;  %v2447_v53 = vld [vmem:[%s11132_s7 + $0x10] sm:$0xff] }
 0x462   :  { %4926 = vmatprep.mubr.bf16.mxu1 %v6995_v35  ;;  %v2451_v35 = vld [vmem:[%s11132_s7 + $0x30] sm:$0xff] }
 0x463   :  { %v6757_v1 = vcombine.high %v2447_v53, %v2451_v35 }
 0x464   :  { %v10187_v22 = vpop.f32.mrb[196].mxu0 }
 0x465   :  { %11314 = vst [vmem:[#allocation18_spill] sm:$0xff] %v10187_v22  ;;  %v4489_v54 = vpop.f32.mrb[197].mxu0  ;;  %v7002_v22 = vcombine.low %v2694_v43, %v2698_v8 }
 0x466   :  { %v10189_v11 = vpop.f32.mrb[198].mxu0 }
 0x467   :  { %11315 = vst [vmem:[#allocation17_spill] sm:$0xff] %v10189_v11  ;;  %v4492_v59 = vpop.f32.mrb[199].mxu0 }
 0x469   :  { %4927 = vmatmul.mubr.bf16.gmra.mrb[120].mxu1 %v6994_v23  ;;  %v2455_v23 = vld [vmem:[%s11132_s7 + $0x50] sm:$0xff] }
 0x46a   :  { %4934 = vmatprep.mubr.bf16.mxu1 %v7003_v47  ;;  %v2459_v47 = vld [vmem:[%s11132_s7 + $0x70] sm:$0xff] }
 0x46b   :  { %v6765_v43 = vcombine.high %v2455_v23, %v2459_v47 }
 0x46c   :  { %v10197_v46 = vpop.f32.mrb[200].mxu0 }
 0x46d   :  { %11316 = vst [vmem:[#allocation16_spill] sm:$0xff] %v10197_v46  ;;  %v4497_v37 = vpop.f32.mrb[201].mxu0  ;;  %v6756_v46 = vcombine.low %v2447_v53, %v2451_v35 }
 0x46e   :  { %v10199_v54 = vpop.f32.mrb[202].mxu0 }
 0x46f   :  { %v4500_v9 = vpop.f32.mrb[203].mxu0 }
 0x470   :  { %v6764_v9 = vcombine.low %v2455_v23, %v2459_v47  ;;  %v2471_v23 = vld [vmem:[%s11132_s7 + $0xd0] sm:$0xff] }
 0x471   :  { %4935 = vmatmul.mubr.bf16.gmra.mrb[124].mxu1 %v7002_v22  ;;  %v11317_v22 = vpack.c.bf16 %v9809_v36, %v9806_v20 }
 0x472   :  { %4975 = vmatprep.mubr.bf16.mxu1 %v6757_v1  ;;  %v2463_v1 = vld [vmem:[%s11132_s7 + $0x90] sm:$0xff] }
 0x474   :  { %v10207_v59 = vpop.f32.mrb[204].mxu0 }
 0x475   :  { %v4505_v11 = vpop.f32.mrb[205].mxu0 }
 0x476   :  { %v10209_v37 = vpop.f32.mrb[206].mxu0  ;;  %v2467_v11 = vld [vmem:[%s11132_s7 + $0xb0] sm:$0xff] }
 0x477   :  { %v4508_v8 = vpop.f32.mrb[207].mxu0  ;;  %v6773_v36 = vcombine.high %v2463_v1, %v2467_v11 }
 0x478   :  { %v11319_v8 = vpack.c.bf16 %v9838_v34, %v9835_v51 }
 0x479   :  { %4976 = vmatmul.mubr.bf16.vlgmr.msra.gmra.mrb[0].mxu1 %v6756_v46  ;;  %v11318_v46 = vpack.c.bf16 %v9803_v32, %v9800_v5  ;;  %v2475_v5 = vld [vmem:[%s11132_s7 + $0xf0] sm:$0xff] }
 0x47a   :  { %5233 = vmatpush1.bf16.msra.mxu1 %v11317_v22  ;;  %4983 = vmatprep.mubr.bf16.mxu1 %v6765_v43  ;;  %v6772_v22 = vcombine.low %v2463_v1, %v2467_v11  ;;  %v6781_v34 = vcombine.high %v2471_v23, %v2475_v5  ;;  %v2479_v1 = vld [vmem:[%s11132_s7 + $0x110] sm:$0xff] }
 0x47b   :  { %5234 = vmatprep.subr.bf16.mxu1 %v11226_v19 }
 0x47c   :  { %v10221_v53 = vpop.f32.mrb[208].mxu0 }
 0x47d   :  { %v4513_v35 = vpop.f32.mrb[209].mxu0 }
 0x47e   :  { %5235 = vmatpush1.bf16.msra.mxu1 %v11318_v46  ;;  %v10226_v20 = vpop.f32.mrb[210].mxu0  ;;  %v11320_v35 = vpack.c.bf16 %v9832_v44, %v9829_v13  ;;  %v11321_v46 = vpack.c.bf16 %v9866_v10, %v9863_v30  ;;  %v2483_v13 = vld [vmem:[%s11132_s7 + $0x130] sm:$0xff] }
 0x47f   :  { %5236 = vmatprep.subr.bf16.mxu1 %v11226_v19  ;;  %v4516_v43 = vpop.f32.mrb[211].mxu0  ;;  %v6789_v10 = vcombine.high %v2479_v1, %v2483_v13 }
 0x480   :  { %v11322_v43 = vpack.c.bf16 %v9860_v39, %v9857_v28  ;;  %v2491_v28 = vld [vmem:[%s11132_s7 + $0x170] sm:$0xff] }
 0x481   :  { %4984 = vmatmul.mubr.bf16.gmra.mrb[4].mxu1 %v6764_v9 }
 0x482   :  { %5237 = vmatpush1.bf16.msra.mxu1 %v11319_v8  ;;  %4991 = vmatprep.mubr.bf16.mxu1 %v6773_v36  ;;  %v6780_v36 = vcombine.low %v2471_v23, %v2475_v5  ;;  %v2487_v23 = vld [vmem:[%s11132_s7 + $0x150] sm:$0xff] }
 0x483   :  { %5238 = vmatprep.subr.bf16.mxu1 %v11226_v19 }
 0x484   :  { %v10239_v32 = vpop.f32.mrb[212].mxu0 }
 0x485   :  { %v4521_v47 = vpop.f32.mrb[213].mxu0 }
 0x486   :  { %5239 = vmatpush1.bf16.msra.mxu1 %v11320_v35  ;;  %v10244_v51 = vpop.f32.mrb[214].mxu0  ;;  %v11323_v47 = vpack.c.bf16 %v9894_v49, %v9891_v40  ;;  %v11324_v35 = vpack.c.bf16 %v9888_v12, %v9885_v29  ;;  %v6797_v49 = vcombine.high %v2487_v23, %v2491_v28  ;;  %v2499_v29 = vld [vmem:[%s11132_s7 + $0x1b0] sm:$0xff] }
 0x487   :  { %5240 = vmatprep.subr.bf16.mxu1 %v11226_v19  ;;  %v4524_v9 = vpop.f32.mrb[215].mxu0 }
 0x488   :  { %v11325_v9 = vpack.c.bf16 %v9922_v7, %v9919_v57 }
 0x489   :  { %4992 = vmatmul.mubr.bf16.gmra.mrb[8].mxu1 %v6772_v22  ;;  %v6788_v22 = vcombine.low %v2479_v1, %v2483_v13  ;;  %v6796_v13 = vcombine.low %v2487_v23, %v2491_v28  ;;  %v11328_v23 = vpack.c.bf16 %v9944_v50, %v9941_v15  ;;  %v2515_v15 = vld [vmem:[%s11132_s7 + $0x230] sm:$0xff] }
 0x48a   :  { %5241 = vmatpush1.bf16.msra.mxu1 %v11321_v46  ;;  %4999 = vmatprep.mubr.bf16.mxu1 %v6781_v34  ;;  %v2495_v46 = vld [vmem:[%s11132_s7 + $0x190] sm:$0xff] }
 0x48b   :  { %5242 = vmatprep.subr.bf16.mxu1 %v11226_v19  ;;  %v6805_v7 = vcombine.high %v2495_v46, %v2499_v29 }
 0x48c   :  { %v10257_v44 = vpop.f32.mrb[216].mxu0 }
 0x48d   :  { %v4529_v11 = vpop.f32.mrb[217].mxu0 }
 0x48e   :  { %5243 = vmatpush1.bf16.msra.mxu1 %v11322_v43  ;;  %v10262_v30 = vpop.f32.mrb[218].mxu0  ;;  %v11326_v11 = vpack.c.bf16 %v9916_v38, %v9913_v61  ;;  %v11327_v43 = vpack.c.bf16 %v9950_v31, %v9947_v3  ;;  %v2507_v61 = vld [vmem:[%s11132_s7 + $0x1f0] sm:$0xff] }
 0x48f   :  { %5244 = vmatprep.subr.bf16.mxu1 %v11226_v19  ;;  %v4532_v8 = vpop.f32.mrb[219].mxu0 }
 0x491   :  { %5000 = vmatmul.mubr.bf16.gmra.mrb[12].mxu1 %v6780_v36 }
 0x492   :  { %5245 = vmatpush1.bf16.msra.mxu1 %v11323_v47  ;;  %5007 = vmatprep.mubr.bf16.mxu1 %v6789_v10  ;;  %v2503_v10 = vld [vmem:[%s11132_s7 + $0x1d0] sm:$0xff]  ;;  %v6804_v47 = vcombine.low %v2495_v46, %v2499_v29  ;;  %v11332_v46 = vpack.c.bf16 %v10005_v63, %v10002_v26 }
 0x493   :  { %5246 = vmatprep.subr.bf16.mxu1 %v11226_v19  ;;  %v6813_v31 = vcombine.high %v2503_v10, %v2507_v61  ;;  %v2519_v29 = vld [vmem:[%s11132_s7 + $0x250] sm:$0xff] }
 0x494   :  { %v10275_v39 = vpop.f32.mrb[220].mxu0 }
 0x495   :  { %v4537_v5 = vpop.f32.mrb[221].mxu0 }
 0x496   :  { %5247 = vmatpush1.bf16.msra.mxu1 %v11324_v35  ;;  %v10280_v40 = vpop.f32.mrb[222].mxu0  ;;  %v11329_v5 = vpack.c.bf16 %v9978_v48, %v9975_v42 }
 0x497   :  { %5248 = vmatprep.subr.bf16.mxu1 %v11226_v19  ;;  %v4540_v34 = vpop.f32.mrb[223].mxu0 }
 0x498   :  { %v11330_v34 = vpack.c.bf16 %v9972_v24, %v9969_v52  ;;  %v2523_v52 = vld [vmem:[%s11132_s7 + $0x270] sm:$0xff] }
 0x499   :  { %5008 = vmatmul.mubr.bf16.gmra.mrb[16].mxu1 %v6788_v22  ;;  %v2511_v22 = vld [vmem:[%s11132_s7 + $0x210] sm:$0xff]  ;;  %v6829_v63 = vcombine.high %v2519_v29, %v2523_v52 }
 0x49a   :  { %5249 = vmatpush1.bf16.msra.mxu1 %v11325_v9  ;;  %5015 = vmatprep.mubr.bf16.mxu1 %v6797_v49  ;;  %v6812_v49 = vcombine.low %v2503_v10, %v2507_v61  ;;  %v6821_v48 = vcombine.high %v2511_v22, %v2515_v15  ;;  %v6828_v61 = vcombine.low %v2519_v29, %v2523_v52 }
 0x49b   :  { %5250 = vmatprep.subr.bf16.mxu1 %v11226_v19 }
 0x49c   :  { %v10293_v12 = vpop.f32.mrb[224].mxu0 }
 0x49d   :  { %v4545_v1 = vpop.f32.mrb[225].mxu0 }
 0x49e   :  { %5251 = vmatpush1.bf16.msra.mxu1 %v11326_v11  ;;  %v10298_v57 = vpop.f32.mrb[226].mxu0  ;;  %v11334_v11 = vpack.c.bf16 %v9999_v25, %v9997_v18 }
 0x49f   :  { %5252 = vmatprep.subr.bf16.mxu1 %v11226_v19  ;;  %v4548_v36 = vpop.f32.mrb[227].mxu0 }
 0x4a0   :  { %v2531_v36 = vld [vmem:[%s11132_s7 + $0x2b0] sm:$0xff] }
 0x4a1   :  { %5016 = vmatmul.mubr.bf16.gmra.mrb[20].mxu1 %v6796_v13  ;;  %v6820_v13 = vcombine.low %v2511_v22, %v2515_v15 }
 0x4a2   :  { %5253 = vmatpush1.bf16.msra.mxu1 %v11327_v43  ;;  %5023 = vmatprep.mubr.bf16.mxu1 %v6805_v7  ;;  %v2527_v7 = vld [vmem:[%s11132_s7 + $0x290] sm:$0xff] }
 0x4a3   :  { %5254 = vmatprep.subr.bf16.mxu1 %v11226_v19  ;;  %v6837_v25 = vcombine.high %v2527_v7, %v2531_v36 }
 0x4a4   :  { %v10311_v38 = vpop.f32.mrb[228].mxu0 }
 0x4a5   :  { %v4553_v8 = vpop.f32.mrb[229].mxu0 }
 0x4a6   :  { %5255 = vmatpush1.bf16.msra.mxu1 %v11328_v23  ;;  %v10316_v3 = vpop.f32.mrb[230].mxu0  ;;  %v2539_v23 = vld [vmem:[%s11132_s7 + $0x2f0] sm:$0xff] }
 0x4a7   :  { %5256 = vmatprep.subr.bf16.mxu1 %v11226_v19  ;;  %v4556_v28 = vpop.f32.mrb[231].mxu0 }
 0x4a9   :  { %5024 = vmatmul.mubr.bf16.gmra.mrb[24].mxu1 %v6804_v47  ;;  %v2535_v47 = vld [vmem:[%s11132_s7 + $0x2d0] sm:$0xff] }
 0x4aa   :  { %5257 = vmatpush1.bf16.msra.mxu1 %v11329_v5  ;;  %5031 = vmatprep.mubr.bf16.mxu1 %v6813_v31  ;;  %v6836_v5 = vcombine.low %v2527_v7, %v2531_v36  ;;  %v6845_v15 = vcombine.high %v2535_v47, %v2539_v23 }
 0x4ab   :  { %5258 = vmatprep.subr.bf16.mxu1 %v11226_v19 }
 0x4ac   :  { %v10329_v50 = vpop.f32.mrb[232].mxu0 }
 0x4ad   :  { %v4561_v35 = vpop.f32.mrb[233].mxu0 }
 0x4ae   :  { %5259 = vmatpush1.bf16.msra.mxu1 %v11330_v34  ;;  %v10334_v42 = vpop.f32.mrb[234].mxu0  ;;  %v2547_v34 = vld [vmem:[%s11132_s7 + $0x330] sm:$0xff] }
 0x4af   :  { %11331 = vst [vmem:[#allocation23_spill] sm:$0xff] %v10334_v42  ;;  %5260 = vmatprep.subr.bf16.mxu1 %v11226_v19  ;;  %v4564_v9 = vpop.f32.mrb[235].mxu0 }
 0x4b1   :  { %5032 = vmatmul.mubr.bf16.gmra.mrb[28].mxu1 %v6812_v49  ;;  %v2543_v49 = vld [vmem:[%s11132_s7 + $0x310] sm:$0xff] }
 0x4b2   :  { %5261 = vmatpush1.bf16.msra.mxu1 %v11332_v46  ;;  %5039 = vmatprep.mubr.bf16.mxu1 %v6821_v48  ;;  %v6844_v46 = vcombine.low %v2535_v47, %v2539_v23  ;;  %v6853_v52 = vcombine.high %v2543_v49, %v2547_v34  ;;  %v6852_v7 = vcombine.low %v2543_v49, %v2547_v34  ;;  %v2567_v49 = vld [vmem:[%s11132_s7 + $0x3d0] sm:$0xff] }
 0x4b3   :  { %5262 = vmatprep.subr.bf16.mxu1 %v11226_v19  ;;  %v2571_v34 = vld [vmem:[%s11132_s7 + $0x3f0] sm:$0xff] }
 0x4b4   :  { %v10347_v24 = vpop.f32.mrb[236].mxu0 }
 0x4b5   :  { %11333 = vst [vmem:[#allocation22_spill] sm:$0xff] %v10347_v24  ;;  %v4569_v1 = vpop.f32.mrb[237].mxu0 }
 0x4b6   :  { %5263 = vmatpush1.bf16.msra.mxu1 %v11334_v11  ;;  %v10352_v26 = vpop.f32.mrb[238].mxu0  ;;  %v2555_v11 = vld [vmem:[%s11132_s7 + $0x370] sm:$0xff] }
 0x4b7   :  { %11335 = vst [vmem:[#allocation21_spill] sm:$0xff] %v10352_v26  ;;  %v4572_v19 = vpop.f32.mrb[239].mxu0 }
 0x4b9   :  { %5040 = vmatmul.mubr.bf16.gmra.mrb[32].mxu1 %v6820_v13  ;;  %v2551_v13 = vld [vmem:[%s11132_s7 + $0x350] sm:$0xff] }
 0x4ba   :  { %5047 = vmatprep.mubr.bf16.mxu1 %v6829_v63 }
 0x4bc   :  { %v10360_v43 = vpop.f32.mrb[240].mxu0 }
 0x4bd   :  { %11336 = vst [vmem:[#allocation20_spill] sm:$0xff] %v10360_v43  ;;  %v4577_v10 = vpop.f32.mrb[241].mxu0 }
 0x4be   :  { %v10362_v18 = vpop.f32.mrb[242].mxu0  ;;  %v6861_v10 = vcombine.high %v2551_v13, %v2555_v11 }
 0x4bf   :  { %11337 = vst [vmem:[#allocation27_spill] sm:$0xff] %v10362_v18  ;;  %v4580_v8 = vpop.f32.mrb[243].mxu0  ;;  %v8066_v18 = vld [vmem:[#allocation6 + $0x4] ss:$16 sps:$4 sm:$0xff]  }
 0x4c0   :  { %v2563_v8 = vld [vmem:[%s11132_s7 + $0x3b0] sm:$0xff]  ;;  %6225 = vmatprep.mubr.bf16.mxu0 %v8066_v18 }
 0x4c1   :  { %5048 = vmatmul.mubr.bf16.gmra.mrb[36].mxu1 %v6828_v61 }
 0x4c2   :  { %5055 = vmatprep.mubr.bf16.mxu1 %v6837_v25  ;;  %v2559_v25 = vld [vmem:[%s11132_s7 + $0x390] sm:$0xff] }
 0x4c4   :  { %v10370_v31 = vpop.f32.mrb[244].mxu0 }
 0x4c5   :  { %11338 = vst [vmem:[#allocation26_spill] sm:$0xff] %v10370_v31  ;;  %v4585_v28 = vpop.f32.mrb[245].mxu0 }
 0x4c6   :  { %v10372_v22 = vpop.f32.mrb[246].mxu0  ;;  %v6860_v28 = vcombine.low %v2551_v13, %v2555_v11  ;;  %v6877_v13 = vcombine.high %v2567_v49, %v2571_v34 }
 0x4c7   :  { %11339 = vst [vmem:[#allocation25_spill] sm:$0xff] %v10372_v22  ;;  %v4588_v35 = vpop.f32.mrb[247].mxu0 }
 0x4c9   :  { %5056 = vmatmul.mubr.bf16.gmra.mrb[40].mxu1 %v6836_v5 }
 0x4ca   :  { %5063 = vmatprep.mubr.bf16.mxu1 %v6845_v15  ;;  %v6869_v15 = vcombine.high %v2559_v25, %v2563_v8 }
 0x4cc   :  { %v10380_v48 = vpop.f32.mrb[248].mxu0 }
 0x4cd   :  { %11340 = vst [vmem:[#allocation24_spill] sm:$0xff] %v10380_v48  ;;  %v4593_v9 = vpop.f32.mrb[249].mxu0 }
 0x4ce   :  { %v10382_v29 = vpop.f32.mrb[250].mxu0 }
 0x4cf   :  { %11341 = vst [vmem:[#allocation31_spill] sm:$0xff] %v10382_v29  ;;  %v4596_v1 = vpop.f32.mrb[251].mxu0 }
 0x4d1   :  { %5064 = vmatmul.mubr.bf16.gmra.mrb[44].mxu1 %v6844_v46 }
 0x4d2   :  { %5071 = vmatprep.mubr.bf16.mxu1 %v6853_v52  ;;  %v6868_v52 = vcombine.low %v2559_v25, %v2563_v8 }
 0x4d4   :  { %v10390_v63 = vpop.f32.mrb[252].mxu0 }
 0x4d5   :  { %11342 = vst [vmem:[#allocation30_spill] sm:$0xff] %v10390_v63  ;;  %v4601_v19 = vpop.f32.mrb[253].mxu0 }
 0x4d6   :  { %v10392_v36 = vpop.f32.mrb[254].mxu0  ;;  %v2575_v19 = vld [vmem:[%s11132_s7 + $0x410] sm:$0xff] }
 0x4d7   :  { %11343 = vst [vmem:[#allocation29_spill] sm:$0xff] %v10392_v36  ;;  %v4604_v61 = vpop.f32.mrb[255].mxu0 }
 0x4d9   :  { %5072 = vmatmul.mubr.bf16.gmra.mrb[48].mxu1 %v6852_v7  ;;  %v2579_v7 = vld [vmem:[%s11132_s7 + $0x430] sm:$0xff] }
 0x4da   :  { %5079 = vmatprep.mubr.bf16.mxu1 %v6861_v10  ;;  %v6885_v25 = vcombine.high %v2575_v19, %v2579_v7 }
 0x4dc   :  { %v10400_v47 = vpop.f32.mrb[0].mxu0 }
 0x4dd   :  { %11344 = vst [vmem:[#allocation28_spill] sm:$0xff] %v10400_v47  ;;  %v4609_v23 = vpop.f32.mrb[1].mxu0 }
 0x4de   :  { %v10402_v5 = vpop.f32.mrb[2].mxu0  ;;  %v6876_v23 = vcombine.low %v2567_v49, %v2571_v34 }
 0x4df   :  { %11345 = vst [vmem:[#allocation35_spill] sm:$0xff] %v10402_v5  ;;  %v4612_v35 = vpop.f32.mrb[3].mxu0 }
 0x4e0   :  { %v2587_v35 = vld [vmem:[%s11132_s7 + $0x470] sm:$0xff] }
 0x4e1   :  { %5080 = vmatmul.mubr.bf16.gmra.mrb[52].mxu1 %v6860_v28 }
 0x4e2   :  { %5087 = vmatprep.mubr.bf16.mxu1 %v6869_v15  ;;  %v2583_v15 = vld [vmem:[%s11132_s7 + $0x450] sm:$0xff] }
 0x4e3   :  { %v6893_v49 = vcombine.high %v2583_v15, %v2587_v35 }
 0x4e4   :  { %v10410_v9 = vpop.f32.mrb[4].mxu0 }
 0x4e5   :  { %11346 = vst [vmem:[#allocation34_spill] sm:$0xff] %v10410_v9  ;;  %v4617_v46 = vpop.f32.mrb[5].mxu0 }
 0x4e6   :  { %v10412_v1 = vpop.f32.mrb[6].mxu0 }
 0x4e7   :  { %11347 = vst [vmem:[#allocation33_spill] sm:$0xff] %v10412_v1  ;;  %v4620_v11 = vpop.f32.mrb[7].mxu0 }
 0x4e9   :  { %5088 = vmatmul.mubr.bf16.gmra.mrb[56].mxu1 %v6868_v52 }
 0x4ea   :  { %5095 = vmatprep.mubr.bf16.mxu1 %v6877_v13  ;;  %v6884_v13 = vcombine.low %v2575_v19, %v2579_v7 }
 0x4ec   :  { %v10420_v10 = vpop.f32.mrb[8].mxu0 }
 0x4ed   :  { %11348 = vst [vmem:[#allocation32_spill] sm:$0xff] %v10420_v10  ;;  %v4625_v61 = vpop.f32.mrb[9].mxu0 }
 0x4ee   :  { %v10422_v28 = vpop.f32.mrb[10].mxu0  ;;  %v2591_v61 = vld [vmem:[%s11132_s7 + $0x490] sm:$0xff] }
 0x4ef   :  { %11349 = vst [vmem:[#allocation39_spill] sm:$0xff] %v10422_v28  ;;  %v4628_v8 = vpop.f32.mrb[11].mxu0 }
 0x4f1   :  { %5096 = vmatmul.mubr.bf16.gmra.mrb[60].mxu1 %v6876_v23  ;;  %v2595_v23 = vld [vmem:[%s11132_s7 + $0x4b0] sm:$0xff] }
 0x4f2   :  { %5103 = vmatprep.mubr.bf16.mxu1 %v6885_v25  ;;  %v6901_v19 = vcombine.high %v2591_v61, %v2595_v23 }
 0x4f4   :  { %v10430_v46 = vpop.f32.mrb[12].mxu0 }
 0x4f5   :  { %11350 = vst [vmem:[#allocation38_spill] sm:$0xff] %v10430_v46  ;;  %v4633_v52 = vpop.f32.mrb[13].mxu0  ;;  %v6892_v46 = vcombine.low %v2583_v15, %v2587_v35 }
 0x4f6   :  { %v10432_v11 = vpop.f32.mrb[14].mxu0 }
 0x4f7   :  { %11351 = vst [vmem:[#allocation37_spill] sm:$0xff] %v10432_v11  ;;  %v4636_v34 = vpop.f32.mrb[15].mxu0 }
 0x4f9   :  { %5104 = vmatmul.mubr.bf16.gmra.mrb[64].mxu1 %v6884_v13  ;;  %v2599_v13 = vld [vmem:[%s11132_s7 + $0x4d0] sm:$0xff] }
 0x4fa   :  { %5111 = vmatprep.mubr.bf16.mxu1 %v6893_v49  ;;  %v2603_v49 = vld [vmem:[%s11132_s7 + $0x4f0] sm:$0xff] }
 0x4fb   :  { %v6909_v15 = vcombine.high %v2599_v13, %v2603_v49 }
 0x4fc   :  { %v10440_v25 = vpop.f32.mrb[16].mxu0 }
 0x4fd   :  { %11352 = vst [vmem:[#allocation36_spill] sm:$0xff] %v10440_v25  ;;  %v4641_v8 = vpop.f32.mrb[17].mxu0  ;;  %v6900_v25 = vcombine.low %v2591_v61, %v2595_v23  ;;  %v2619_v61 = vld [vmem:[%s11132_s7 + $0x570] sm:$0xff] }
 0x4fe   :  { %v10442_v52 = vpop.f32.mrb[18].mxu0 }
 0x4ff   :  { %11353 = vst [vmem:[#allocation43_spill] sm:$0xff] %v10442_v52  ;;  %v4644_v7 = vpop.f32.mrb[19].mxu0 }
 0x500   :  { %v6908_v7 = vcombine.low %v2599_v13, %v2603_v49 }
 0x501   :  { %5112 = vmatmul.mubr.bf16.gmra.mrb[68].mxu1 %v6892_v46  ;;  %v2607_v46 = vld [vmem:[%s11132_s7 + $0x510] sm:$0xff] }
 0x502   :  { %5119 = vmatprep.mubr.bf16.mxu1 %v6901_v19  ;;  %v2611_v19 = vld [vmem:[%s11132_s7 + $0x530] sm:$0xff] }
 0x503   :  { %v6917_v52 = vcombine.high %v2607_v46, %v2611_v19  ;;  %v6916_v23 = vcombine.low %v2607_v46, %v2611_v19  ;;  %v2635_v46 = vld [vmem:[%s11132_s7 + $0x5f0] sm:$0xff] }
 0x504   :  { %v10450_v34 = vpop.f32.mrb[20].mxu0 }
 0x505   :  { %11354 = vst [vmem:[#allocation42_spill] sm:$0xff] %v10450_v34  ;;  %v4649_v11 = vpop.f32.mrb[21].mxu0 }
 0x506   :  { %v10452_v8 = vpop.f32.mrb[22].mxu0  ;;  %v2615_v11 = vld [vmem:[%s11132_s7 + $0x550] sm:$0xff] }
 0x507   :  { %11355 = vst [vmem:[#allocation41_spill] sm:$0xff] %v10452_v8  ;;  %v4652_v35 = vpop.f32.mrb[23].mxu0  ;;  %v6924_v13 = vcombine.low %v2615_v11, %v2619_v61 }
 0x508   :  { %v2631_v35 = vld [vmem:[%s11132_s7 + $0x5d0] sm:$0xff] }
 0x509   :  { %5120 = vmatmul.mubr.bf16.gmra.mrb[72].mxu1 %v6900_v25  ;;  %v6925_v25 = vcombine.high %v2615_v11, %v2619_v61  ;;  %v2643_v11 = vld [vmem:[%s11132_s7 + $0x630] sm:$0xff]  ;;  %v6940_v61 = vcombine.low %v2631_v35, %v2635_v46 }
 0x50a   :  { %5127 = vmatprep.mubr.bf16.mxu1 %v6909_v15  ;;  %v2623_v15 = vld [vmem:[%s11132_s7 + $0x590] sm:$0xff] }
 0x511   :  { %5128 = vmatmul.mubr.bf16.gmra.mrb[76].mxu1 %v6908_v7  ;;  %v6941_v7 = vcombine.high %v2631_v35, %v2635_v46  ;;  %v2659_v35 = vld [vmem:[%s11132_s7 + $0x6b0] sm:$0xff] }
 0x512   :  { %5135 = vmatprep.mubr.bf16.mxu1 %v6917_v52  ;;  %v2627_v52 = vld [vmem:[%s11132_s7 + $0x5b0] sm:$0xff] }
 0x513   :  { %v6933_v49 = vcombine.high %v2623_v15, %v2627_v52  ;;  %v6932_v19 = vcombine.low %v2623_v15, %v2627_v52  ;;  %v2651_v15 = vld [vmem:[%s11132_s7 + $0x670] sm:$0xff] }
 0x519   :  { %5136 = vmatmul.mubr.bf16.gmra.mrb[80].mxu1 %v6916_v23  ;;  %v2639_v23 = vld [vmem:[%s11132_s7 + $0x610] sm:$0xff] }
 0x51a   :  { %5143 = vmatprep.mubr.bf16.mxu1 %v6925_v25  ;;  %v6949_v25 = vcombine.high %v2639_v23, %v2643_v11  ;;  %v6948_v52 = vcombine.low %v2639_v23, %v2643_v11  ;;  %v2667_v23 = vld [vmem:[%s11132_s7 + $0x6f0] sm:$0xff] }
 0x521   :  { %5144 = vmatmul.mubr.bf16.gmra.mrb[84].mxu1 %v6924_v13  ;;  %v2647_v13 = vld [vmem:[%s11132_s7 + $0x650] sm:$0xff] }
 0x522   :  { %5151 = vmatprep.mubr.bf16.mxu1 %v6933_v49  ;;  %v6957_v49 = vcombine.high %v2647_v13, %v2651_v15  ;;  %v6956_v46 = vcombine.low %v2647_v13, %v2651_v15  ;;  %v2675_v13 = vld [vmem:[%s11132_s7 + $0x730] sm:$0xff] }
 0x529   :  { %5152 = vmatmul.mubr.bf16.gmra.mrb[88].mxu1 %v6932_v19  ;;  %v2655_v19 = vld [vmem:[%s11132_s7 + $0x690] sm:$0xff] }
 0x52a   :  { %5159 = vmatprep.mubr.bf16.mxu1 %v6941_v7  ;;  %v6965_v7 = vcombine.high %v2655_v19, %v2659_v35  ;;  %v6964_v11 = vcombine.low %v2655_v19, %v2659_v35  ;;  %v2683_v19 = vld [vmem:[%s11132_s7 + $0x770] sm:$0xff] }
 0x531   :  { %5160 = vmatmul.mubr.bf16.gmra.mrb[92].mxu1 %v6940_v61  ;;  %v2663_v61 = vld [vmem:[%s11132_s7 + $0x6d0] sm:$0xff] }
 0x532   :  { %5167 = vmatprep.mubr.bf16.mxu1 %v6949_v25  ;;  %v6973_v25 = vcombine.high %v2663_v61, %v2667_v23  ;;  %v6972_v15 = vcombine.low %v2663_v61, %v2667_v23  ;;  %v2691_v61 = vld [vmem:[%s11132_s7 + $0x7b0] sm:$0xff] }
 0x539   :  { %5168 = vmatmul.mubr.bf16.gmra.mrb[96].mxu1 %v6948_v52  ;;  %v2671_v52 = vld [vmem:[%s11132_s7 + $0x710] sm:$0xff] }
 0x53a   :  { %5175 = vmatprep.mubr.bf16.mxu1 %v6957_v49  ;;  %v6981_v49 = vcombine.high %v2671_v52, %v2675_v13  ;;  %v6980_v35 = vcombine.low %v2671_v52, %v2675_v13  ;;  %v2699_v52 = vld [vmem:[%s11132_s7 + $0x7f0] sm:$0xff] }
 0x541   :  { %5176 = vmatmul.mubr.bf16.gmra.mrb[100].mxu1 %v6956_v46  ;;  %v2679_v46 = vld [vmem:[%s11132_s7 + $0x750] sm:$0xff] }
 0x542   :  { %5183 = vmatprep.mubr.bf16.mxu1 %v6965_v7  ;;  %v6989_v7 = vcombine.high %v2679_v46, %v2683_v19  ;;  %v6988_v23 = vcombine.low %v2679_v46, %v2683_v19  ;;  %v2452_v46 = vld [vmem:[%s11132_s7 + $0x38] sm:$0xff] }
 0x549   :  { %5184 = vmatmul.mubr.bf16.gmra.mrb[104].mxu1 %v6964_v11  ;;  %v2687_v11 = vld [vmem:[%s11132_s7 + $0x790] sm:$0xff] }
 0x54a   :  { %5191 = vmatprep.mubr.bf16.mxu1 %v6973_v25  ;;  %v6997_v25 = vcombine.high %v2687_v11, %v2691_v61  ;;  %v6996_v13 = vcombine.low %v2687_v11, %v2691_v61  ;;  %v2460_v11 = vld [vmem:[%s11132_s7 + $0x78] sm:$0xff] }
 0x551   :  { %5192 = vmatmul.mubr.bf16.gmra.mrb[108].mxu1 %v6972_v15  ;;  %v2695_v15 = vld [vmem:[%s11132_s7 + $0x7d0] sm:$0xff] }
 0x552   :  { %5199 = vmatprep.mubr.bf16.mxu1 %v6981_v49  ;;  %v7005_v49 = vcombine.high %v2695_v15, %v2699_v52  ;;  %v7004_v19 = vcombine.low %v2695_v15, %v2699_v52  ;;  %v2468_v15 = vld [vmem:[%s11132_s7 + $0xb8] sm:$0xff] }
 0x559   :  { %5200 = vmatmul.mubr.bf16.gmra.mrb[112].mxu1 %v6980_v35  ;;  %v2448_v35 = vld [vmem:[%s11132_s7 + $0x18] sm:$0xff] }
 0x55a   :  { %5207 = vmatprep.mubr.bf16.mxu1 %v6989_v7  ;;  %v6759_v7 = vcombine.high %v2448_v35, %v2452_v46  ;;  %v6758_v61 = vcombine.low %v2448_v35, %v2452_v46  ;;  %v2476_v35 = vld [vmem:[%s11132_s7 + $0xf8] sm:$0xff] }
 0x561   :  { %5208 = vmatmul.mubr.bf16.gmra.mrb[116].mxu1 %v6988_v23  ;;  %v2456_v23 = vld [vmem:[%s11132_s7 + $0x58] sm:$0xff] }
 0x562   :  { %5215 = vmatprep.mubr.bf16.mxu1 %v6997_v25  ;;  %v6767_v25 = vcombine.high %v2456_v23, %v2460_v11  ;;  %v6766_v52 = vcombine.low %v2456_v23, %v2460_v11  ;;  %v2484_v23 = vld [vmem:[%s11132_s7 + $0x138] sm:$0xff] }
 0x569   :  { %5216 = vmatmul.mubr.bf16.gmra.mrb[120].mxu1 %v6996_v13  ;;  %v2464_v13 = vld [vmem:[%s11132_s7 + $0x98] sm:$0xff] }
 0x56a   :  { %5223 = vmatprep.mubr.bf16.mxu1 %v7005_v49  ;;  %v6775_v49 = vcombine.high %v2464_v13, %v2468_v15  ;;  %v6774_v46 = vcombine.low %v2464_v13, %v2468_v15  ;;  %v2492_v13 = vld [vmem:[%s11132_s7 + $0x178] sm:$0xff] }
 0x571   :  { %5224 = vmatmul.mubr.bf16.gmra.mrb[124].mxu1 %v7004_v19  ;;  %v2472_v19 = vld [vmem:[%s11132_s7 + $0xd8] sm:$0xff] }
 0x572   :  { %5264 = vmatprep.mubr.bf16.mxu1 %v6759_v7  ;;  %v6783_v7 = vcombine.high %v2472_v19, %v2476_v35  ;;  %v6782_v11 = vcombine.low %v2472_v19, %v2476_v35  ;;  %v2500_v19 = vld [vmem:[%s11132_s7 + $0x1b8] sm:$0xff] }
 0x579   :  { %5265 = vmatmul.mubr.bf16.vlgmr.msra.gmra.mrb[0].mxu1 %v6758_v61  ;;  %v2480_v61 = vld [vmem:[%s11132_s7 + $0x118] sm:$0xff] }
 0x57a   :  { %5272 = vmatprep.mubr.bf16.mxu1 %v6767_v25  ;;  %v6791_v25 = vcombine.high %v2480_v61, %v2484_v23  ;;  %v6790_v15 = vcombine.low %v2480_v61, %v2484_v23  ;;  %v2508_v61 = vld [vmem:[%s11132_s7 + $0x1f8] sm:$0xff] }
 0x581   :  { %5273 = vmatmul.mubr.bf16.gmra.mrb[4].mxu1 %v6766_v52  ;;  %v2488_v52 = vld [vmem:[%s11132_s7 + $0x158] sm:$0xff] }
 0x582   :  { %5280 = vmatprep.mubr.bf16.mxu1 %v6775_v49  ;;  %v6799_v49 = vcombine.high %v2488_v52, %v2492_v13  ;;  %v6798_v35 = vcombine.low %v2488_v52, %v2492_v13  ;;  %v2516_v52 = vld [vmem:[%s11132_s7 + $0x238] sm:$0xff] }
 0x589   :  { %5281 = vmatmul.mubr.bf16.gmra.mrb[8].mxu1 %v6774_v46  ;;  %v2496_v46 = vld [vmem:[%s11132_s7 + $0x198] sm:$0xff] }
 0x58a   :  { %5288 = vmatprep.mubr.bf16.mxu1 %v6783_v7  ;;  %v6807_v7 = vcombine.high %v2496_v46, %v2500_v19  ;;  %v6806_v23 = vcombine.low %v2496_v46, %v2500_v19  ;;  %v2524_v46 = vld [vmem:[%s11132_s7 + $0x278] sm:$0xff] }
 0x591   :  { %5289 = vmatmul.mubr.bf16.gmra.mrb[12].mxu1 %v6782_v11  ;;  %v2504_v11 = vld [vmem:[%s11132_s7 + $0x1d8] sm:$0xff] }
 0x592   :  { %5296 = vmatprep.mubr.bf16.mxu1 %v6791_v25  ;;  %v6815_v25 = vcombine.high %v2504_v11, %v2508_v61  ;;  %v6814_v13 = vcombine.low %v2504_v11, %v2508_v61  ;;  %v2532_v11 = vld [vmem:[%s11132_s7 + $0x2b8] sm:$0xff] }
 0x599   :  { %5297 = vmatmul.mubr.bf16.gmra.mrb[16].mxu1 %v6790_v15  ;;  %v2512_v15 = vld [vmem:[%s11132_s7 + $0x218] sm:$0xff] }
 0x59a   :  { %5304 = vmatprep.mubr.bf16.mxu1 %v6799_v49  ;;  %v6823_v49 = vcombine.high %v2512_v15, %v2516_v52  ;;  %v6822_v19 = vcombine.low %v2512_v15, %v2516_v52  ;;  %v2540_v15 = vld [vmem:[%s11132_s7 + $0x2f8] sm:$0xff] }
 0x5a1   :  { %5305 = vmatmul.mubr.bf16.gmra.mrb[20].mxu1 %v6798_v35  ;;  %v2520_v35 = vld [vmem:[%s11132_s7 + $0x258] sm:$0xff] }
 0x5a2   :  { %5312 = vmatprep.mubr.bf16.mxu1 %v6807_v7  ;;  %v6831_v7 = vcombine.high %v2520_v35, %v2524_v46  ;;  %v6830_v61 = vcombine.low %v2520_v35, %v2524_v46  ;;  %v2548_v35 = vld [vmem:[%s11132_s7 + $0x338] sm:$0xff] }
 0x5a9   :  { %5313 = vmatmul.mubr.bf16.gmra.mrb[24].mxu1 %v6806_v23  ;;  %v2528_v23 = vld [vmem:[%s11132_s7 + $0x298] sm:$0xff] }
 0x5aa   :  { %5320 = vmatprep.mubr.bf16.mxu1 %v6815_v25  ;;  %v6839_v25 = vcombine.high %v2528_v23, %v2532_v11  ;;  %v6838_v52 = vcombine.low %v2528_v23, %v2532_v11  ;;  %v2556_v23 = vld [vmem:[%s11132_s7 + $0x378] sm:$0xff] }
 0x5b1   :  { %5321 = vmatmul.mubr.bf16.gmra.mrb[28].mxu1 %v6814_v13  ;;  %v2536_v13 = vld [vmem:[%s11132_s7 + $0x2d8] sm:$0xff] }
 0x5b2   :  { %5328 = vmatprep.mubr.bf16.mxu1 %v6823_v49  ;;  %v6847_v49 = vcombine.high %v2536_v13, %v2540_v15  ;;  %v6846_v46 = vcombine.low %v2536_v13, %v2540_v15  ;;  %v2564_v13 = vld [vmem:[%s11132_s7 + $0x3b8] sm:$0xff] }
 0x5b9   :  { %5329 = vmatmul.mubr.bf16.gmra.mrb[32].mxu1 %v6822_v19  ;;  %v2544_v19 = vld [vmem:[%s11132_s7 + $0x318] sm:$0xff] }
 0x5ba   :  { %5336 = vmatprep.mubr.bf16.mxu1 %v6831_v7  ;;  %v6855_v7 = vcombine.high %v2544_v19, %v2548_v35  ;;  %v6854_v11 = vcombine.low %v2544_v19, %v2548_v35  ;;  %v2572_v19 = vld [vmem:[%s11132_s7 + $0x3f8] sm:$0xff] }
 0x5c1   :  { %5337 = vmatmul.mubr.bf16.gmra.mrb[36].mxu1 %v6830_v61  ;;  %v2552_v61 = vld [vmem:[%s11132_s7 + $0x358] sm:$0xff] }
 0x5c2   :  { %5344 = vmatprep.mubr.bf16.mxu1 %v6839_v25  ;;  %v6863_v25 = vcombine.high %v2552_v61, %v2556_v23  ;;  %v6862_v15 = vcombine.low %v2552_v61, %v2556_v23  ;;  %v2580_v61 = vld [vmem:[%s11132_s7 + $0x438] sm:$0xff] }
 0x5c9   :  { %5345 = vmatmul.mubr.bf16.gmra.mrb[40].mxu1 %v6838_v52  ;;  %v2560_v52 = vld [vmem:[%s11132_s7 + $0x398] sm:$0xff] }
 0x5ca   :  { %5352 = vmatprep.mubr.bf16.mxu1 %v6847_v49  ;;  %v6871_v49 = vcombine.high %v2560_v52, %v2564_v13  ;;  %v6870_v35 = vcombine.low %v2560_v52, %v2564_v13  ;;  %v2588_v52 = vld [vmem:[%s11132_s7 + $0x478] sm:$0xff] }
 0x5d1   :  { %5353 = vmatmul.mubr.bf16.gmra.mrb[44].mxu1 %v6846_v46  ;;  %v2568_v46 = vld [vmem:[%s11132_s7 + $0x3d8] sm:$0xff] }
 0x5d2   :  { %5360 = vmatprep.mubr.bf16.mxu1 %v6855_v7  ;;  %v6879_v7 = vcombine.high %v2568_v46, %v2572_v19  ;;  %v6878_v23 = vcombine.low %v2568_v46, %v2572_v19  ;;  %v2596_v46 = vld [vmem:[%s11132_s7 + $0x4b8] sm:$0xff] }
 0x5d9   :  { %5361 = vmatmul.mubr.bf16.gmra.mrb[48].mxu1 %v6854_v11  ;;  %v2576_v11 = vld [vmem:[%s11132_s7 + $0x418] sm:$0xff] }
 0x5da   :  { %5368 = vmatprep.mubr.bf16.mxu1 %v6863_v25  ;;  %v6887_v25 = vcombine.high %v2576_v11, %v2580_v61  ;;  %v6886_v13 = vcombine.low %v2576_v11, %v2580_v61  ;;  %v2604_v11 = vld [vmem:[%s11132_s7 + $0x4f8] sm:$0xff] }
 0x5e1   :  { %5369 = vmatmul.mubr.bf16.gmra.mrb[52].mxu1 %v6862_v15  ;;  %v2584_v15 = vld [vmem:[%s11132_s7 + $0x458] sm:$0xff] }
 0x5e2   :  { %5376 = vmatprep.mubr.bf16.mxu1 %v6871_v49  ;;  %v6895_v49 = vcombine.high %v2584_v15, %v2588_v52  ;;  %v6894_v19 = vcombine.low %v2584_v15, %v2588_v52  ;;  %v2612_v15 = vld [vmem:[%s11132_s7 + $0x538] sm:$0xff] }
 0x5e9   :  { %5377 = vmatmul.mubr.bf16.gmra.mrb[56].mxu1 %v6870_v35  ;;  %v2592_v35 = vld [vmem:[%s11132_s7 + $0x498] sm:$0xff] }
 0x5ea   :  { %5384 = vmatprep.mubr.bf16.mxu1 %v6879_v7  ;;  %v6903_v7 = vcombine.high %v2592_v35, %v2596_v46  ;;  %v6902_v61 = vcombine.low %v2592_v35, %v2596_v46  ;;  %v2620_v35 = vld [vmem:[%s11132_s7 + $0x578] sm:$0xff] }
 0x5f1   :  { %5385 = vmatmul.mubr.bf16.gmra.mrb[60].mxu1 %v6878_v23  ;;  %v2600_v23 = vld [vmem:[%s11132_s7 + $0x4d8] sm:$0xff] }
 0x5f2   :  { %5392 = vmatprep.mubr.bf16.mxu1 %v6887_v25  ;;  %v6911_v25 = vcombine.high %v2600_v23, %v2604_v11  ;;  %v6910_v52 = vcombine.low %v2600_v23, %v2604_v11  ;;  %v2628_v23 = vld [vmem:[%s11132_s7 + $0x5b8] sm:$0xff] }
 0x5f9   :  { %5393 = vmatmul.mubr.bf16.gmra.mrb[64].mxu1 %v6886_v13  ;;  %v2608_v13 = vld [vmem:[%s11132_s7 + $0x518] sm:$0xff] }
 0x5fa   :  { %5400 = vmatprep.mubr.bf16.mxu1 %v6895_v49  ;;  %v6919_v49 = vcombine.high %v2608_v13, %v2612_v15  ;;  %v6918_v46 = vcombine.low %v2608_v13, %v2612_v15  ;;  %v2636_v13 = vld [vmem:[%s11132_s7 + $0x5f8] sm:$0xff] }
 0x601   :  { %5401 = vmatmul.mubr.bf16.gmra.mrb[68].mxu1 %v6894_v19  ;;  %v2616_v19 = vld [vmem:[%s11132_s7 + $0x558] sm:$0xff] }
 0x602   :  { %5408 = vmatprep.mubr.bf16.mxu1 %v6903_v7  ;;  %v6927_v7 = vcombine.high %v2616_v19, %v2620_v35  ;;  %v6926_v11 = vcombine.low %v2616_v19, %v2620_v35  ;;  %v2640_v19 = vld [vmem:[%s11132_s7 + $0x618] sm:$0xff] }
 0x603   :  { %v2644_v35 = vld [vmem:[%s11132_s7 + $0x638] sm:$0xff] }
 0x604   :  { %v6951_v8 = vcombine.high %v2640_v19, %v2644_v35 }
 0x609   :  { %5409 = vmatmul.mubr.bf16.gmra.mrb[72].mxu1 %v6902_v61  ;;  %v2624_v61 = vld [vmem:[%s11132_s7 + $0x598] sm:$0xff] }
 0x60a   :  { %5416 = vmatprep.mubr.bf16.mxu1 %v6911_v25  ;;  %v6935_v25 = vcombine.high %v2624_v61, %v2628_v23  ;;  %v6934_v15 = vcombine.low %v2624_v61, %v2628_v23  ;;  %v2648_v61 = vld [vmem:[%s11132_s7 + $0x658] sm:$0xff] }
 0x60b   :  { %v2652_v23 = vld [vmem:[%s11132_s7 + $0x678] sm:$0xff] }
 0x60c   :  { %v6959_v10 = vcombine.high %v2648_v61, %v2652_v23  ;;  %v6958_v1 = vcombine.low %v2648_v61, %v2652_v23 }
 0x611   :  { %5417 = vmatmul.mubr.bf16.gmra.mrb[76].mxu1 %v6910_v52  ;;  %v2632_v52 = vld [vmem:[%s11132_s7 + $0x5d8] sm:$0xff] }
 0x612   :  { %5424 = vmatprep.mubr.bf16.mxu1 %v6919_v49  ;;  %v6943_v49 = vcombine.high %v2632_v52, %v2636_v13 }
 0x619   :  { %5425 = vmatmul.mubr.bf16.gmra.mrb[80].mxu1 %v6918_v46  ;;  %v10670_v46 = vpop.permute.xlu0 %2847 }
 0x61a   :  { %5432 = vmatprep.mubr.bf16.mxu1 %v6927_v7  ;;  %v10672_v7 = vpop.permute.xlu1 %2852 }
 0x61e   :  { %v2773_v34 = vpop.permute.xlu1 %2772 }
 0x621   :  { %5433 = vmatmul.mubr.bf16.gmra.mrb[84].mxu1 %v6926_v11  ;;  %v6942_v11 = vcombine.low %v2632_v52, %v2636_v13  ;;  %v2660_v13 = vld [vmem:[%s11132_s7 + $0x6b8] sm:$0xff] }
 0x622   :  { %5440 = vmatprep.mubr.bf16.mxu1 %v6935_v25  ;;  %v2768_v25 = vpop.permute.xlu0 %2767  ;;  %v10688_v28 = vpop.permute.xlu1 %2862 }
 0x623   :  { %v4400_v61 = vadd.f32 %v10059_v14, %v2768_v25 }
 0x629   :  { %5441 = vmatmul.mubr.bf16.gmra.mrb[88].mxu1 %v6934_v15  ;;  %v10686_v15 = vpop.permute.xlu0 %2857 }
 0x62a   :  { %5448 = vmatprep.mubr.bf16.mxu1 %v6943_v49  ;;  %v6950_v49 = vcombine.low %v2640_v19, %v2644_v35  ;;  %v2668_v35 = vld [vmem:[%s11132_s7 + $0x6f8] sm:$0xff] }
 0x62d   :  { %v2778_v52 = vpop.permute.xlu0 %2777 }
 0x62e   :  { %v4408_v42 = vadd.f32 %v10075_v62, %v2778_v52 }
 0x631   :  { %5449 = vmatmul.mubr.bf16.gmra.mrb[92].mxu1 %v6942_v11  ;;  %v2783_v11 = vpop.permute.xlu1 %2782  ;;  %v10696_v5 = vpop.permute.xlu0 %2867 }
 0x632   :  { %5456 = vmatprep.mubr.bf16.mxu1 %v6951_v8  ;;  %v2656_v8 = vld [vmem:[%s11132_s7 + $0x698] sm:$0xff] }
 0x633   :  { %v6967_v9 = vcombine.high %v2656_v8, %v2660_v13 }
 0x635   :  { %v10698_v19 = vpop.permute.xlu1 %2872  ;;  %v2788_v47 = vpop.permute.xlu0 %2787 }
 0x639   :  { %5457 = vmatmul.mubr.bf16.gmra.mrb[96].mxu1 %v6950_v49  ;;  %v6966_v49 = vcombine.low %v2656_v8, %v2660_v13  ;;  %v2793_v63 = vpop.permute.xlu1 %2792  ;;  %v10713_v23 = vpop.permute.xlu0 %2877  ;;  %v4403_v13 = vadd.f32 %v10061_v56, %v2773_v34  ;;  %v2680_v56 = vld [vmem:[%s11132_s7 + $0x758] sm:$0xff] }
 0x63a   :  { %5464 = vmatprep.mubr.bf16.mxu1 %v6959_v10  ;;  %v2664_v10 = vld [vmem:[%s11132_s7 + $0x6d8] sm:$0xff] }
 0x63b   :  { %v6975_v36 = vcombine.high %v2664_v10, %v2668_v35  ;;  %v6974_v22 = vcombine.low %v2664_v10, %v2668_v35  ;;  %v2684_v34 = vld [vmem:[%s11132_s7 + $0x778] sm:$0xff] }
 0x63d   :  { %v2798_v24 = vpop.permute.xlu0 %2797 }
 0x641   :  { %5465 = vmatmul.mubr.bf16.gmra.mrb[100].mxu1 %v6958_v1  ;;  %v2676_v1 = vld [vmem:[%s11132_s7 + $0x738] sm:$0xff] }
 0x642   :  { %5472 = vmatprep.mubr.bf16.mxu1 %v6967_v9  ;;  %v2672_v9 = vld [vmem:[%s11132_s7 + $0x718] sm:$0xff] }
 0x643   :  { %v6983_v14 = vcombine.high %v2672_v9, %v2676_v1  ;;  %v6982_v35 = vcombine.low %v2672_v9, %v2676_v1  ;;  %v4419_v9 = vadd.f32 %v10093_v55, %v2793_v63  ;;  %v2696_v55 = vld [vmem:[%s11132_s7 + $0x7d8] sm:$0xff] }
 0x644   :  { %v2700_v63 = vld [vmem:[%s11132_s7 + $0x7f8] sm:$0xff] }
 0x649   :  { %5473 = vmatmul.mubr.bf16.gmra.mrb[104].mxu1 %v6966_v49  ;;  %v10716_v49 = vpop.permute.xlu1 %2882 }
 0x64a   :  { %5480 = vmatprep.mubr.bf16.mxu1 %v6975_v36 }
 0x64c   :  { %v5266_v29 = vpop.f32.mrb[0].mxu1 }
 0x64d   :  { %v7591_v48 = vadd.f32 %v5266_v29, %v4400_v61  ;;  %v5268_v8 = vpop.f32.mrb[1].mxu1 }
 0x64e   :  { %v5269_v36 = vpop.f32.mrb[2].mxu1  ;;  %v6991_v8 = vcombine.high %v2680_v56, %v2684_v34 }
 0x64f   :  { %v7593_v25 = vadd.f32 %v5269_v36, %v4403_v13  ;;  %v5271_v31 = vpop.f32.mrb[3].mxu1  ;;  %v5521_v43 = vmax.f32 %v7591_v48, 0.0  ;;  %v4411_v48 = vadd.f32 %v10077_v4, %v2783_v11  ;;  %v2688_v4 = vld [vmem:[%s11132_s7 + $0x798] sm:$0xff] }
 0x650   :  { %v2803_v31 = vpop.permute.xlu1 %2802 }
 0x651   :  { %v5522_v26 = vmax.f32 %v7593_v25, 0.0  ;;  %5481 = vmatmul.mubr.bf16.gmra.mrb[108].mxu1 %v6974_v22 }
 0x652   :  { %5488 = vmatprep.mubr.bf16.mxu1 %v6983_v14  ;;  %v4416_v14 = vadd.f32 %v10091_v0, %v2788_v47 }
 0x653   :  { %v10719_v29 = vpack.c.bf16 %v5522_v26, %v5521_v43  ;;  %v10728_v43 = vpop.permute.xlu0 %2887 }
 0x654   :  { %v5274_v10 = vpop.f32.mrb[4].mxu1  ;;  %v10730_v36 = vpop.permute.xlu1 %2892 }
 0x655   :  { %v7595_v22 = vadd.f32 %v5274_v10, %v4408_v42  ;;  %v5276_v18 = vpop.f32.mrb[5].mxu1  ;;  %v2692_v42 = vld [vmem:[%s11132_s7 + $0x7b8] sm:$0xff] }
 0x656   :  { %v5277_v61 = vpop.f32.mrb[6].mxu1 }
 0x657   :  { %v7597_v62 = vadd.f32 %v5277_v61, %v4411_v48  ;;  %v5279_v26 = vpop.f32.mrb[7].mxu1  ;;  %v5523_v52 = vmax.f32 %v7595_v22, 0.0  ;;  %v6990_v48 = vcombine.low %v2680_v56, %v2684_v34  ;;  %v2808_v22 = vpop.permute.xlu0 %2807 }
 0x658   :  { %v2813_v61 = vpop.permute.xlu1 %2812  ;;  %v4424_v26 = vadd.f32 %v10107_v41, %v2798_v24  ;;  %v7007_v24 = vcombine.high %v2696_v55, %v2700_v63 }
 0x659   :  { %v5524_v13 = vmax.f32 %v7597_v62, 0.0  ;;  %5489 = vmatmul.mubr.bf16.gmra.mrb[112].mxu1 %v6982_v35  ;;  %v6999_v35 = vcombine.high %v2688_v4, %v2692_v42 }
 0x65a   :  { %5496 = vmatprep.mubr.bf16.mxu1 %v6991_v8 }
 0x65b   :  { %v10733_v25 = vpack.c.bf16 %v5524_v13, %v5523_v52  ;;  %v10751_v56 = vpop.permute.xlu0 %2897  ;;  %v4427_v13 = vadd.f32 %v10109_v2, %v2803_v31  ;;  %v4435_v31 = vadd.f32 %v10119_v60, %v2813_v61 }
 0x65c   :  { %v5282_v11 = vpop.f32.mrb[8].mxu1 }
 0x65d   :  { %v7599_v1 = vadd.f32 %v5282_v11, %v4416_v14  ;;  %v5284_v10 = vpop.f32.mrb[9].mxu1 }
 0x65e   :  { %v5285_v18 = vpop.f32.mrb[10].mxu1 }
 0x65f   :  { %v7601_v0 = vadd.f32 %v5285_v18, %v4419_v9  ;;  %v5287_v47 = vpop.f32.mrb[11].mxu1  ;;  %v5525_v8 = vmax.f32 %v7599_v1, 0.0  ;;  %v6998_v9 = vcombine.low %v2688_v4, %v2692_v42  ;;  %v10754_v1 = vpop.permute.xlu1 %2902 }
 0x660   :  { %v4432_v47 = vadd.f32 %v10117_v58, %v2808_v22 }
 0x661   :  { %v5526_v62 = vmax.f32 %v7601_v0, 0.0  ;;  %5497 = vmatmul.mubr.bf16.gmra.mrb[116].mxu1 %v6990_v48  ;;  %v2818_v0 = vpop.permute.xlu0 %2817 }
 0x662   :  { %5504 = vmatprep.mubr.bf16.mxu1 %v6999_v35  ;;  %v4440_v58 = vadd.f32 %v10127_v21, %v2818_v0 }
 0x663   :  { %v10743_v52 = vpack.c.bf16 %v5526_v62, %v5525_v8  ;;  %v2823_v62 = vpop.permute.xlu1 %2822 }
 0x664   :  { %v5290_v34 = vpop.f32.mrb[12].mxu1  ;;  %v4443_v60 = vadd.f32 %v10129_v33, %v2823_v62 }
 0x665   :  { %v7603_v14 = vadd.f32 %v5290_v34, %v4424_v26  ;;  %v5292_v11 = vpop.f32.mrb[13].mxu1  ;;  %v7006_v26 = vcombine.low %v2696_v55, %v2700_v63 }
 0x666   :  { %v5293_v41 = vpop.f32.mrb[14].mxu1 }
 0x667   :  { %v7605_v10 = vadd.f32 %v5293_v41, %v4427_v13  ;;  %v5295_v48 = vpop.f32.mrb[15].mxu1  ;;  %v5527_v18 = vmax.f32 %v7603_v14, 0.0  ;;  %v10760_v41 = vpop.permute.xlu0 %2907 }
 0x669   :  { %v5528_v35 = vmax.f32 %v7605_v10, 0.0  ;;  %5505 = vmatmul.mubr.bf16.gmra.mrb[120].mxu1 %v6998_v9 }
 0x66a   :  { %5512 = vmatprep.mubr.bf16.mxu1 %v7007_v24  ;;  %v10762_v24 = vpop.permute.xlu1 %2912 }
 0x66b   :  { %v10757_v8 = vpack.c.bf16 %v5528_v35, %v5527_v18  ;;  %v2828_v55 = vpop.permute.xlu0 %2827 }
 0x66c   :  { %v5298_v2 = vpop.f32.mrb[16].mxu1 }
 0x66d   :  { %v7607_v4 = vadd.f32 %v5298_v2, %v4432_v47  ;;  %v5300_v42 = vpop.f32.mrb[17].mxu1 }
 0x66e   :  { %v5301_v34 = vpop.f32.mrb[18].mxu1  ;;  %v2833_v47 = vpop.permute.xlu1 %2832 }
 0x66f   :  { %v7609_v11 = vadd.f32 %v5301_v34, %v4435_v31  ;;  %v5303_v13 = vpop.f32.mrb[19].mxu1  ;;  %v5529_v14 = vmax.f32 %v7607_v4, 0.0  ;;  %v4448_v4 = vadd.f32 %v10137_v16, %v2828_v55  ;;  %v4451_v0 = vadd.f32 %v10139_v6, %v2833_v47 }
 0x671   :  { %v5530_v9 = vmax.f32 %v7609_v11, 0.0  ;;  %5513 = vmatmul.mubr.bf16.gmra.mrb[124].mxu1 %v7006_v26  ;;  %v10771_v26 = vpop.permute.xlu0 %2917 }
 0x672   :  { %v10774_v62 = vpop.permute.xlu1 %2922 }
 0x673   :  { %v10765_v22 = vpack.c.bf16 %v5530_v9, %v5529_v14 }
 0x674   :  { %v5306_v10 = vpop.f32.mrb[20].mxu1 }
 0x675   :  { %v7611_v61 = vadd.f32 %v5306_v10, %v4440_v58  ;;  %v5308_v48 = vpop.f32.mrb[21].mxu1  ;;  %v2838_v10 = vpop.permute.xlu0 %2837 }
 0x676   :  { %v5309_v63 = vpop.f32.mrb[22].mxu1 }
 0x677   :  { %v7613_v18 = vadd.f32 %v5309_v63, %v4443_v60  ;;  %v5311_v35 = vpop.f32.mrb[23].mxu1  ;;  %v5531_v2 = vmax.f32 %v7611_v61, 0.0  ;;  %v4456_v60 = vadd.f32 %v10147_v17, %v2838_v10  ;;  %v2843_v61 = vpop.permute.xlu1 %2842  ;;  %v11356_v17 = vld [vmem:[#allocation15_spill] sm:$0xff]  ;;  %v11357_v10 = vld [vmem:[#allocation14_spill] sm:$0xff] }
 0x678   :  { %v4459_v55 = vadd.f32 %v10149_v27, %v2843_v61 }
 0x679   :  { %v5532_v31 = vmax.f32 %v7613_v18, 0.0 }
 0x67b   :  { %v10769_v42 = vpack.c.bf16 %v5532_v31, %v5531_v2 }
 0x67c   :  { %v5314_v21 = vpop.f32.mrb[24].mxu1 }
 0x67d   :  { %v7615_v34 = vadd.f32 %v5314_v21, %v4448_v4  ;;  %v5316_v33 = vpop.f32.mrb[25].mxu1  ;;  %v4464_v4 = vadd.f32 %v10157_v45, %v10670_v46  ;;  %v11358_v45 = vld [vmem:[#allocation13_spill] sm:$0xff] }
 0x67e   :  { %v5317_v11 = vpop.f32.mrb[26].mxu1  ;;  %v4475_v46 = vadd.f32 %v11358_v45, %v10688_v28 }
 0x67f   :  { %v7617_v13 = vadd.f32 %v5317_v11, %v4451_v0  ;;  %v5319_v14 = vpop.f32.mrb[27].mxu1  ;;  %v5533_v9 = vmax.f32 %v7615_v34, 0.0  ;;  %v4467_v34 = vadd.f32 %v11356_v17, %v10672_v7 }
 0x681   :  { %v5534_v58 = vmax.f32 %v7617_v13, 0.0 }
 0x683   :  { %v10777_v16 = vpack.c.bf16 %v5534_v58, %v5533_v9 }
 0x684   :  { %v5322_v48 = vpop.f32.mrb[28].mxu1 }
 0x685   :  { %v7619_v63 = vadd.f32 %v5322_v48, %v4456_v60  ;;  %v5324_v6 = vpop.f32.mrb[29].mxu1  ;;  %v4472_v60 = vadd.f32 %v11357_v10, %v10686_v15  ;;  %v11362_v10 = vld [vmem:[#allocation17_spill] sm:$0xff] }
 0x686   :  { %v5325_v18 = vpop.f32.mrb[30].mxu1 }
 0x687   :  { %v7621_v35 = vadd.f32 %v5325_v18, %v4459_v55  ;;  %v5327_v47 = vpop.f32.mrb[31].mxu1  ;;  %v5535_v2 = vmax.f32 %v7619_v63, 0.0 }
 0x689   :  { %v5536_v31 = vmax.f32 %v7621_v35, 0.0 }
 0x68b   :  { %v10782_v21 = vpack.c.bf16 %v5536_v31, %v5535_v2  ;;  %v11359_v2 = vld [vmem:[#allocation12_spill] sm:$0xff] }
 0x68c   :  { %v5330_v0 = vpop.f32.mrb[32].mxu1  ;;  %v4480_v31 = vadd.f32 %v11359_v2, %v10696_v5 }
 0x68d   :  { %v7623_v33 = vadd.f32 %v5330_v0, %v4464_v4  ;;  %v5332_v11 = vpop.f32.mrb[33].mxu1  ;;  %v11360_v0 = vld [vmem:[#allocation19_spill] sm:$0xff] }
 0x68e   :  { %v5333_v13 = vpop.f32.mrb[34].mxu1  ;;  %v4483_v17 = vadd.f32 %v11360_v0, %v10698_v19 }
 0x68f   :  { %v7625_v27 = vadd.f32 %v5333_v13, %v4467_v34  ;;  %v5335_v14 = vpop.f32.mrb[35].mxu1  ;;  %v5537_v9 = vmax.f32 %v7623_v33, 0.0 }
 0x690   :  { %v11361_v14 = vld [vmem:[#allocation18_spill] sm:$0xff] }
 0x691   :  { %v5538_v58 = vmax.f32 %v7625_v27, 0.0 }
 0x693   :  { %v5593_v61 = vpack.c.bf16 %v5538_v58, %v5537_v9  ;;  %v4488_v9 = vadd.f32 %v11361_v14, %v10713_v23  ;;  %v11363_v23 = vld [vmem:[#allocation16_spill] sm:$0xff] }
 0x694   :  { %v5338_v48 = vpop.f32.mrb[36].mxu1 }
 0x695   :  { %v7627_v55 = vadd.f32 %v5338_v48, %v4472_v60  ;;  %v5340_v63 = vpop.f32.mrb[37].mxu1  ;;  %7164 = vmatprep.subr.bf16.mxu0 %v5593_v61  ;;  %v4491_v60 = vadd.f32 %v11362_v10, %v10716_v49  ;;  %v4499_v49 = vadd.f32 %v10199_v54, %v10730_v36  ;;  %v4507_v54 = vadd.f32 %v10209_v37, %v10754_v1 }
 0x696   :  { %v5341_v6 = vpop.f32.mrb[38].mxu1  ;;  %7165 = vmatpush3.bf16.msra.mxu0 %v10719_v29  ;;  %v4515_v37 = vadd.f32 %v10226_v20, %v10762_v24  ;;  %v4523_v20 = vadd.f32 %v10244_v51, %v10774_v62 }
 0x697   :  { %v7629_v7 = vadd.f32 %v5341_v6, %v4475_v46  ;;  %v5343_v18 = vpop.f32.mrb[39].mxu1  ;;  %v5539_v35 = vmax.f32 %v7627_v55, 0.0  ;;  %v10801_v46 = vpop.permute.xlu0 %3007 }
 0x698   :  { %v10803_v6 = vpop.permute.xlu1 %3012 }
 0x699   :  { %v5540_v47 = vmax.f32 %v7629_v7, 0.0  ;;  %v4496_v7 = vadd.f32 %v11363_v23, %v10728_v43  ;;  %v4504_v43 = vadd.f32 %v10207_v59, %v10751_v56  ;;  %v4512_v56 = vadd.f32 %v10221_v53, %v10760_v41 }
 0x69a   :  { %v4520_v53 = vadd.f32 %v10239_v32, %v10771_v26 }
 0x69b   :  { %v5594_v4 = vpack.c.bf16 %v5540_v47, %v5539_v35 }
 0x69c   :  { %v5346_v15 = vpop.f32.mrb[40].mxu1  ;;  %v2933_v0 = vpop.permute.xlu1 %2932 }
 0x69d   :  { %v7631_v34 = vadd.f32 %v5346_v15, %v4480_v31  ;;  %v5348_v28 = vpop.f32.mrb[41].mxu1  ;;  %7166 = vmatprep.subr.bf16.mxu0 %v5594_v4  ;;  %v4531_v51 = vadd.f32 %v10262_v30, %v2933_v0 }
 0x69e   :  { %v5349_v33 = vpop.f32.mrb[42].mxu1  ;;  %7167 = vmatpush3.bf16.msra.mxu0 %v10733_v25 }
 0x69f   :  { %v7633_v11 = vadd.f32 %v5349_v33, %v4483_v17  ;;  %v5351_v29 = vpop.f32.mrb[43].mxu1  ;;  %v5541_v13 = vmax.f32 %v7631_v34, 0.0 }
 0x6a1   :  { %v5542_v27 = vmax.f32 %v7633_v11, 0.0 }
 0x6a3   :  { %v5595_v58 = vpack.c.bf16 %v5542_v27, %v5541_v13  ;;  %v10816_v13 = vpop.permute.xlu1 %3022 }
 0x6a4   :  { %v5354_v5 = vpop.f32.mrb[44].mxu1 }
 0x6a5   :  { %v7635_v61 = vadd.f32 %v5354_v5, %v4488_v9  ;;  %v5356_v19 = vpop.f32.mrb[45].mxu1  ;;  %7168 = vmatprep.subr.bf16.mxu0 %v5595_v58 }
 0x6a6   :  { %v5357_v48 = vpop.f32.mrb[46].mxu1  ;;  %7169 = vmatpush3.bf16.msra.mxu0 %v10743_v52  ;;  %v2928_v52 = vpop.permute.xlu0 %2927 }
 0x6a7   :  { %v7637_v45 = vadd.f32 %v5357_v48, %v4491_v60  ;;  %v5359_v25 = vpop.f32.mrb[47].mxu1  ;;  %v5543_v55 = vmax.f32 %v7635_v61, 0.0  ;;  %v2943_v10 = vpop.permute.xlu1 %2942 }
 0x6a9   :  { %v5544_v63 = vmax.f32 %v7637_v45, 0.0 }
 0x6aa   :  { %v10812_v33 = vpop.permute.xlu0 %3017 }
 0x6ab   :  { %v5596_v18 = vpack.c.bf16 %v5544_v63, %v5543_v55  ;;  %v10826_v63 = vpop.permute.xlu1 %3032 }
 0x6ac   :  { %v5362_v35 = vpop.f32.mrb[48].mxu1 }
 0x6ad   :  { %v7639_v47 = vadd.f32 %v5362_v35, %v4496_v7  ;;  %v5364_v2 = vpop.f32.mrb[49].mxu1  ;;  %7170 = vmatprep.subr.bf16.mxu0 %v5596_v18 }
 0x6ae   :  { %v5365_v31 = vpop.f32.mrb[50].mxu1  ;;  %7171 = vmatpush3.bf16.msra.mxu0 %v10757_v8  ;;  %v2938_v59 = vpop.permute.xlu0 %2937 }
 0x6af   :  { %v7641_v4 = vadd.f32 %v5365_v31, %v4499_v49  ;;  %v5367_v15 = vpop.f32.mrb[51].mxu1  ;;  %v5545_v17 = vmax.f32 %v7639_v47, 0.0  ;;  %v2953_v47 = vpop.permute.xlu1 %2952 }
 0x6b1   :  { %v5546_v34 = vmax.f32 %v7641_v4, 0.0  ;;  %v4528_v4 = vadd.f32 %v10257_v44, %v2928_v52 }
 0x6b2   :  { %v10824_v45 = vpop.permute.xlu0 %3027 }
 0x6b3   :  { %v5597_v28 = vpack.c.bf16 %v5546_v34, %v5545_v17  ;;  %v8064_v34 = vld [vmem:[#allocation6] ss:$16 sps:$4 sm:$0xff]  }
 0x6b4   :  { %v5370_v11 = vpop.f32.mrb[52].mxu1 }
 0x6b5   :  { %v7643_v36 = vadd.f32 %v5370_v11, %v4504_v43  ;;  %v5372_v29 = vpop.f32.mrb[53].mxu1  ;;  %7172 = vmatprep.subr.bf16.mxu0 %v5597_v28  ;;  %v10837_v43 = vpop.permute.xlu1 %3042  ;;  %v8069_v28 = vld [vmem:[#allocation6 + $0x24] ss:$16 sps:$4 sm:$0xff]  }
 0x6b6   :  { %v5373_v8 = vpop.f32.mrb[54].mxu1  ;;  %7173 = vmatpush3.bf16.msra.mxu0 %v10765_v22  ;;  %v4536_v29 = vadd.f32 %v10275_v39, %v2938_v59 }
 0x6b7   :  { %v7645_v27 = vadd.f32 %v5373_v8, %v4507_v54  ;;  %v5375_v14 = vpop.f32.mrb[55].mxu1  ;;  %v5547_v9 = vmax.f32 %v7643_v36, 0.0 }
 0x6b9   :  { %v5548_v58 = vmax.f32 %v7645_v27, 0.0  ;;  %v2963_v0 = vpop.permute.xlu1 %2962  ;;  %v4539_v27 = vadd.f32 %v10280_v40, %v2943_v10  ;;  %v4547_v10 = vadd.f32 %v10298_v57, %v2953_v47 }
 0x6bb   :  { %v5598_v5 = vpack.c.bf16 %v5548_v58, %v5547_v9  ;;  %v8067_v58 = vld [vmem:[#allocation6 + $0x20] ss:$16 sps:$4 sm:$0xff]  }
 0x6bc   :  { %v5378_v60 = vpop.f32.mrb[56].mxu1 }
 0x6bd   :  { %v7647_v1 = vadd.f32 %v5378_v60, %v4512_v56  ;;  %v5380_v61 = vpop.f32.mrb[57].mxu1  ;;  %7174 = vmatprep.subr.bf16.mxu0 %v5598_v5  ;;  %v8072_v56 = vld [vmem:[#allocation6 + $0x44] ss:$16 sps:$4 sm:$0xff]  }
 0x6be   :  { %v5381_v19 = vpop.f32.mrb[58].mxu1  ;;  %7175 = vmatpush3.bf16.msra.mxu0 %v10769_v42  ;;  %v2948_v42 = vpop.permute.xlu0 %2947 }
 0x6bf   :  { %v7649_v22 = vadd.f32 %v5381_v19, %v4515_v37  ;;  %v5383_v48 = vpop.f32.mrb[59].mxu1  ;;  %v5549_v25 = vmax.f32 %v7647_v1, 0.0  ;;  %v10846_v19 = vpop.permute.xlu1 %3052  ;;  %v4544_v39 = vadd.f32 %v10293_v12, %v2948_v42 }
 0x6c1   :  { %v5550_v55 = vmax.f32 %v7649_v22, 0.0 }
 0x6c2   :  { %v10834_v26 = vpop.permute.xlu0 %3037 }
 0x6c3   :  { %v5599_v41 = vpack.c.bf16 %v5550_v55, %v5549_v25  ;;  %v8070_v25 = vld [vmem:[#allocation6 + $0x40] ss:$16 sps:$4 sm:$0xff]  }
 0x6c4   :  { %v5386_v23 = vpop.f32.mrb[60].mxu1 }
 0x6c5   :  { %v7651_v24 = vadd.f32 %v5386_v23, %v4520_v53  ;;  %v5388_v7 = vpop.f32.mrb[61].mxu1  ;;  %7176 = vmatprep.subr.bf16.mxu0 %v5599_v41  ;;  %v8075_v41 = vld [vmem:[#allocation6 + $0x64] ss:$16 sps:$4 sm:$0xff]  }
 0x6c6   :  { %v5389_v18 = vpop.f32.mrb[62].mxu1  ;;  %7177 = vmatpush3.bf16.msra.mxu0 %v10777_v16  ;;  %v2958_v52 = vpop.permute.xlu0 %2957 }
 0x6c7   :  { %v7653_v35 = vadd.f32 %v5389_v18, %v4523_v20  ;;  %v5391_v49 = vpop.f32.mrb[63].mxu1  ;;  %v5551_v2 = vmax.f32 %v7651_v24, 0.0  ;;  %v2973_v24 = vpop.permute.xlu1 %2972  ;;  %v4552_v12 = vadd.f32 %v10311_v38, %v2958_v52 }
 0x6c8   :  { %v4555_v49 = vadd.f32 %v10316_v3, %v2963_v0 }
 0x6c9   :  { %v5552_v31 = vmax.f32 %v7653_v35, 0.0 }
 0x6ca   :  { %v10844_v37 = vpop.permute.xlu0 %3047 }
 0x6cb   :  { %v5600_v32 = vpack.c.bf16 %v5552_v31, %v5551_v2  ;;  %v8073_v31 = vld [vmem:[#allocation6 + $0x60] ss:$16 sps:$4 sm:$0xff]  }
 0x6cc   :  { %v5394_v15 = vpop.f32.mrb[64].mxu1 }
 0x6cd   :  { %v7655_v62 = vadd.f32 %v5394_v15, %v4528_v4  ;;  %v5396_v17 = vpop.f32.mrb[65].mxu1  ;;  %7178 = vmatprep.subr.bf16.mxu0 %v5600_v32  ;;  %v10858_v4 = vpop.permute.xlu1 %3062  ;;  %v8078_v15 = vld [vmem:[#allocation6 + $0x84] ss:$16 sps:$4 sm:$0xff]  }
 0x6ce   :  { %v5397_v16 = vpop.f32.mrb[66].mxu1  ;;  %7179 = vmatpush3.bf16.msra.mxu0 %v10782_v21  ;;  %v2968_v55 = vpop.permute.xlu0 %2967 }
 0x6cf   :  { %v7657_v11 = vadd.f32 %v5397_v16, %v4531_v51  ;;  %v5399_v54 = vpop.f32.mrb[67].mxu1  ;;  %v5553_v36 = vmax.f32 %v7655_v62, 0.0  ;;  %v4560_v16 = vadd.f32 %v10329_v50, %v2968_v55  ;;  %v11365_v50 = vld [vmem:[#allocation22_spill] sm:$0xff] }
 0x6d0   :  { %v11364_v54 = vld [vmem:[#allocation23_spill] sm:$0xff]  ;;  %v8084_v55 = vld [vmem:[#allocation6 + $0xc4] ss:$16 sps:$4 sm:$0xff]  }
 0x6d1   :  { %v5554_v44 = vmax.f32 %v7657_v11, 0.0  ;;  %6226 = vmatmul.mubr.bf16.vlgmr.msra.gmra.mrb[24].mxu0 %v8064_v34  ;;  %v2983_v11 = vpop.permute.xlu1 %2982 }
 0x6d2   :  { %6233 = vmatprep.mubr.bf16.mxu0 %v8069_v28  ;;  %v10855_v35 = vpop.permute.xlu0 %3057 }
 0x6d3   :  { %v10841_v30 = vpack.c.bf16 %v5554_v44, %v5553_v36  ;;  %v4563_v36 = vadd.f32 %v11364_v54, %v2973_v24  ;;  %v11369_v54 = vld [vmem:[#allocation26_spill] sm:$0xff] }
 0x6d4   :  { %v5402_v8 = vpop.f32.mrb[68].mxu1 }
 0x6d5   :  { %v7659_v14 = vadd.f32 %v5402_v8, %v4536_v29  ;;  %v5404_v9 = vpop.f32.mrb[69].mxu1  ;;  %v8076_v29 = vld [vmem:[#allocation6 + $0x80] ss:$16 sps:$4 sm:$0xff]   ;;  %v8081_v8 = vld [vmem:[#allocation6 + $0xa4] ss:$16 sps:$4 sm:$0xff]  }
 0x6d6   :  { %v5405_v21 = vpop.f32.mrb[70].mxu1  ;;  %v2978_v38 = vpop.permute.xlu0 %2977 }
 0x6d7   :  { %v7661_v5 = vadd.f32 %v5405_v21, %v4539_v27  ;;  %v5407_v60 = vpop.f32.mrb[71].mxu1  ;;  %v5555_v1 = vmax.f32 %v7659_v14, 0.0 }
 0x6d9   :  { %v5556_v61 = vmax.f32 %v7661_v5, 0.0  ;;  %6234 = vmatmul.mubr.bf16.gmra.mrb[28].mxu0 %v8067_v58  ;;  %v4568_v5 = vadd.f32 %v11365_v50, %v2978_v38  ;;  %v8090_v50 = vld [vmem:[#allocation6 + $0x104] ss:$16 sps:$4 sm:$0xff]  }
 0x6da   :  { %6241 = vmatprep.mubr.bf16.mxu0 %v8072_v56  ;;  %v10864_v9 = vpop.permute.xlu0 %3067  ;;  %v10866_v56 = vpop.permute.xlu1 %3072 }
 0x6db   :  { %v10849_v59 = vpack.c.bf16 %v5556_v61, %v5555_v1  ;;  %v11366_v61 = vld [vmem:[#allocation21_spill] sm:$0xff] }
 0x6dc   :  { %v5410_v40 = vpop.f32.mrb[72].mxu1 }
 0x6dd   :  { %v7663_v22 = vadd.f32 %v5410_v40, %v4544_v39  ;;  %v5412_v48 = vpop.f32.mrb[73].mxu1  ;;  %v4571_v39 = vadd.f32 %v11366_v61, %v2983_v11 }
 0x6de   :  { %v5413_v53 = vpop.f32.mrb[74].mxu1  ;;  %v2988_v48 = vpop.permute.xlu0 %2987 }
 0x6df   :  { %v7665_v23 = vadd.f32 %v5413_v53, %v4547_v10  ;;  %v5415_v20 = vpop.f32.mrb[75].mxu1  ;;  %v5557_v7 = vmax.f32 %v7663_v22, 0.0  ;;  %v8079_v22 = vld [vmem:[#allocation6 + $0xa0] ss:$16 sps:$4 sm:$0xff]  }
 0x6e1   :  { %v5558_v18 = vmax.f32 %v7665_v23, 0.0  ;;  %6242 = vmatmul.mubr.bf16.gmra.mrb[32].mxu0 %v8070_v25  ;;  %v2993_v23 = vpop.permute.xlu1 %2992 }
 0x6e2   :  { %6249 = vmatprep.mubr.bf16.mxu0 %v8075_v41 }
 0x6e3   :  { %v10853_v42 = vpack.c.bf16 %v5558_v18, %v5557_v7  ;;  %v11367_v7 = vld [vmem:[#allocation20_spill] sm:$0xff] }
 0x6e4   :  { %v5418_v57 = vpop.f32.mrb[76].mxu1  ;;  %v4576_v18 = vadd.f32 %v11367_v7, %v2988_v48 }
 0x6e5   :  { %v7667_v47 = vadd.f32 %v5418_v57, %v4552_v12  ;;  %v5420_v2 = vpop.f32.mrb[77].mxu1  ;;  %v10875_v57 = vpop.permute.xlu0 %3077 }
 0x6e6   :  { %v5421_v32 = vpop.f32.mrb[78].mxu1 }
 0x6e7   :  { %v7669_v51 = vadd.f32 %v5421_v32, %v4555_v49  ;;  %v5423_v62 = vpop.f32.mrb[79].mxu1  ;;  %v5559_v17 = vmax.f32 %v7667_v47, 0.0  ;;  %v11368_v47 = vld [vmem:[#allocation27_spill] sm:$0xff] }
 0x6e8   :  { %v4579_v2 = vadd.f32 %v11368_v47, %v2993_v23  ;;  %v8088_v23 = vld [vmem:[#allocation6 + $0x100] ss:$16 sps:$4 sm:$0xff]  }
 0x6e9   :  { %v5560_v34 = vmax.f32 %v7669_v51, 0.0  ;;  %6250 = vmatmul.mubr.bf16.gmra.mrb[36].mxu0 %v8073_v31  ;;  %v10878_v51 = vpop.permute.xlu1 %3082 }
 0x6ea   :  { %6257 = vmatprep.mubr.bf16.mxu0 %v8078_v15  ;;  %v8082_v15 = vld [vmem:[#allocation6 + $0xc0] ss:$16 sps:$4 sm:$0xff]  }
 0x6eb   :  { %v10861_v28 = vpack.c.bf16 %v5560_v34, %v5559_v17  ;;  %v8087_v17 = vld [vmem:[#allocation6 + $0xe4] ss:$16 sps:$4 sm:$0xff]  }
 0x6ec   :  { %v5426_v3 = vpop.f32.mrb[80].mxu1 }
 0x6ed   :  { %v7671_v44 = vadd.f32 %v5426_v3, %v4560_v16  ;;  %v5428_v52 = vpop.f32.mrb[81].mxu1  ;;  %v2998_v3 = vpop.permute.xlu0 %2997 }
 0x6ee   :  { %v5429_v0 = vpop.f32.mrb[82].mxu1  ;;  %v3003_v52 = vpop.permute.xlu1 %3002 }
 0x6ef   :  { %v7673_v27 = vadd.f32 %v5429_v0, %v4563_v36  ;;  %v5431_v14 = vpop.f32.mrb[83].mxu1  ;;  %v5561_v58 = vmax.f32 %v7671_v44, 0.0  ;;  %v4584_v36 = vadd.f32 %v11369_v54, %v2998_v3  ;;  %v11370_v0 = vld [vmem:[#allocation25_spill] sm:$0xff] }
 0x6f1   :  { %v5562_v21 = vmax.f32 %v7673_v27, 0.0  ;;  %6258 = vmatmul.mubr.bf16.gmra.mrb[40].mxu0 %v8076_v29 }
 0x6f2   :  { %6265 = vmatprep.mubr.bf16.mxu0 %v8081_v8  ;;  %v4587_v8 = vadd.f32 %v11370_v0, %v3003_v52 }
 0x6f3   :  { %v10869_v60 = vpack.c.bf16 %v5562_v21, %v5561_v58  ;;  %v8085_v58 = vld [vmem:[#allocation6 + $0xe0] ss:$16 sps:$4 sm:$0xff]  }
 0x6f4   :  { %v5434_v1 = vpop.f32.mrb[84].mxu1 }
 0x6f5   :  { %v7675_v40 = vadd.f32 %v5434_v1, %v4568_v5  ;;  %v5436_v10 = vpop.f32.mrb[85].mxu1 }
 0x6f6   :  { %v5437_v25 = vpop.f32.mrb[86].mxu1 }
 0x6f7   :  { %v7677_v53 = vadd.f32 %v5437_v25, %v4571_v39  ;;  %v5439_v41 = vpop.f32.mrb[87].mxu1  ;;  %v5563_v20 = vmax.f32 %v7675_v40, 0.0  ;;  %v11371_v40 = vld [vmem:[#allocation24_spill] sm:$0xff]  ;;  %v11372_v25 = vld [vmem:[#allocation31_spill] sm:$0xff] }
 0x6f8   :  { %v4592_v10 = vadd.f32 %v11371_v40, %v10801_v46 }
 0x6f9   :  { %v5564_v24 = vmax.f32 %v7677_v53, 0.0  ;;  %6266 = vmatmul.mubr.bf16.gmra.mrb[44].mxu0 %v8079_v22 }
 0x6fa   :  { %6273 = vmatprep.mubr.bf16.mxu0 %v8084_v55  ;;  %v4595_v55 = vadd.f32 %v11372_v25, %v10803_v6 }
 0x6fb   :  { %v10873_v12 = vpack.c.bf16 %v5564_v24, %v5563_v20  ;;  %v8093_v24 = vld [vmem:[#allocation6 + $0x124] ss:$16 sps:$4 sm:$0xff]  }
 0x6fc   :  { %v5442_v49 = vpop.f32.mrb[88].mxu1 }
 0x6fd   :  { %v7679_v31 = vadd.f32 %v5442_v49, %v4576_v18  ;;  %v5444_v32 = vpop.f32.mrb[89].mxu1 }
 0x6fe   :  { %v5445_v62 = vpop.f32.mrb[90].mxu1 }
 0x6ff   :  { %v7681_v34 = vadd.f32 %v5445_v62, %v4579_v2  ;;  %v5447_v38 = vpop.f32.mrb[91].mxu1  ;;  %v5565_v16 = vmax.f32 %v7679_v31, 0.0  ;;  %v11373_v2 = vld [vmem:[#allocation30_spill] sm:$0xff] }
 0x700   :  { %v4600_v46 = vadd.f32 %v11373_v2, %v10812_v33  ;;  %v11375_v33 = vld [vmem:[#allocation28_spill] sm:$0xff] }
 0x701   :  { %v5566_v11 = vmax.f32 %v7681_v34, 0.0  ;;  %6274 = vmatmul.mubr.bf16.gmra.mrb[48].mxu0 %v8082_v15  ;;  %v11374_v15 = vld [vmem:[#allocation29_spill] sm:$0xff]  ;;  %v4608_v52 = vadd.f32 %v11375_v33, %v10824_v45  ;;  %v11377_v45 = vld [vmem:[#allocation34_spill] sm:$0xff] }
 0x702   :  { %6281 = vmatprep.mubr.bf16.mxu0 %v8087_v17  ;;  %v4603_v62 = vadd.f32 %v11374_v15, %v10816_v13  ;;  %v8091_v34 = vld [vmem:[#allocation6 + $0x120] ss:$16 sps:$4 sm:$0xff]   ;;  %v8105_v15 = vld [vmem:[#allocation6 + $0x1a4] ss:$16 sps:$4 sm:$0xff]  }
 0x703   :  { %v10881_v44 = vpack.c.bf16 %v5566_v11, %v5565_v16  ;;  %v8096_v16 = vld [vmem:[#allocation6 + $0x144] ss:$16 sps:$4 sm:$0xff]   ;;  %v11376_v13 = vld [vmem:[#allocation35_spill] sm:$0xff] }
 0x704   :  { %v5450_v29 = vpop.f32.mrb[92].mxu1  ;;  %v8103_v33 = vld [vmem:[#allocation6 + $0x1a0] ss:$16 sps:$4 sm:$0xff]  }
 0x705   :  { %v7683_v27 = vadd.f32 %v5450_v29, %v4584_v36  ;;  %v5452_v14 = vpop.f32.mrb[93].mxu1 }
 0x706   :  { %v5453_v21 = vpop.f32.mrb[94].mxu1 }
 0x707   :  { %v7685_v5 = vadd.f32 %v5453_v21, %v4587_v8  ;;  %v5455_v1 = vpop.f32.mrb[95].mxu1  ;;  %v5567_v61 = vmax.f32 %v7683_v27, 0.0  ;;  %v4611_v8 = vadd.f32 %v11376_v13, %v10826_v63  ;;  %v8099_v21 = vld [vmem:[#allocation6 + $0x164] ss:$16 sps:$4 sm:$0xff]   ;;  %v11378_v63 = vld [vmem:[#allocation33_spill] sm:$0xff] }
 0x709   :  { %v5568_v39 = vmax.f32 %v7685_v5, 0.0  ;;  %6282 = vmatmul.mubr.bf16.gmra.mrb[52].mxu0 %v8085_v58  ;;  %v8094_v58 = vld [vmem:[#allocation6 + $0x140] ss:$16 sps:$4 sm:$0xff]  }
 0x70a   :  { %6289 = vmatprep.mubr.bf16.mxu0 %v8090_v50 }
 0x70b   :  { %v10886_v22 = vpack.c.bf16 %v5568_v39, %v5567_v61  ;;  %v4616_v39 = vadd.f32 %v11377_v45, %v10834_v26  ;;  %v11379_v26 = vld [vmem:[#allocation32_spill] sm:$0xff] }
 0x70c   :  { %v5458_v48 = vpop.f32.mrb[96].mxu1 }
 0x70d   :  { %v7687_v53 = vadd.f32 %v5458_v48, %v4592_v10  ;;  %v5460_v41 = vpop.f32.mrb[97].mxu1  ;;  %v4619_v48 = vadd.f32 %v11378_v63, %v10837_v43  ;;  %v11380_v43 = vld [vmem:[#allocation39_spill] sm:$0xff] }
 0x70e   :  { %v5461_v20 = vpop.f32.mrb[98].mxu1  ;;  %v8102_v41 = vld [vmem:[#allocation6 + $0x184] ss:$16 sps:$4 sm:$0xff]   ;;  %v4627_v2 = vadd.f32 %v11380_v43, %v10846_v19  ;;  %v11382_v19 = vld [vmem:[#allocation37_spill] sm:$0xff] }
 0x70f   :  { %v7689_v7 = vadd.f32 %v5461_v20, %v4595_v55  ;;  %v5463_v18 = vpop.f32.mrb[99].mxu1  ;;  %v5569_v49 = vmax.f32 %v7687_v53, 0.0  ;;  %v8097_v53 = vld [vmem:[#allocation6 + $0x160] ss:$16 sps:$4 sm:$0xff]   ;;  %v8121_v43 = vld [vmem:[#allocation6 + $0x68] ss:$16 sps:$4 sm:$0xff]  }
 0x710   :  { %v4624_v18 = vadd.f32 %v11379_v26, %v10844_v37  ;;  %v11381_v37 = vld [vmem:[#allocation38_spill] sm:$0xff] }
 0x711   :  { %v5570_v47 = vmax.f32 %v7689_v7, 0.0  ;;  %6290 = vmatmul.mubr.bf16.gmra.mrb[56].mxu0 %v8088_v23  ;;  %v8112_v26 = vld [vmem:[#allocation6 + $0x8] ss:$16 sps:$4 sm:$0xff]  }
 0x712   :  { %6297 = vmatprep.mubr.bf16.mxu0 %v8093_v24 }
 0x713   :  { %v5609_v31 = vpack.c.bf16 %v5570_v47, %v5569_v49 }
 0x714   :  { %v5466_v32 = vpop.f32.mrb[100].mxu1 }
 0x715   :  { %v7691_v6 = vadd.f32 %v5466_v32, %v4600_v46  ;;  %v5468_v17 = vpop.f32.mrb[101].mxu1  ;;  %7276 = vmatprep.subr.bf16.mxu0 %v5609_v31  ;;  %v8100_v32 = vld [vmem:[#allocation6 + $0x180] ss:$16 sps:$4 sm:$0xff]  }
 0x716   :  { %v5469_v38 = vpop.f32.mrb[102].mxu1  ;;  %7277 = vmatpush3.bf16.msra.mxu0 %v10841_v30 }
 0x717   :  { %v7693_v11 = vadd.f32 %v5469_v38, %v4603_v62  ;;  %v5471_v3 = vpop.f32.mrb[103].mxu1  ;;  %v5571_v54 = vmax.f32 %v7691_v6, 0.0  ;;  %v4632_v38 = vadd.f32 %v11381_v37, %v10855_v35  ;;  %v11383_v35 = vld [vmem:[#allocation36_spill] sm:$0xff] }
 0x718   :  { %v4635_v3 = vadd.f32 %v11382_v19, %v10858_v4  ;;  %v11384_v4 = vld [vmem:[#allocation43_spill] sm:$0xff] }
 0x719   :  { %v5572_v36 = vmax.f32 %v7693_v11, 0.0  ;;  %6298 = vmatmul.mubr.bf16.gmra.mrb[60].mxu0 %v8091_v34  ;;  %v8139_v37 = vld [vmem:[#allocation6 + $0x128] ss:$16 sps:$4 sm:$0xff]  }
 0x71a   :  { %6305 = vmatprep.mubr.bf16.mxu0 %v8096_v16 }
 0x71b   :  { %v5610_v29 = vpack.c.bf16 %v5572_v36, %v5571_v54 }
 0x71c   :  { %v5474_v0 = vpop.f32.mrb[104].mxu1 }
 0x71d   :  { %v7695_v27 = vadd.f32 %v5474_v0, %v4608_v52  ;;  %v5476_v14 = vpop.f32.mrb[105].mxu1  ;;  %7278 = vmatprep.subr.bf16.mxu0 %v5610_v29  ;;  %v8108_v52 = vld [vmem:[#allocation6 + $0x1c4] ss:$16 sps:$4 sm:$0xff]  }
 0x71e   :  { %v5477_v30 = vpop.f32.mrb[106].mxu1  ;;  %7279 = vmatpush3.bf16.msra.mxu0 %v10849_v59 }
 0x71f   :  { %v7697_v50 = vadd.f32 %v5477_v30, %v4611_v8  ;;  %v5479_v5 = vpop.f32.mrb[107].mxu1  ;;  %v5573_v1 = vmax.f32 %v7695_v27, 0.0  ;;  %v4640_v27 = vadd.f32 %v11383_v35, %v10864_v9  ;;  %v4643_v30 = vadd.f32 %v11384_v4, %v10866_v56  ;;  %v11385_v9 = vld [vmem:[#allocation42_spill] sm:$0xff]  ;;  %v11386_v56 = vld [vmem:[#allocation41_spill] sm:$0xff] }
 0x720   :  { %v8106_v5 = vld [vmem:[#allocation6 + $0x1c0] ss:$16 sps:$4 sm:$0xff]  }
 0x721   :  { %v5574_v61 = vmax.f32 %v7697_v50, 0.0  ;;  %6306 = vmatmul.mubr.bf16.gmra.mrb[64].mxu0 %v8094_v58 }
 0x722   :  { %6313 = vmatprep.mubr.bf16.mxu0 %v8099_v21 }
 0x723   :  { %v5611_v40 = vpack.c.bf16 %v5574_v61, %v5573_v1  ;;  %v8111_v1 = vld [vmem:[#allocation6 + $0x1e4] ss:$16 sps:$4 sm:$0xff]  }
 0x724   :  { %v5482_v10 = vpop.f32.mrb[108].mxu1 }
 0x725   :  { %v7699_v25 = vadd.f32 %v5482_v10, %v4616_v39  ;;  %v5484_v55 = vpop.f32.mrb[109].mxu1  ;;  %7280 = vmatprep.subr.bf16.mxu0 %v5611_v40  ;;  %v4648_v10 = vadd.f32 %v11385_v9, %v10875_v57  ;;  %v8154_v9 = vld [vmem:[#allocation6 + $0x1c8] ss:$16 sps:$4 sm:$0xff]  }
 0x726   :  { %v5485_v59 = vpop.f32.mrb[110].mxu1  ;;  %7281 = vmatpush3.bf16.msra.mxu0 %v10853_v42 }
 0x727   :  { %v7701_v23 = vadd.f32 %v5485_v59, %v4619_v48  ;;  %v5487_v20 = vpop.f32.mrb[111].mxu1  ;;  %v5575_v24 = vmax.f32 %v7699_v25, 0.0  ;;  %v4651_v25 = vadd.f32 %v11386_v56, %v10878_v51  ;;  %v8109_v59 = vld [vmem:[#allocation6 + $0x1e0] ss:$16 sps:$4 sm:$0xff]   ;;  %v8117_v51 = vld [vmem:[#allocation6 + $0x2c] ss:$16 sps:$4 sm:$0xff]  }
 0x729   :  { %v5576_v7 = vmax.f32 %v7701_v23, 0.0  ;;  %6314 = vmatmul.mubr.bf16.gmra.mrb[68].mxu0 %v8097_v53 }
 0x72a   :  { %6321 = vmatprep.mubr.bf16.mxu0 %v8102_v41  ;;  %v8114_v41 = vld [vmem:[#allocation6 + $0xc] ss:$16 sps:$4 sm:$0xff]  }
 0x72b   :  { %v5612_v49 = vpack.c.bf16 %v5576_v7, %v5575_v24 }
 0x72c   :  { %v5490_v47 = vpop.f32.mrb[112].mxu1 }
 0x72d   :  { %v7703_v46 = vadd.f32 %v5490_v47, %v4624_v18  ;;  %v5492_v31 = vpop.f32.mrb[113].mxu1  ;;  %7282 = vmatprep.subr.bf16.mxu0 %v5612_v49  ;;  %v8115_v18 = vld [vmem:[#allocation6 + $0x28] ss:$16 sps:$4 sm:$0xff]   ;;  %v8120_v49 = vld [vmem:[#allocation6 + $0x4c] ss:$16 sps:$4 sm:$0xff]  }
 0x72e   :  { %v5493_v42 = vpop.f32.mrb[114].mxu1  ;;  %7283 = vmatpush3.bf16.msra.mxu0 %v10861_v28  ;;  %v8123_v47 = vld [vmem:[#allocation6 + $0x6c] ss:$16 sps:$4 sm:$0xff]  }
 0x72f   :  { %v7705_v62 = vadd.f32 %v5493_v42, %v4627_v2  ;;  %v5495_v6 = vpop.f32.mrb[115].mxu1  ;;  %v5577_v17 = vmax.f32 %v7703_v46, 0.0  ;;  %v8126_v2 = vld [vmem:[#allocation6 + $0x8c] ss:$16 sps:$4 sm:$0xff]   ;;  %v8124_v46 = vld [vmem:[#allocation6 + $0x88] ss:$16 sps:$4 sm:$0xff]  }
 0x730   :  { %v8129_v31 = vld [vmem:[#allocation6 + $0xac] ss:$16 sps:$4 sm:$0xff]   ;;  %v8130_v42 = vld [vmem:[#allocation6 + $0xc8] ss:$16 sps:$4 sm:$0xff]  }
 0x731   :  { %v5578_v34 = vmax.f32 %v7705_v62, 0.0  ;;  %6322 = vmatmul.mubr.bf16.gmra.mrb[72].mxu0 %v8100_v32  ;;  %v8132_v32 = vld [vmem:[#allocation6 + $0xcc] ss:$16 sps:$4 sm:$0xff]   ;;  %v8133_v62 = vld [vmem:[#allocation6 + $0xe8] ss:$16 sps:$4 sm:$0xff]  }
 0x732   :  { %6329 = vmatprep.mubr.bf16.mxu0 %v8105_v15  ;;  %v8135_v15 = vld [vmem:[#allocation6 + $0xec] ss:$16 sps:$4 sm:$0xff]  }
 0x733   :  { %v5613_v16 = vpack.c.bf16 %v5578_v34, %v5577_v17  ;;  %v8138_v6 = vld [vmem:[#allocation6 + $0x10c] ss:$16 sps:$4 sm:$0xff]   ;;  %v8136_v17 = vld [vmem:[#allocation6 + $0x108] ss:$16 sps:$4 sm:$0xff]  }
 0x734   :  { %v5498_v11 = vpop.f32.mrb[116].mxu1  ;;  %v8141_v34 = vld [vmem:[#allocation6 + $0x12c] ss:$16 sps:$4 sm:$0xff]  }
 0x735   :  { %v7707_v54 = vadd.f32 %v5498_v11, %v4632_v38  ;;  %v5500_v36 = vpop.f32.mrb[117].mxu1  ;;  %7284 = vmatprep.subr.bf16.mxu0 %v5613_v16  ;;  %v8144_v38 = vld [vmem:[#allocation6 + $0x14c] ss:$16 sps:$4 sm:$0xff]   ;;  %v8142_v16 = vld [vmem:[#allocation6 + $0x148] ss:$16 sps:$4 sm:$0xff]  }
 0x736   :  { %v5501_v28 = vpop.f32.mrb[118].mxu1  ;;  %7285 = vmatpush3.bf16.msra.mxu0 %v10869_v60  ;;  %v8147_v11 = vld [vmem:[#allocation6 + $0x16c] ss:$16 sps:$4 sm:$0xff]  }
 0x737   :  { %v7709_v29 = vadd.f32 %v5501_v28, %v4635_v3  ;;  %v5503_v0 = vpop.f32.mrb[119].mxu1  ;;  %v5579_v13 = vmax.f32 %v7707_v54, 0.0  ;;  %v8145_v54 = vld [vmem:[#allocation6 + $0x168] ss:$16 sps:$4 sm:$0xff]   ;;  %v8150_v28 = vld [vmem:[#allocation6 + $0x18c] ss:$16 sps:$4 sm:$0xff]  }
 0x739   :  { %v5580_v8 = vmax.f32 %v7709_v29, 0.0  ;;  %6330 = vmatmul.mubr.bf16.gmra.mrb[76].mxu0 %v8103_v33 }
 0x73a   :  { %6337 = vmatprep.mubr.bf16.mxu0 %v8108_v52 }
 0x73b   :  { %v5614_v14 = vpack.c.bf16 %v5580_v8, %v5579_v13  ;;  %v8148_v8 = vld [vmem:[#allocation6 + $0x188] ss:$16 sps:$4 sm:$0xff]  }
 0x73c   :  { %v5506_v58 = vpop.f32.mrb[120].mxu1 }
 0x73d   :  { %v7711_v21 = vadd.f32 %v5506_v58, %v4640_v27  ;;  %v5508_v50 = vpop.f32.mrb[121].mxu1  ;;  %7286 = vmatprep.subr.bf16.mxu0 %v5614_v14  ;;  %v8153_v14 = vld [vmem:[#allocation6 + $0x1ac] ss:$16 sps:$4 sm:$0xff]  }
 0x73e   :  { %v5509_v60 = vpop.f32.mrb[122].mxu1  ;;  %7287 = vmatpush3.bf16.msra.mxu0 %v10873_v12  ;;  %v8151_v50 = vld [vmem:[#allocation6 + $0x1a8] ss:$16 sps:$4 sm:$0xff]  }
 0x73f   :  { %v7713_v61 = vadd.f32 %v5509_v60, %v4643_v30  ;;  %v5511_v45 = vpop.f32.mrb[123].mxu1  ;;  %v5581_v39 = vmax.f32 %v7711_v21, 0.0 }
 0x741   :  { %v5582_v40 = vmax.f32 %v7713_v61, 0.0  ;;  %6338 = vmatmul.mubr.bf16.gmra.mrb[80].mxu0 %v8106_v5 }
 0x742   :  { %6345 = vmatprep.mubr.bf16.mxu0 %v8111_v1  ;;  %v8156_v1 = vld [vmem:[#allocation6 + $0x1cc] ss:$16 sps:$4 sm:$0xff]  }
 0x743   :  { %v5615_v63 = vpack.c.bf16 %v5582_v40, %v5581_v39 }
 0x744   :  { %v5514_v48 = vpop.f32.mrb[124].mxu1 }
 0x745   :  { %v7715_v55 = vadd.f32 %v5514_v48, %v4648_v10  ;;  %v5516_v53 = vpop.f32.mrb[125].mxu1  ;;  %7288 = vmatprep.subr.bf16.mxu0 %v5615_v63  ;;  %v8159_v48 = vld [vmem:[#allocation6 + $0x1ec] ss:$16 sps:$4 sm:$0xff]  }
 0x746   :  { %v5517_v12 = vpop.f32.mrb[126].mxu1  ;;  %7289 = vmatpush3.bf16.msra.mxu0 %v10881_v44  ;;  %v8118_v44 = vld [vmem:[#allocation6 + $0x48] ss:$16 sps:$4 sm:$0xff]  }
 0x747   :  { %v7717_v23 = vadd.f32 %v5517_v12, %v4651_v25  ;;  %v5519_v20 = vpop.f32.mrb[127].mxu1  ;;  %v5583_v24 = vmax.f32 %v7715_v55, 0.0 }
 0x749   :  { %v5584_v7 = vmax.f32 %v7717_v23, 0.0  ;;  %6346 = vmatmul.mubr.bf16.gmra.mrb[84].mxu0 %v8109_v59  ;;  %v8157_v59 = vld [vmem:[#allocation6 + $0x1e8] ss:$16 sps:$4 sm:$0xff]  }
 0x74a   :  { %6386 = vmatprep.mubr.bf16.mxu0 %v8114_v41 }
 0x74b   :  { %v5616_v57 = vpack.c.bf16 %v5584_v7, %v5583_v24 }
 0x74d   :  { %7290 = vmatprep.subr.bf16.mxu0 %v5616_v57 }
 0x74e   :  { %7291 = vmatpush3.bf16.msra.mxu0 %v10886_v22  ;;  %v8127_v22 = vld [vmem:[#allocation6 + $0xa8] ss:$16 sps:$4 sm:$0xff]  }
 0x751   :  { %6387 = vmatmul.mubr.bf16.vlgmr.msra.gmra.mrb[88].mxu0 %v8112_v26 }
 0x752   :  { %6394 = vmatprep.mubr.bf16.mxu0 %v8117_v51 }
 0x759   :  { %6395 = vmatmul.mubr.bf16.gmra.mrb[92].mxu0 %v8115_v18 }
 0x75a   :  { %6402 = vmatprep.mubr.bf16.mxu0 %v8120_v49 }
 0x761   :  { %6403 = vmatmul.mubr.bf16.gmra.mrb[96].mxu0 %v8118_v44 }
 0x762   :  { %6410 = vmatprep.mubr.bf16.mxu0 %v8123_v47 }
 0x769   :  { %6411 = vmatmul.mubr.bf16.gmra.mrb[100].mxu0 %v8121_v43 }
 0x76a   :  { %6418 = vmatprep.mubr.bf16.mxu0 %v8126_v2 }
 0x771   :  { %6419 = vmatmul.mubr.bf16.gmra.mrb[104].mxu0 %v8124_v46 }
 0x772   :  { %6426 = vmatprep.mubr.bf16.mxu0 %v8129_v31 }
 0x779   :  { %6427 = vmatmul.mubr.bf16.gmra.mrb[108].mxu0 %v8127_v22 }
 0x77a   :  { %6434 = vmatprep.mubr.bf16.mxu0 %v8132_v32 }
 0x781   :  { %6435 = vmatmul.mubr.bf16.gmra.mrb[112].mxu0 %v8130_v42 }
 0x782   :  { %6442 = vmatprep.mubr.bf16.mxu0 %v8135_v15 }
 0x789   :  { %6443 = vmatmul.mubr.bf16.gmra.mrb[116].mxu0 %v8133_v62 }
 0x78a   :  { %6450 = vmatprep.mubr.bf16.mxu0 %v8138_v6 }
 0x791   :  { %6451 = vmatmul.mubr.bf16.gmra.mrb[120].mxu0 %v8136_v17 }
 0x792   :  { %6458 = vmatprep.mubr.bf16.mxu0 %v8141_v34 }
 0x799   :  { %6459 = vmatmul.mubr.bf16.gmra.mrb[124].mxu0 %v8139_v37 }
 0x79a   :  { %6466 = vmatprep.mubr.bf16.mxu0 %v8144_v38 }
 0x7a1   :  { %6467 = vmatmul.mubr.bf16.gmra.mrb[128].mxu0 %v8142_v16 }
 0x7a2   :  { %6474 = vmatprep.mubr.bf16.mxu0 %v8147_v11 }
 0x7a4   :  { %v7180_v19 = vpop.f32.mrb[24].mxu0 }
 0x7a5   :  { %v7181_v3 = vpop.f32.mrb[25].mxu0 }
 0x7a6   :  { %v10926_v36 = vadd.f32 %v7181_v3, %v7180_v19  ;;  %v7183_v33 = vpop.f32.mrb[26].mxu0 }
 0x7a7   :  { %v7184_v52 = vpop.f32.mrb[27].mxu0 }
 0x7a8   :  { %v10928_v29 = vadd.f32 %v7184_v52, %v7183_v33 }
 0x7a9   :  { %6475 = vmatmul.mubr.bf16.gmra.mrb[132].mxu0 %v8145_v54 }
 0x7aa   :  { %6482 = vmatprep.mubr.bf16.mxu0 %v8150_v28 }
 0x7ac   :  { %v7186_v0 = vpop.f32.mrb[28].mxu0 }
 0x7ad   :  { %v7187_v13 = vpop.f32.mrb[29].mxu0 }
 0x7ae   :  { %v10930_v35 = vadd.f32 %v7187_v13, %v7186_v0  ;;  %v7189_v27 = vpop.f32.mrb[30].mxu0 }
 0x7af   :  { %v7190_v58 = vpop.f32.mrb[31].mxu0 }
 0x7b0   :  { %v10932_v4 = vadd.f32 %v7190_v58, %v7189_v27 }
 0x7b1   :  { %6483 = vmatmul.mubr.bf16.gmra.mrb[136].mxu0 %v8148_v8 }
 0x7b2   :  { %6490 = vmatprep.mubr.bf16.mxu0 %v8153_v14 }
 0x7b4   :  { %v7192_v30 = vpop.f32.mrb[32].mxu0 }
 0x7b5   :  { %v7193_v21 = vpop.f32.mrb[33].mxu0 }
 0x7b6   :  { %v10934_v5 = vadd.f32 %v7193_v21, %v7192_v30  ;;  %v7195_v60 = vpop.f32.mrb[34].mxu0 }
 0x7b7   :  { %v7196_v61 = vpop.f32.mrb[35].mxu0 }
 0x7b8   :  { %v10936_v45 = vadd.f32 %v7196_v61, %v7195_v60  ;;  %v10974_v61 = vpop.permute.xlu0 %5795 }
 0x7b9   :  { %6491 = vmatmul.mubr.bf16.gmra.mrb[140].mxu0 %v8151_v50 }
 0x7ba   :  { %6498 = vmatprep.mubr.bf16.mxu0 %v8156_v1 }
 0x7bc   :  { %v7198_v39 = vpop.f32.mrb[36].mxu0 }
 0x7bd   :  { %v7199_v40 = vpop.f32.mrb[37].mxu0 }
 0x7be   :  { %v10938_v10 = vadd.f32 %v7199_v40, %v7198_v39  ;;  %v7201_v63 = vpop.f32.mrb[38].mxu0  ;;  %v10976_v40 = vpop.permute.xlu1 %5800 }
 0x7bf   :  { %v7202_v56 = vpop.f32.mrb[39].mxu0 }
 0x7c0   :  { %v10940_v25 = vadd.f32 %v7202_v56, %v7201_v63 }
 0x7c1   :  { %6499 = vmatmul.mubr.bf16.gmra.mrb[144].mxu0 %v8154_v9 }
 0x7c2   :  { %6506 = vmatprep.mubr.bf16.mxu0 %v8159_v48 }
 0x7c4   :  { %v7204_v55 = vpop.f32.mrb[40].mxu0 }
 0x7c5   :  { %v7205_v53 = vpop.f32.mrb[41].mxu0 }
 0x7c6   :  { %v10942_v12 = vadd.f32 %v7205_v53, %v7204_v55  ;;  %v7207_v41 = vpop.f32.mrb[42].mxu0  ;;  %v5716_v53 = vpop.permute.xlu0 %5715 }
 0x7c7   :  { %v7208_v23 = vpop.f32.mrb[43].mxu0 }
 0x7c8   :  { %v10944_v20 = vadd.f32 %v7208_v23, %v7207_v41 }
 0x7c9   :  { %6507 = vmatmul.mubr.bf16.gmra.mrb[148].mxu0 %v8157_v59  ;;  %v5721_v59 = vpop.permute.xlu1 %5720 }
 0x7cc   :  { %v7210_v24 = vpop.f32.mrb[44].mxu0 }
 0x7cd   :  { %v7211_v7 = vpop.f32.mrb[45].mxu0 }
 0x7ce   :  { %v10946_v57 = vadd.f32 %v7211_v7, %v7210_v24  ;;  %v7213_v26 = vpop.f32.mrb[46].mxu0 }
 0x7cf   :  { %v7214_v51 = vpop.f32.mrb[47].mxu0 }
 0x7d0   :  { %v10948_v18 = vadd.f32 %v7214_v51, %v7213_v26  ;;  %v10984_v26 = vpop.permute.xlu0 %5805 }
 0x7d4   :  { %v7216_v49 = vpop.f32.mrb[48].mxu0 }
 0x7d5   :  { %v7217_v44 = vpop.f32.mrb[49].mxu0 }
 0x7d6   :  { %v10950_v47 = vadd.f32 %v7217_v44, %v7216_v49  ;;  %v7219_v43 = vpop.f32.mrb[50].mxu0  ;;  %v10988_v44 = vpop.permute.xlu1 %5810 }
 0x7d7   :  { %v7220_v2 = vpop.f32.mrb[51].mxu0 }
 0x7d8   :  { %v10952_v46 = vadd.f32 %v7220_v2, %v7219_v43  ;;  %v5726_v2 = vpop.permute.xlu0 %5725 }
 0x7dc   :  { %v7222_v31 = vpop.f32.mrb[52].mxu0 }
 0x7dd   :  { %v7223_v22 = vpop.f32.mrb[53].mxu0 }
 0x7de   :  { %v10954_v32 = vadd.f32 %v7223_v22, %v7222_v31  ;;  %v7225_v42 = vpop.f32.mrb[54].mxu0 }
 0x7df   :  { %v7226_v15 = vpop.f32.mrb[55].mxu0 }
 0x7e0   :  { %v10956_v62 = vadd.f32 %v7226_v15, %v7225_v42  ;;  %v5731_v15 = vpop.permute.xlu1 %5730 }
 0x7e4   :  { %v7228_v6 = vpop.f32.mrb[56].mxu0 }
 0x7e5   :  { %v7229_v17 = vpop.f32.mrb[57].mxu0 }
 0x7e6   :  { %v10958_v34 = vadd.f32 %v7229_v17, %v7228_v6  ;;  %v7231_v37 = vpop.f32.mrb[58].mxu0 }
 0x7e7   :  { %v7232_v38 = vpop.f32.mrb[59].mxu0 }
 0x7e8   :  { %v10960_v16 = vadd.f32 %v7232_v38, %v7231_v37  ;;  %v10994_v37 = vpop.permute.xlu0 %5815 }
 0x7ec   :  { %v7234_v11 = vpop.f32.mrb[60].mxu0 }
 0x7ed   :  { %v7235_v19 = vpop.f32.mrb[61].mxu0 }
 0x7ee   :  { %v10962_v3 = vadd.f32 %v7235_v19, %v7234_v11  ;;  %v7237_v54 = vpop.f32.mrb[62].mxu0  ;;  %v10996_v11 = vpop.permute.xlu1 %5820 }
 0x7ef   :  { %v7238_v33 = vpop.f32.mrb[63].mxu0 }
 0x7f0   :  { %v10964_v28 = vadd.f32 %v7238_v33, %v7237_v54 }
 0x7f4   :  { %v7240_v52 = vpop.f32.mrb[64].mxu0 }
 0x7f5   :  { %v7241_v0 = vpop.f32.mrb[65].mxu0 }
 0x7f6   :  { %v10966_v13 = vadd.f32 %v7241_v0, %v7240_v52  ;;  %v7243_v8 = vpop.f32.mrb[66].mxu0 }
 0x7f7   :  { %v7244_v27 = vpop.f32.mrb[67].mxu0 }
 0x7f8   :  { %v10968_v14 = vadd.f32 %v7244_v27, %v7243_v8  ;;  %v5736_v8 = vpop.permute.xlu0 %5735  ;;  %v6570_v27 = vlaneseq }
 0x7fc   :  { %v7246_v58 = vpop.f32.mrb[68].mxu0 }
 0x7fd   :  { %v7247_v30 = vpop.f32.mrb[69].mxu0 }
 0x7fe   :  { %v10970_v21 = vadd.f32 %v7247_v30, %v7246_v58  ;;  %v7249_v50 = vpop.f32.mrb[70].mxu0  ;;  %v5741_v58 = vpop.permute.xlu1 %5740 }
 0x7ff   :  { %v7250_v60 = vpop.f32.mrb[71].mxu0 }
 0x800   :  { %v10972_v1 = vadd.f32 %v7250_v60, %v7249_v50  ;;  %v8243_v50 = vmov 1966171168  }
 0x801   :  { %v6584_v60 = vunpack.c.l.s4 %v8243_v50 }
 0x804   :  { %v7252_v39 = vpop.f32.mrb[72].mxu0 }
 0x805   :  { %v7253_v9 = vpop.f32.mrb[73].mxu0 }
 0x806   :  { %v10978_v63 = vadd.f32 %v7253_v9, %v7252_v39  ;;  %v7255_v48 = vpop.f32.mrb[74].mxu0  ;;  %v11002_v9 = vshrl.u32 %v6570_v27, 7 }
 0x807   :  { %v7256_v56 = vpop.f32.mrb[75].mxu0 }
 0x808   :  { %v10980_v55 = vadd.f32 %v7256_v56, %v7255_v48  ;;  %11387 = vst [vmem:[#allocation40_spill] sm:$0xff] %v11002_v9  ;;  %v6228_v48 = vadd.f32 %v10926_v36, %v5716_v53  ;;  %v11018_v53 = vpop.permute.xlu1 %5830 }
 0x80c   :  { %v7258_v41 = vpop.f32.mrb[76].mxu0 }
 0x80d   :  { %v7259_v23 = vpop.f32.mrb[77].mxu0 }
 0x80e   :  { %v10982_v24 = vadd.f32 %v7259_v23, %v7258_v41  ;;  %v7261_v7 = vpop.f32.mrb[78].mxu0  ;;  %v6585_v23 = vunpack.c.0.s8 %v6584_v60  ;;  %v6236_v60 = vadd.f32 %v10930_v35, %v5726_v2  ;;  %v6244_v35 = vadd.f32 %v10934_v5, %v5736_v8 }
 0x80f   :  { %v7262_v51 = vpop.f32.mrb[79].mxu0 }
 0x810   :  { %v10986_v49 = vadd.f32 %v7262_v51, %v7261_v7  ;;  %v11005_v7 = vpop.permute.xlu0 %5825  ;;  %v6231_v51 = vadd.f32 %v10928_v29, %v5721_v59  ;;  %v11016_v36 = vsub.s32 %v6585_v23, %v11002_v9 }
 0x812   :  { %11389 = vst [vmem:[#allocation46_spill] sm:$0xff] %v11016_v36 }
 0x814   :  { %v7264_v43 = vpop.f32.mrb[80].mxu0 }
 0x815   :  { %v7265_v31 = vpop.f32.mrb[81].mxu0 }
 0x816   :  { %v10990_v22 = vadd.f32 %v7265_v31, %v7264_v43  ;;  %v7267_v42 = vpop.f32.mrb[82].mxu0  ;;  %v11011_v31 = vld.sshfl [vmem:[%s11136_s11] sm:$0x11 pattern:$0x75316420]  ;;  %s8244_s11 = smov [#allocation8]  }
 0x817   :  { %v7268_v6 = vpop.f32.mrb[83].mxu0  ;;  %11388 = vst [vmem:[#allocation47_spill] sm:$0xff] %v11011_v31  ;;  %s6652_s29 = sshll.u32 %s8244_s11, 4  ;;  %s6653_s29 = int_to_ptr.vmem [resolvable:$true] %s6652_s29 }
 0x818   :  { %v10992_v17 = vadd.f32 %v7268_v6, %v7267_v42  ;;  %s8208_s30 = scalar_lea.vmem %s6653_s29, 16  ;;  %s8212_s14 = scalar_lea.vmem %s6653_s29, 32 }
 0x819   :  { %p8209_p2 = scmp.ne.s32.totalorder %s6653_s29, %s8208_s30  ;;  %p8213_p3 = scmp.lt.s32.totalorder %s6653_s29, %s6653_s29 }
 0x81a   :  { %p8214_p4 = scmp.lt.s32.totalorder %s8212_s14, %s8208_s30 }
 0x81c   :  { %v7270_v38 = vpop.f32.mrb[84].mxu0  ;;  %p8215_p5 = por %p8214_p4, %p8213_p3 }
 0x81d   :  { %v7271_v19 = vpop.f32.mrb[85].mxu0 }
 0x81e   :  { %v10998_v54 = vadd.f32 %v7271_v19, %v7270_v38  ;;  %v7273_v33 = vpop.f32.mrb[86].mxu0  ;;  %v6582_v38 = vcombine.high %v11011_v31, %v11011_v31  ;;  %p8216_p6 = pnand %p8215_p5, %p8209_p2 }
 0x81f   :  { %v7274_v52 = vpop.f32.mrb[87].mxu0 }
 0x820   :  { %v11000_v0 = vadd.f32 %v7274_v52, %v7273_v33  ;;  %v6596_v59 = vrot.slane %v6582_v38, %v11016_v36 }
 0x822   :  { %6631 = vmatprep.mubr.bf16.mxu0 %v6596_v59 }
 0x824   :  { %v7292_v30 = vpop.f32.mrb[88].mxu0 }
 0x825   :  { %v7293_v39 = vpop.f32.mrb[89].mxu0 }
 0x826   :  { %v7294_v56 = vadd.f32 %v7293_v39, %v7292_v30  ;;  %v7295_v41 = vpop.f32.mrb[90].mxu0  ;;  %v5746_v30 = vpop.permute.xlu0 %5745 }
 0x827   :  { %v7296_v43 = vpop.f32.mrb[91].mxu0 }
 0x828   :  { %v6389_v42 = vadd.f32 %v7294_v56, %v6228_v48  ;;  %v7297_v6 = vadd.f32 %v7296_v43, %v7295_v41  ;;  %v5751_v41 = vpop.permute.xlu1 %5750 }
 0x82a   :  { %v6392_v19 = vadd.f32 %v7297_v6, %v6231_v51  ;;  %v6515_v33 = vmax.f32 %v6389_v42, 0.0  ;;  %v6239_v51 = vadd.f32 %v10932_v4, %v5731_v15  ;;  %v11027_v38 = vpop.permute.xlu0 %5835  ;;  %v6247_v4 = vadd.f32 %v10936_v45, %v5741_v58 }
 0x82b   :  { %v6255_v45 = vadd.f32 %v10940_v25, %v5751_v41 }
 0x82c   :  { %v6516_v52 = vmax.f32 %v6392_v19, 0.0  ;;  %v7298_v27 = vpop.f32.mrb[92].mxu0  ;;  %v11029_v9 = vpop.permute.xlu1 %5840 }
 0x82d   :  { %v7299_v50 = vpop.f32.mrb[93].mxu0 }
 0x82e   :  { %v11024_v39 = vpack.c.bf16 %v6516_v52, %v6515_v33  ;;  %v7300_v48 = vadd.f32 %v7299_v50, %v7298_v27  ;;  %v7301_v56 = vpop.f32.mrb[94].mxu0 }
 0x82f   :  { %v7302_v23 = vpop.f32.mrb[95].mxu0 }
 0x830   :  { %v6397_v43 = vadd.f32 %v7300_v48, %v6236_v60  ;;  %v7303_v6 = vadd.f32 %v7302_v23, %v7301_v56  ;;  %v5756_v60 = vpop.permute.xlu0 %5755  ;;  %v5761_v56 = vpop.permute.xlu1 %5760 }
 0x831   :  { %v6263_v25 = vadd.f32 %v10944_v20, %v5761_v56 }
 0x832   :  { %v6400_v29 = vadd.f32 %v7303_v6, %v6239_v51  ;;  %v6517_v42 = vmax.f32 %v6397_v43, 0.0  ;;  %v6252_v6 = vadd.f32 %v10938_v10, %v5746_v30  ;;  %v6260_v10 = vadd.f32 %v10942_v12, %v5756_v60 }
 0x834   :  { %v6518_v19 = vmax.f32 %v6400_v29, 0.0  ;;  %v7304_v59 = vpop.f32.mrb[96].mxu0 }
 0x835   :  { %v7305_v36 = vpop.f32.mrb[97].mxu0 }
 0x836   :  { %v11032_v2 = vpack.c.bf16 %v6518_v19, %v6517_v42  ;;  %v7306_v33 = vadd.f32 %v7305_v36, %v7304_v59  ;;  %v7307_v52 = vpop.f32.mrb[98].mxu0  ;;  %v11038_v36 = vpop.permute.xlu0 %5845 }
 0x837   :  { %v7308_v27 = vpop.f32.mrb[99].mxu0  ;;  %v11041_v59 = vpop.permute.xlu1 %5850 }
 0x838   :  { %v6405_v15 = vadd.f32 %v7306_v33, %v6244_v35  ;;  %v7309_v50 = vadd.f32 %v7308_v27, %v7307_v52 }
 0x83a   :  { %v6408_v48 = vadd.f32 %v7309_v50, %v6247_v4  ;;  %v6519_v23 = vmax.f32 %v6405_v15, 0.0  ;;  %v5766_v4 = vpop.permute.xlu0 %5765 }
 0x83b   :  { %v6268_v12 = vadd.f32 %v10946_v57, %v5766_v4 }
 0x83c   :  { %v6520_v29 = vmax.f32 %v6408_v48, 0.0  ;;  %v7310_v51 = vpop.f32.mrb[100].mxu0 }
 0x83d   :  { %v7311_v43 = vpop.f32.mrb[101].mxu0 }
 0x83e   :  { %v11036_v31 = vpack.c.bf16 %v6520_v29, %v6519_v23  ;;  %v7312_v5 = vadd.f32 %v7311_v43, %v7310_v51  ;;  %v7313_v8 = vpop.f32.mrb[102].mxu0  ;;  %v5771_v23 = vpop.permute.xlu1 %5770 }
 0x83f   :  { %v7314_v42 = vpop.f32.mrb[103].mxu0  ;;  %v6271_v20 = vadd.f32 %v10948_v18, %v5771_v23 }
 0x840   :  { %v6413_v58 = vadd.f32 %v7312_v5, %v6252_v6  ;;  %v7315_v19 = vadd.f32 %v7314_v42, %v7313_v8  ;;  %v11047_v6 = vpop.permute.xlu0 %5855 }
 0x842   :  { %v6416_v35 = vadd.f32 %v7315_v19, %v6255_v45  ;;  %v6521_v33 = vmax.f32 %v6413_v58, 0.0  ;;  %v11049_v45 = vpop.permute.xlu1 %5860 }
 0x844   :  { %v6522_v52 = vmax.f32 %v6416_v35, 0.0  ;;  %v7316_v27 = vpop.f32.mrb[104].mxu0 }
 0x845   :  { %v7317_v15 = vpop.f32.mrb[105].mxu0 }
 0x846   :  { %v11044_v30 = vpack.c.bf16 %v6522_v52, %v6521_v33  ;;  %v7318_v50 = vadd.f32 %v7317_v15, %v7316_v27  ;;  %v7319_v48 = vpop.f32.mrb[106].mxu0  ;;  %v5776_v27 = vpop.permute.xlu0 %5775 }
 0x847   :  { %v7320_v29 = vpop.f32.mrb[107].mxu0 }
 0x848   :  { %v6421_v41 = vadd.f32 %v7318_v50, %v6260_v10  ;;  %v7321_v51 = vadd.f32 %v7320_v29, %v7319_v48  ;;  %v5781_v10 = vpop.permute.xlu1 %5780 }
 0x849   :  { %v6279_v18 = vadd.f32 %v10952_v46, %v5781_v10 }
 0x84a   :  { %v6424_v43 = vadd.f32 %v7321_v51, %v6263_v25  ;;  %v6523_v5 = vmax.f32 %v6421_v41, 0.0  ;;  %v6276_v41 = vadd.f32 %v10950_v47, %v5776_v27 }
 0x84c   :  { %v6524_v8 = vmax.f32 %v6424_v43, 0.0  ;;  %v7322_v42 = vpop.f32.mrb[108].mxu0  ;;  %v11058_v43 = vpop.permute.xlu0 %5865 }
 0x84d   :  { %v7323_v58 = vpop.f32.mrb[109].mxu0 }
 0x84e   :  { %v11052_v60 = vpack.c.bf16 %v6524_v8, %v6523_v5  ;;  %v7324_v19 = vadd.f32 %v7323_v58, %v7322_v42  ;;  %v7325_v35 = vpop.f32.mrb[110].mxu0  ;;  %v11061_v42 = vpop.permute.xlu1 %5870 }
 0x84f   :  { %v7326_v33 = vpop.f32.mrb[111].mxu0 }
 0x850   :  { %v6429_v56 = vadd.f32 %v7324_v19, %v6268_v12  ;;  %v7327_v52 = vadd.f32 %v7326_v33, %v7325_v35  ;;  %v5786_v33 = vpop.permute.xlu0 %5785 }
 0x851   :  { %v6284_v47 = vadd.f32 %v10954_v32, %v5786_v33 }
 0x852   :  { %v6432_v15 = vadd.f32 %v7327_v52, %v6271_v20  ;;  %v6525_v50 = vmax.f32 %v6429_v56, 0.0 }
 0x854   :  { %v6526_v48 = vmax.f32 %v6432_v15, 0.0  ;;  %v7328_v29 = vpop.f32.mrb[112].mxu0  ;;  %v5791_v15 = vpop.permute.xlu1 %5790 }
 0x855   :  { %v7329_v25 = vpop.f32.mrb[113].mxu0  ;;  %v6287_v46 = vadd.f32 %v10956_v62, %v5791_v15 }
 0x856   :  { %v11056_v51 = vpack.c.bf16 %v6526_v48, %v6525_v50  ;;  %v7330_v57 = vadd.f32 %v7329_v25, %v7328_v29  ;;  %v7331_v4 = vpop.f32.mrb[114].mxu0 }
 0x857   :  { %v7332_v5 = vpop.f32.mrb[115].mxu0 }
 0x858   :  { %v6437_v23 = vadd.f32 %v7330_v57, %v6276_v41  ;;  %v7333_v8 = vadd.f32 %v7332_v5, %v7331_v4  ;;  %v6292_v5 = vadd.f32 %v10958_v34, %v10974_v61 }
 0x85a   :  { %v6440_v58 = vadd.f32 %v7333_v8, %v6279_v18  ;;  %v6527_v12 = vmax.f32 %v6437_v23, 0.0 }
 0x85c   :  { %v6528_v19 = vmax.f32 %v6440_v58, 0.0  ;;  %v7334_v35 = vpop.f32.mrb[116].mxu0  ;;  %v6295_v58 = vadd.f32 %v10960_v16, %v10976_v40 }
 0x85d   :  { %v7335_v20 = vpop.f32.mrb[117].mxu0 }
 0x85e   :  { %v11064_v56 = vpack.c.bf16 %v6528_v19, %v6527_v12  ;;  %v7336_v52 = vadd.f32 %v7335_v20, %v7334_v35  ;;  %v7337_v27 = vpop.f32.mrb[118].mxu0 }
 0x85f   :  { %v7338_v50 = vpop.f32.mrb[119].mxu0 }
 0x860   :  { %v6445_v10 = vadd.f32 %v7336_v52, %v6284_v47  ;;  %v7339_v48 = vadd.f32 %v7338_v50, %v7337_v27  ;;  %v6300_v52 = vadd.f32 %v10962_v3, %v10984_v26  ;;  %v6303_v50 = vadd.f32 %v10964_v28, %v10988_v44 }
 0x861   :  { %v6308_v3 = vadd.f32 %v10966_v13, %v10994_v37  ;;  %v6311_v28 = vadd.f32 %v10968_v14, %v10996_v11  ;;  %v6316_v13 = vadd.f32 %v10970_v21, %v11005_v7  ;;  %v6319_v14 = vadd.f32 %v10972_v1, %v11018_v53 }
 0x862   :  { %v6448_v29 = vadd.f32 %v7339_v48, %v6287_v46  ;;  %v6529_v25 = vmax.f32 %v6445_v10, 0.0  ;;  %v6324_v21 = vadd.f32 %v10978_v63, %v11027_v38  ;;  %v6327_v1 = vadd.f32 %v10980_v55, %v11029_v9 }
 0x863   :  { %v6332_v63 = vadd.f32 %v10982_v24, %v11038_v36  ;;  %v6335_v55 = vadd.f32 %v10986_v49, %v11041_v59  ;;  %v6340_v24 = vadd.f32 %v10990_v22, %v11047_v6  ;;  %v6343_v49 = vadd.f32 %v10992_v17, %v11049_v45 }
 0x864   :  { %v6530_v41 = vmax.f32 %v6448_v29, 0.0  ;;  %v7340_v57 = vpop.f32.mrb[120].mxu0  ;;  %v6348_v22 = vadd.f32 %v10998_v54, %v11058_v43  ;;  %v6351_v17 = vadd.f32 %v11000_v0, %v11061_v42  ;;  %v11390_v54 = vld [vmem:[#allocation47_spill] sm:$0xff]  ;;  %v11391_v43 = vld [vmem:[#allocation46_spill] sm:$0xff] }
 0x865   :  { %v7341_v4 = vpop.f32.mrb[121].mxu0 }
 0x866   :  { %v11069_v18 = vpack.c.bf16 %v6530_v41, %v6529_v25  ;;  %v7342_v32 = vadd.f32 %v7341_v4, %v7340_v57  ;;  %v7343_v23 = vpop.f32.mrb[122].mxu0 }
 0x867   :  { %v7344_v8 = vpop.f32.mrb[123].mxu0 }
 0x868   :  { %v6453_v12 = vadd.f32 %v7342_v32, %v6292_v5  ;;  %v7345_v62 = vadd.f32 %v7344_v8, %v7343_v23 }
 0x86a   :  { %v6456_v19 = vadd.f32 %v7345_v62, %v6295_v58  ;;  %v6531_v35 = vmax.f32 %v6453_v12, 0.0 }
 0x86c   :  { %v6532_v33 = vmax.f32 %v6456_v19, 0.0  ;;  %v7346_v20 = vpop.f32.mrb[124].mxu0 }
 0x86d   :  { %v7347_v47 = vpop.f32.mrb[125].mxu0 }
 0x86e   :  { %v7348_v27 = vadd.f32 %v7347_v47, %v7346_v20  ;;  %v7349_v34 = vpop.f32.mrb[126].mxu0  ;;  %v6555_v61 = vpack.c.bf16 %v6532_v33, %v6531_v35 }
 0x86f   :  { %v7350_v15 = vpop.f32.mrb[127].mxu0 }
 0x870   :  { %v6461_v46 = vadd.f32 %v7348_v27, %v6300_v52  ;;  %v7351_v10 = vadd.f32 %v7350_v15, %v7349_v34  ;;  %7388 = vmatprep.subr.bf16.mxu0 %v6555_v61 }
 0x871   :  { %7389 = vmatpush3.bf16.msra.mxu0 %v11024_v39 }
 0x872   :  { %v6464_v16 = vadd.f32 %v7351_v10, %v6303_v50  ;;  %v6533_v40 = vmax.f32 %v6461_v46, 0.0 }
 0x874   :  { %v6534_v48 = vmax.f32 %v6464_v16, 0.0  ;;  %v7352_v29 = vpop.f32.mrb[128].mxu0 }
 0x875   :  { %v7353_v25 = vpop.f32.mrb[129].mxu0 }
 0x876   :  { %v7354_v26 = vadd.f32 %v7353_v25, %v7352_v29  ;;  %v7355_v41 = vpop.f32.mrb[130].mxu0  ;;  %v6556_v57 = vpack.c.bf16 %v6534_v48, %v6533_v40 }
 0x877   :  { %v7356_v4 = vpop.f32.mrb[131].mxu0 }
 0x878   :  { %v6469_v44 = vadd.f32 %v7354_v26, %v6308_v3  ;;  %v7357_v5 = vadd.f32 %v7356_v4, %v7355_v41  ;;  %7390 = vmatprep.subr.bf16.mxu0 %v6556_v57 }
 0x879   :  { %7391 = vmatpush3.bf16.msra.mxu0 %v11032_v2 }
 0x87a   :  { %v6472_v39 = vadd.f32 %v7357_v5, %v6311_v28  ;;  %v6535_v32 = vmax.f32 %v6469_v44, 0.0 }
 0x87c   :  { %v6536_v23 = vmax.f32 %v6472_v39, 0.0  ;;  %v7358_v8 = vpop.f32.mrb[132].mxu0 }
 0x87d   :  { %v7359_v58 = vpop.f32.mrb[133].mxu0 }
 0x87e   :  { %v7360_v37 = vadd.f32 %v7359_v58, %v7358_v8  ;;  %v7361_v12 = vpop.f32.mrb[134].mxu0  ;;  %v6557_v62 = vpack.c.bf16 %v6536_v23, %v6535_v32 }
 0x87f   :  { %v7362_v19 = vpop.f32.mrb[135].mxu0 }
 0x880   :  { %v6477_v11 = vadd.f32 %v7360_v37, %v6316_v13  ;;  %v7363_v35 = vadd.f32 %v7362_v19, %v7361_v12  ;;  %7392 = vmatprep.subr.bf16.mxu0 %v6557_v62 }
 0x881   :  { %7393 = vmatpush3.bf16.msra.mxu0 %v11036_v31 }
 0x882   :  { %v6480_v2 = vadd.f32 %v7363_v35, %v6319_v14  ;;  %v6537_v33 = vmax.f32 %v6477_v11, 0.0  ;;  %v11392_v11 = vrot.slane %v11390_v54, %v11391_v43  ;;  %v11393_v35 = vld [vmem:[#allocation40_spill] sm:$0xff] }
 0x884   :  { %v6538_v20 = vmax.f32 %v6480_v2, 0.0  ;;  %v7364_v47 = vpop.f32.mrb[136].mxu0  ;;  %v6572_v2 = vsub.s32 0, %v11393_v35 }
 0x885   :  { %v7365_v52 = vpop.f32.mrb[137].mxu0 }
 0x886   :  { %v7366_v7 = vadd.f32 %v7365_v52, %v7364_v47  ;;  %v7367_v27 = vpop.f32.mrb[138].mxu0  ;;  %v6558_v34 = vpack.c.bf16 %v6538_v20, %v6537_v33  ;;  %v6568_v33 = vpop.permute.xlu0 %6567 }
 0x887   :  { %v7368_v61 = vpop.f32.mrb[139].mxu0  ;;  %v6573_v20 = vrot.slane %v6568_v33, %v6572_v2 }
 0x888   :  { %v6485_v53 = vadd.f32 %v7366_v7, %v6324_v21  ;;  %v7369_v15 = vadd.f32 %v7368_v61, %v7367_v27  ;;  %7394 = vmatprep.subr.bf16.mxu0 %v6558_v34 }
 0x889   :  { %7395 = vmatpush3.bf16.msra.mxu0 %v11044_v30 }
 0x88a   :  { %v6488_v31 = vadd.f32 %v7369_v15, %v6327_v1  ;;  %v6539_v50 = vmax.f32 %v6485_v53, 0.0 }
 0x88c   :  { %v6540_v46 = vmax.f32 %v6488_v31, 0.0  ;;  %v7370_v10 = vpop.f32.mrb[140].mxu0 }
 0x88d   :  { %v7371_v16 = vpop.f32.mrb[141].mxu0 }
 0x88e   :  { %v7372_v38 = vadd.f32 %v7371_v16, %v7370_v10  ;;  %v7373_v40 = vpop.f32.mrb[142].mxu0  ;;  %v6559_v48 = vpack.c.bf16 %v6540_v46, %v6539_v50 }
 0x88f   :  { %v7374_v29 = vpop.f32.mrb[143].mxu0 }
 0x890   :  { %v6493_v9 = vadd.f32 %v7372_v38, %v6332_v63  ;;  %v7375_v25 = vadd.f32 %v7374_v29, %v7373_v40  ;;  %7396 = vmatprep.subr.bf16.mxu0 %v6559_v48 }
 0x891   :  { %7397 = vmatpush3.bf16.msra.mxu0 %v11052_v60 }
 0x892   :  { %v6496_v30 = vadd.f32 %v7375_v25, %v6335_v55  ;;  %v6541_v3 = vmax.f32 %v6493_v9, 0.0 }
 0x894   :  { %v6542_v26 = vmax.f32 %v6496_v30, 0.0  ;;  %v7376_v41 = vpop.f32.mrb[144].mxu0 }
 0x895   :  { %v7377_v57 = vpop.f32.mrb[145].mxu0 }
 0x896   :  { %v7378_v36 = vadd.f32 %v7377_v57, %v7376_v41  ;;  %v7379_v4 = vpop.f32.mrb[146].mxu0  ;;  %v6560_v28 = vpack.c.bf16 %v6542_v26, %v6541_v3 }
 0x897   :  { %v7380_v44 = vpop.f32.mrb[147].mxu0 }
 0x898   :  { %v6501_v59 = vadd.f32 %v7378_v36, %v6340_v24  ;;  %v7381_v5 = vadd.f32 %v7380_v44, %v7379_v4  ;;  %7398 = vmatprep.subr.bf16.mxu0 %v6560_v28 }
 0x899   :  { %7399 = vmatpush3.bf16.msra.mxu0 %v11056_v51 }
 0x89a   :  { %v6504_v60 = vadd.f32 %v7381_v5, %v6343_v49  ;;  %v6543_v39 = vmax.f32 %v6501_v59, 0.0 }
 0x89c   :  { %v6544_v32 = vmax.f32 %v6504_v60, 0.0  ;;  %v7382_v23 = vpop.f32.mrb[148].mxu0 }
 0x89d   :  { %v7383_v8 = vpop.f32.mrb[149].mxu0 }
 0x89e   :  { %v7384_v6 = vadd.f32 %v7383_v8, %v7382_v23  ;;  %v7385_v58 = vpop.f32.mrb[150].mxu0  ;;  %v6561_v13 = vpack.c.bf16 %v6544_v32, %v6543_v39 }
 0x89f   :  { %v7386_v37 = vpop.f32.mrb[151].mxu0 }
 0x8a0   :  { %v6509_v45 = vadd.f32 %v7384_v6, %v6348_v22  ;;  %v7387_v12 = vadd.f32 %v7386_v37, %v7385_v58  ;;  %7400 = vmatprep.subr.bf16.mxu0 %v6561_v13 }
 0x8a1   :  { %7401 = vmatpush3.bf16.msra.mxu0 %v11064_v56 }
 0x8a2   :  { %v6512_v51 = vadd.f32 %v7387_v12, %v6351_v17  ;;  %v6545_v62 = vmax.f32 %v6509_v45, 0.0 }
 0x8a4   :  { %v6546_v19 = vmax.f32 %v6512_v51, 0.0 }
 0x8a6   :  { %v6562_v14 = vpack.c.bf16 %v6546_v19, %v6545_v62 }
 0x8a8   :  { %7402 = vmatprep.subr.bf16.mxu0 %v6562_v14 }
 0x8a9   :  { %7403 = vmatpush3.bf16.msra.mxu0 %v11069_v18 }
 0x8ac   :  { %6632 = vmatmul.mubr.bf16.vlgmr.msra.gmra.mrb[152].mxu0 %v11392_v11 }
 0x97f   :  { %v7404_v0 = vpop.f32.mrb[152].mxu0 }
 0x980   :  { %v7405_v42 = vpop.f32.mrb[153].mxu0 }
 0x981   :  { %v7406_v47 = vadd.f32 %v7405_v42, %v7404_v0  ;;  %v7407_v52 = vpop.f32.mrb[154].mxu0 }
 0x982   :  { %v7408_v56 = vpop.f32.mrb[155].mxu0 }
 0x983   :  { %v6634_v21 = vadd.f32 %v7406_v47, %v6573_v20 }
 0x985   :  { %v7073_v7 = vmul.f32 -1.442695, %v6634_v21 }
 0x987   :  { %8160 = vpow2.f32 %v7073_v7 }
 0x991   :  { %v8161_v27 = vpop.eup %8160 }
 0x992   :  { %v6642_v34 = vadd.f32 1.0, %v8161_v27 }
 0x994   :  { %8162 = vrcp.f32 %v6642_v34 }
 0x99e   :  { %v8163_v18 = vpop.eup %8162 }
 0x99f   :  { %6645 = vst [vmem:[#allocation8] sm:$0x1] %v8163_v18 }
 0x9a0   :  { %8219 = shalt.err (!%p8216_p6)
}
 0x9a1   :  { %s8220_s5 = scalar_lea.hbm %s11138_s13, 16 }
 0x9a2   :  { %p8221_p7 = scmp.ne.s32.totalorder %s11138_s13, %s8220_s5  ;;  %p8224_p8 = scmp.lt.u32.totalorder %s8220_s5, %s11138_s13 }
 0x9a4   :  { %p8226_p9 = pnand %p8224_p8, %p8221_p7 }
 0x9a6   :  { %8229 = shalt.err (!%p8226_p9)
}
 0x9a7   :  { %6655 = dma.vmem_to_hbm [thread:$0]  %s6653_s29, 16, %s11138_s13, [#allocation5]  }
 0x9a8   :  { %8234 = dma.done.wait [#allocation5], 16  }
 0x9a9   :  { %8235 = vsyncadd [#allocation5], 4294967280 }
 0x9aa   :  { %6659 = vsyncpa [#allocation4], 1 }
 0x9ab   :  { %6660 = vsyncpa [#allocation7], 1 }
 0x9ac   :  { %6661 = vsyncpa [#allocation5], 1 }

</bundles_post_ra>
